<compile_context>
chip_gen: v6e
topology: v6e:2x2x1
jax: 0.10.0
libtpu: 0.0.40
codegen_flags: <defaults>
</compile_context>

<pallas_src>
import functools
import math

import jax
import jax.numpy as jnp
from jax import lax
from jax.experimental import pallas as pl
from jax.experimental.pallas import tpu as pltpu

LANE = 128   # lane width of the weight slab
SUB = 8      # sublane alignment of every slab segment


# ----------------------------------------------------------------------------
# Config (matches the PyTorch spec's small test configuration)
# ----------------------------------------------------------------------------
class Configs:
    enc_in = 4
    dec_in = 4
    c_out = 4
    d_model = 32
    n_heads = 4
    e_layers = 2
    d_layers = 1
    d_ff = 64
    factor = 5
    dropout = 0.0
    embed = "timeF"
    freq = "h"          # -> 4 time-mark features
    activation = "relu"
    distil = False
    output_attention = False
    seq_len = 8
    label_len = 4
    pred_len = 4


# ----------------------------------------------------------------------------
# In-kernel building blocks (pure functions on VMEM-resident values / refs)
# ----------------------------------------------------------------------------
def _get(slab_ref, entry):
    """Fetch one packed weight: aligned [rp,128] window load + static vreg slice."""
    off, rp, r, c = entry
    return slab_ref[off:off + rp, :][:r, :c]


def _layernorm(x, g, b, eps=1e-5):
    mu = jnp.mean(x, axis=-1, keepdims=True)
    xc = x - mu
    var = jnp.mean(xc * xc, axis=-1, keepdims=True)
    return xc * lax.rsqrt(var + eps) * g + b


def _activation(y, act):
    if act == "relu":
        return jnp.maximum(y, 0.0)
    # gelu path is unused in this config (activation="relu")
    return jax.nn.gelu(y, approximate=False)


def _ffn(g, x, li, act):
    # conv1/conv2 with kernel_size=1 == per-timestep linears
    y = jnp.dot(x, g(li["w1"]), preferred_element_type=jnp.float32) + g(li["b1"])
    y = _activation(y, act)
    return jnp.dot(y, g(li["w2"]), preferred_element_type=jnp.float32) + g(li["b2"])


def _mha(g, xq, xkv, ai, n_heads, causal, fused_qkv):
    """xq: [Lq, Dm], xkv: [Lk, Dm] -> [Lq, Dm].  Heads handled by lane slicing."""
    Dm = xq.shape[-1]
    dk = Dm // n_heads
    scale = 1.0 / math.sqrt(dk)
    wqkv = g(ai["wqkv"])            # [Dm, 3*Dm]
    bqkv = g(ai["bqkv"])            # [1, 3*Dm]
    if fused_qkv:                   # self-attention: one packed GEMM
        qkv = jnp.dot(xq, wqkv, preferred_element_type=jnp.float32) + bqkv
        q, k, v = qkv[:, :Dm], qkv[:, Dm:2 * Dm], qkv[:, 2 * Dm:]
    else:                           # cross-attention: Q from xq, packed KV from xkv
        q = jnp.dot(xq, wqkv[:, :Dm], preferred_element_type=jnp.float32) + bqkv[:, :Dm]
        kv = jnp.dot(xkv, wqkv[:, Dm:], preferred_element_type=jnp.float32) + bqkv[:, Dm:]
        k, v = kv[:, :Dm], kv[:, Dm:]

    Lq, Lk = q.shape[0], k.shape[0]
    if causal:
        row = lax.broadcasted_iota(jnp.int32, (Lq, Lk), 0)
        col = lax.broadcasted_iota(jnp.int32, (Lq, Lk), 1)
        neg = jnp.float32(-3.4e38)

    heads = []
    for h in range(n_heads):
        sl = slice(h * dk, (h + 1) * dk)
        s = jnp.einsum("qd,kd->qk", q[:, sl], k[:, sl],
                       preferred_element_type=jnp.float32) * scale
        if causal:
            s = jnp.where(col <= row, s, neg)
        m = jnp.max(s, axis=-1, keepdims=True)
        e = jnp.exp(s - m)
        p = e / jnp.sum(e, axis=-1, keepdims=True)
        heads.append(jnp.dot(p, v[:, sl], preferred_element_type=jnp.float32))
    o = jnp.concatenate(heads, axis=-1)                      # [Lq, Dm]
    return jnp.dot(o, g(ai["wo"]), preferred_element_type=jnp.float32) + g(ai["bo"])


def _embed(g, x, x_mark, ei):
    """DataEmbedding: circular conv(k=3) token emb + time-feature emb + pos emb.

    Folded into ONE GEMM: concat([x_prev, x, x_next, x_mark]) @ w_emb + pe.
    """
    x_prev = jnp.concatenate([x[-1:], x[:-1]], axis=0)        # circular shift +1
    x_next = jnp.concatenate([x[1:], x[:1]], axis=0)          # circular shift -1
    cols = jnp.concatenate([x_prev, x, x_next, x_mark], axis=-1)   # [L, 3C+d_mark]
    return (jnp.dot(cols, g(ei["w_emb"]), preferred_element_type=jnp.float32)
            + g(ei["pe"]))


def _encoder_layer(g, x, li, n_heads, act):
    x = x + _mha(g, x, x, li["attn"], n_heads, causal=False, fused_qkv=True)
    x = _layernorm(x, g(li["ln1_g"]), g(li["ln1_b"]))
    y = _ffn(g, x, li, act)
    return _layernorm(x + y, g(li["ln2_g"]), g(li["ln2_b"]))


def _decoder_layer(g, x, cross, li, n_heads, act):
    x = x + _mha(g, x, x, li["self_attn"], n_heads, causal=True, fused_qkv=True)
    x = _layernorm(x, g(li["ln1_g"]), g(li["ln1_b"]))
    x = x + _mha(g, x, cross, li["cross_attn"], n_heads, causal=False, fused_qkv=False)
    x = _layernorm(x, g(li["ln2_g"]), g(li["ln2_b"]))
    y = _ffn(g, x, li, act)
    return _layernorm(x + y, g(li["ln3_g"]), g(li["ln3_b"]))


# ----------------------------------------------------------------------------
# The single fused kernel: one grid step = full forward for one batch sample
# ----------------------------------------------------------------------------
def _informer_kernel(x_enc_ref, xme_ref, x_dec_ref, xmd_ref, slab_ref, out_ref,
                     *, idx, n_heads, pred_len, act):
    g = functools.partial(_get, slab_ref)

    # ---- encoder ----
    enc = _embed(g, x_enc_ref[...], xme_ref[...], idx["enc_emb"])
    for li in idx["enc_layers"]:
        enc = _encoder_layer(g, enc, li, n_heads, act)
    enc = _layernorm(enc, g(idx["enc_norm_g"]), g(idx["enc_norm_b"]))

    # ---- decoder ----
    dec = _embed(g, x_dec_ref[...], xmd_ref[...], idx["dec_emb"])
    for li in idx["dec_layers"]:
        dec = _decoder_layer(g, dec, enc, li, n_heads, act)
    dec = _layernorm(dec, g(idx["dec_norm_g"]), g(idx["dec_norm_b"]))

    y = (jnp.dot(dec, g(idx["proj_w"]), preferred_element_type=jnp.float32)
         + g(idx["proj_b"]))                                   # [Ld, c_out]
    out_ref[...] = y[y.shape[0] - pred_len:, :]


def informer_forward(cfg, slab, idx, x_enc, x_mark_enc, x_dec, x_mark_dec):
    B, Le, enc_in = x_enc.shape
    _, Ld, dec_in = x_dec.shape
    d_mark_e = x_mark_enc.shape[-1]
    d_mark_d = x_mark_dec.shape[-1]

    # ProbSparse == dense attention only when top-u selects every query.
    for L in (Le, Ld):
        u = cfg.factor * math.ceil(math.log(L))
        assert u >= L, ("ProbSparse top-u < L: dense-attention equivalence "
                        "breaks for this seq_len/factor combination")

    kernel = functools.partial(_informer_kernel, idx=idx, n_heads=cfg.n_heads,
                               pred_len=cfg.pred_len, act=cfg.activation)

    in_specs = [
        pl.BlockSpec((None, Le, enc_in), lambda b: (b, 0, 0)),
        pl.BlockSpec((None, Le, d_mark_e), lambda b: (b, 0, 0)),
        pl.BlockSpec((None, Ld, dec_in), lambda b: (b, 0, 0)),
        pl.BlockSpec((None, Ld, d_mark_d), lambda b: (b, 0, 0)),
        # Single packed weight slab, constant block index -> fetched once.
        pl.BlockSpec(slab.shape, lambda b: (0, 0)),
    ]

    return pl.pallas_call(
        kernel,
        grid=(B,),
        in_specs=in_specs,
        out_specs=pl.BlockSpec((None, cfg.pred_len, cfg.c_out), lambda b: (b, 0, 0)),
        out_shape=jax.ShapeDtypeStruct((B, cfg.pred_len, cfg.c_out), jnp.float32),
        compiler_params=pltpu.CompilerParams(dimension_semantics=("parallel",)),
    )(x_enc.astype(jnp.float32), x_mark_enc.astype(jnp.float32),
      x_dec.astype(jnp.float32), x_mark_dec.astype(jnp.float32), slab)


# ----------------------------------------------------------------------------
# Parameter init (synthetic weights, same layout as the PyTorch module) and
# one-time packing into a single kernel-friendly [R, 128] VMEM slab.
# ----------------------------------------------------------------------------
def positional_embedding(L, d_model):
    position = jnp.arange(L, dtype=jnp.float32)[:, None]
    div_term = jnp.exp(
        jnp.arange(0, d_model, 2, dtype=jnp.float32) * (-math.log(10000.0) / d_model))
    pe = jnp.zeros((L, d_model), jnp.float32)
    pe = pe.at[:, 0::2].set(jnp.sin(position * div_term))
    pe = pe.at[:, 1::2].set(jnp.cos(position * div_term))
    return pe


def init_params(key, cfg):
    keys = iter(jax.random.split(key, 256))

    def w(shape, scale=0.05):
        return jax.random.normal(next(keys), shape, jnp.float32) * scale

    d_mark = {"h": 4, "t": 5, "s": 6, "m": 1, "a": 1, "w": 2, "d": 3, "b": 3}[cfg.freq]

    def emb_params(c_in):
        # token_w[k*C + c, o] == conv_w[o, c, k]  (circular conv, k=3, no bias)
        return {"token_w": w((3 * c_in, cfg.d_model)),
                "time_w": w((d_mark, cfg.d_model))}    # timeF embedding: no bias

    def attn_params():
        dm = cfg.d_model
        return {"wq": w((dm, dm)), "bq": w((dm,)),
                "wk": w((dm, dm)), "bk": w((dm,)),
                "wv": w((dm, dm)), "bv": w((dm,)),
                "wo": w((dm, dm)), "bo": w((dm,))}

    def ffn_params():
        return {"w1": w((cfg.d_model, cfg.d_ff)), "b1": w((cfg.d_ff,)),
                "w2": w((cfg.d_ff, cfg.d_model)), "b2": w((cfg.d_model,))}

    ones = lambda: jnp.ones((cfg.d_model,), jnp.float32)
    zeros = lambda: jnp.zeros((cfg.d_model,), jnp.float32)

    return {
        "enc_emb": emb_params(cfg.enc_in),
        "dec_emb": emb_params(cfg.dec_in),
        "enc_layers": [
            {"attn": attn_params(), **ffn_params(),
             "ln1_g": ones(), "ln1_b": zeros(),
             "ln2_g": ones(), "ln2_b": zeros()}
            for _ in range(cfg.e_layers)
        ],
        "enc_norm_g": ones(), "enc_norm_b": zeros(),
        "dec_layers": [
            {"self_attn": attn_params(), "cross_attn": attn_params(), **ffn_params(),
             "ln1_g": ones(), "ln1_b": zeros(),
             "ln2_g": ones(), "ln2_b": zeros(),
             "ln3_g": ones(), "ln3_b": zeros()}
            for _ in range(cfg.d_layers)
        ],
        "dec_norm_g": ones(), "dec_norm_b": zeros(),
        "proj_w": w((cfg.d_model, cfg.c_out)), "proj_b": w((cfg.c_out,)),
    }


def pack_params(params, cfg):
    """Pack every weight (fused QKV, fused embedding GEMM, biases/LN as rows)
    into ONE [R, 128] f32 slab.  Every segment is 8-row aligned and zero-padded
    to 128 lanes so all in-kernel window loads are (8,128)-aligned.  Returns
    the slab plus a nested dict of static (offset, padded_rows, rows, cols)."""
    blocks = []
    state = {"off": 0}

    def add(arr):
        arr = jnp.asarray(arr, jnp.float32)
        if arr.ndim == 1:
            arr = arr.reshape(1, -1)
        r, c = arr.shape
        assert 1 <= c <= LANE, (r, c)
        rp = ((r + SUB - 1) // SUB) * SUB
        blk = jnp.zeros((rp, LANE), jnp.float32).at[:r, :c].set(arr)
        blocks.append(blk)
        entry = (state["off"], rp, r, c)
        state["off"] += rp
        return entry

    f32 = lambda a: jnp.asarray(a, jnp.float32)

    def pack_emb(e, L):
        # [x_prev | x | x_next | x_mark] @ w_emb reproduces conv(k=3,circular)+time-linear
        w_emb = jnp.concatenate([f32(e["token_w"]), f32(e["time_w"])], axis=0)
        return {"w_emb": add(w_emb), "pe": add(positional_embedding(L, cfg.d_model))}

    def pack_attn(a):
        wqkv = jnp.concatenate([f32(a["wq"]), f32(a["wk"]), f32(a["wv"])], axis=1)
        bqkv = jnp.concatenate([f32(a["bq"]), f32(a["bk"]), f32(a["bv"])])
        return {"wqkv": add(wqkv), "bqkv": add(bqkv),
                "wo": add(a["wo"]), "bo": add(a["bo"])}

    def pack_ffn_ln(lp, ln_names):
        d = {"w1": add(lp["w1"]), "b1": add(lp["b1"]),
             "w2": add(lp["w2"]), "b2": add(lp["b2"])}
        for n in ln_names:
            d[n + "_g"] = add(lp[n + "_g"])
            d[n + "_b"] = add(lp[n + "_b"])
        return d

    L_dec = cfg.label_len + cfg.pred_len
    idx = {
        "enc_emb": pack_emb(params["enc_emb"], cfg.seq_len),
        "dec_emb": pack_emb(params["dec_emb"], L_dec),
        "enc_layers": [
            {"attn": pack_attn(lp["attn"]), **pack_ffn_ln(lp, ["ln1", "ln2"])}
            for lp in params["enc_layers"]],
        "enc_norm_g": add(params["enc_norm_g"]),
        "enc_norm_b": add(params["enc_norm_b"]),
        "dec_layers": [
            {"self_attn": pack_attn(lp["self_attn"]),
             "cross_attn": pack_attn(lp["cross_attn"]),
             **pack_ffn_ln(lp, ["ln1", "ln2", "ln3"])}
            for lp in params["dec_layers"]],
        "dec_norm_g": add(params["dec_norm_g"]),
        "dec_norm_b": add(params["dec_norm_b"]),
        "proj_w": add(params["proj_w"]), "proj_b": add(params["proj_b"]),
    }
    slab = jnp.concatenate(blocks, axis=0)
    assert slab.shape == (state["off"], LANE)
    return slab, idx


# ----------------------------------------------------------------------------
if __name__ == "__main__":
    cfg = Configs()
    key = jax.random.PRNGKey(0)
    k_param, k_enc, k_menc, k_dec, k_mdec = jax.random.split(key, 5)

    params = init_params(k_param, cfg)
    slab, idx = pack_params(params, cfg)

    B = 2
    L_enc = cfg.seq_len                       # 8
    L_dec = cfg.label_len + cfg.pred_len      # 8
    d_mark = 4                                # freq='h'

    x_enc = jax.random.normal(k_enc, (B, L_enc, cfg.enc_in), jnp.float32)
    x_mark_enc = jax.random.normal(k_menc, (B, L_enc, d_mark), jnp.float32)
    x_dec = jax.random.normal(k_dec, (B, L_dec, cfg.dec_in), jnp.float32)
    x_mark_dec = jax.random.normal(k_mdec, (B, L_dec, d_mark), jnp.float32)

    fwd = jax.jit(lambda slab_, xe, xme, xd, xmd:
                  informer_forward(cfg, slab_, idx, xe, xme, xd, xmd))
    out = fwd(slab, x_enc, x_mark_enc, x_dec, x_mark_dec)
    out = jax.block_until_ready(out)

    assert out.shape == (B, cfg.pred_len, cfg.c_out), out.shape
    assert bool(jnp.all(jnp.isfinite(out)))
    print("KERNEL_OK")
</pallas_src>

<mosaic_0001>
module attributes {stable_mosaic.version = 11 : i64} {
  func.func @_informer_kernel(%arg0: i32, %arg1: memref<1x8x4xf32, #tpu.memory_space<vmem>>, %arg2: memref<1x8x4xf32, #tpu.memory_space<vmem>>, %arg3: memref<1x8x4xf32, #tpu.memory_space<vmem>>, %arg4: memref<1x8x4xf32, #tpu.memory_space<vmem>>, %arg5: memref<888x128xf32, #tpu.memory_space<vmem>>, %arg6: memref<1x4x4xf32, #tpu.memory_space<vmem>>) attributes {dimension_semantics = [#tpu.dimension_semantics<parallel>], iteration_bounds = array<i64: 2>, scalar_prefetch = 0 : i64, scratch_operands = 0 : i64, tpu.core_type = #tpu.core_type<tc>, window_params = [{transform_indices = @transform_0, window_bounds = array<i64: 1, 8, 4>}, {transform_indices = @transform_1, window_bounds = array<i64: 1, 8, 4>}, {transform_indices = @transform_2, window_bounds = array<i64: 1, 8, 4>}, {transform_indices = @transform_3, window_bounds = array<i64: 1, 8, 4>}, {pipeline_mode = #tpu.pipeline_mode<synchronous>, transform_indices = @transform_4, window_bounds = array<i64: 888, 128>}, {transform_indices = @transform_5, window_bounds = array<i64: 1, 4, 4>}]} {
    %c0 = arith.constant 0 : index
    %c0_0 = arith.constant 0 : index
    %c0_1 = arith.constant 0 : index
    %0 = vector.load %arg1[%c0, %c0_0, %c0_1] : memref<1x8x4xf32, #tpu.memory_space<vmem>>, vector<1x8x4xf32>
    %1 = vector.shape_cast %0 : vector<1x8x4xf32> to vector<8x4xf32>
    %c0_2 = arith.constant 0 : index
    %c0_3 = arith.constant 0 : index
    %c0_4 = arith.constant 0 : index
    %2 = vector.load %arg2[%c0_2, %c0_3, %c0_4] : memref<1x8x4xf32, #tpu.memory_space<vmem>>, vector<1x8x4xf32>
    %3 = vector.shape_cast %2 : vector<1x8x4xf32> to vector<8x4xf32>
    %4 = vector.extract_strided_slice %1 {offsets = [7, 0], sizes = [1, 4], strides = [1, 1]} : vector<8x4xf32> to vector<1x4xf32>
    %5 = vector.extract_strided_slice %1 {offsets = [0, 0], sizes = [7, 4], strides = [1, 1]} : vector<8x4xf32> to vector<7x4xf32>
    %6 = tpu.concatenate %4, %5 in 0 : vector<1x4xf32>, vector<7x4xf32> -> vector<8x4xf32>
    %7 = vector.extract_strided_slice %1 {offsets = [1, 0], sizes = [7, 4], strides = [1, 1]} : vector<8x4xf32> to vector<7x4xf32>
    %8 = vector.extract_strided_slice %1 {offsets = [0, 0], sizes = [1, 4], strides = [1, 1]} : vector<8x4xf32> to vector<1x4xf32>
    %9 = tpu.concatenate %7, %8 in 0 : vector<7x4xf32>, vector<1x4xf32> -> vector<8x4xf32>
    %10 = tpu.concatenate %6, %1, %9, %3 in 1 : vector<8x4xf32>, vector<8x4xf32>, vector<8x4xf32>, vector<8x4xf32> -> vector<8x16xf32>
    %c0_5 = arith.constant 0 : index
    %c0_6 = arith.constant 0 : index
    %11 = vector.load %arg5[%c0_5, %c0_6] : memref<888x128xf32, #tpu.memory_space<vmem>>, vector<16x128xf32>
    %12 = vector.extract_strided_slice %11 {offsets = [0, 0], sizes = [16, 32], strides = [1, 1]} : vector<16x128xf32> to vector<16x32xf32>
    %cst = arith.constant dense<0.000000e+00> : vector<8x32xf32>
    %13 = tpu.matmul %10, %12, %cst {dimension_numbers = #tpu.dot_dimension_numbers<[1], [0], [0], [1], [0, 0, 1, 1], [], []>} : vector<8x16xf32>, vector<16x32xf32>, vector<8x32xf32> -> vector<8x32xf32>
    %c16 = arith.constant 16 : index
    %c0_7 = arith.constant 0 : index
    %14 = vector.load %arg5[%c16, %c0_7] : memref<888x128xf32, #tpu.memory_space<vmem>>, vector<8x128xf32>
    %15 = vector.extract_strided_slice %14 {offsets = [0, 0], sizes = [8, 32], strides = [1, 1]} : vector<8x128xf32> to vector<8x32xf32>
    %16 = arith.addf %13, %15 : vector<8x32xf32>
    %c48 = arith.constant 48 : index
    %c0_8 = arith.constant 0 : index
    %17 = vector.load %arg5[%c48, %c0_8] : memref<888x128xf32, #tpu.memory_space<vmem>>, vector<32x128xf32>
    %18 = vector.extract_strided_slice %17 {offsets = [0, 0], sizes = [32, 96], strides = [1, 1]} : vector<32x128xf32> to vector<32x96xf32>
    %c80 = arith.constant 80 : index
    %c0_9 = arith.constant 0 : index
    %19 = vector.load %arg5[%c80, %c0_9] : memref<888x128xf32, #tpu.memory_space<vmem>>, vector<8x128xf32>
    %20 = vector.extract_strided_slice %19 {offsets = [0, 0], sizes = [1, 96], strides = [1, 1]} : vector<8x128xf32> to vector<1x96xf32>
    %cst_10 = arith.constant dense<0.000000e+00> : vector<8x96xf32>
    %21 = tpu.matmul %16, %18, %cst_10 {dimension_numbers = #tpu.dot_dimension_numbers<[1], [0], [0], [1], [0, 0, 1, 1], [], []>} : vector<8x32xf32>, vector<32x96xf32>, vector<8x96xf32> -> vector<8x96xf32>
    %22 = vector.broadcast %20 : vector<1x96xf32> to vector<8x96xf32>
    %23 = arith.addf %21, %22 : vector<8x96xf32>
    %24 = vector.extract_strided_slice %23 {offsets = [0, 0], sizes = [8, 32], strides = [1, 1]} : vector<8x96xf32> to vector<8x32xf32>
    %25 = vector.extract_strided_slice %23 {offsets = [0, 32], sizes = [8, 32], strides = [1, 1]} : vector<8x96xf32> to vector<8x32xf32>
    %26 = vector.extract_strided_slice %23 {offsets = [0, 64], sizes = [8, 32], strides = [1, 1]} : vector<8x96xf32> to vector<8x32xf32>
    %27 = vector.extract_strided_slice %24 {offsets = [0, 0], sizes = [8, 8], strides = [1, 1]} : vector<8x32xf32> to vector<8x8xf32>
    %28 = vector.extract_strided_slice %25 {offsets = [0, 0], sizes = [8, 8], strides = [1, 1]} : vector<8x32xf32> to vector<8x8xf32>
    "tpu.trace_start"() <{level = 10 : i32, message = "qd,kd->qk"}> : () -> ()
    %cst_11 = arith.constant dense<0.000000e+00> : vector<8x8xf32>
    %29 = tpu.matmul %27, %28, %cst_11 {dimension_numbers = #tpu.dot_dimension_numbers<[1], [1], [0], [0], [0, 0, 1, 0], [], []>} : vector<8x8xf32>, vector<8x8xf32>, vector<8x8xf32> -> vector<8x8xf32>
    "tpu.trace_stop"() : () -> ()
    %cst_12 = arith.constant 0.353553385 : f32
    %30 = vector.broadcast %cst_12 : f32 to vector<8x8xf32>
    %31 = arith.mulf %29, %30 : vector<8x8xf32>
    %cst_13 = arith.constant dense<0xFF800000> : vector<8xf32>
    %32 = vector.multi_reduction <maximumf>, %31, %cst_13 [1] : vector<8x8xf32> to vector<8xf32>
    %33 = vector.shape_cast %32 : vector<8xf32> to vector<8x1xf32>
    %34 = vector.broadcast %33 : vector<8x1xf32> to vector<8x8xf32>
    %35 = arith.subf %31, %34 : vector<8x8xf32>
    %36 = math.exp %35 : vector<8x8xf32>
    %cst_14 = arith.constant dense<0.000000e+00> : vector<8xf32>
    %37 = vector.multi_reduction <add>, %36, %cst_14 [1] : vector<8x8xf32> to vector<8xf32>
    %38 = vector.shape_cast %37 : vector<8xf32> to vector<8x1xf32>
    %39 = vector.broadcast %38 : vector<8x1xf32> to vector<8x8xf32>
    %40 = arith.divf %36, %39 : vector<8x8xf32>
    %41 = vector.extract_strided_slice %26 {offsets = [0, 0], sizes = [8, 8], strides = [1, 1]} : vector<8x32xf32> to vector<8x8xf32>
    %cst_15 = arith.constant dense<0.000000e+00> : vector<8x8xf32>
    %42 = tpu.matmul %40, %41, %cst_15 {dimension_numbers = #tpu.dot_dimension_numbers<[1], [0], [0], [1], [0, 0, 1, 1], [], []>} : vector<8x8xf32>, vector<8x8xf32>, vector<8x8xf32> -> vector<8x8xf32>
    %43 = vector.extract_strided_slice %24 {offsets = [0, 8], sizes = [8, 8], strides = [1, 1]} : vector<8x32xf32> to vector<8x8xf32>
    %44 = vector.extract_strided_slice %25 {offsets = [0, 8], sizes = [8, 8], strides = [1, 1]} : vector<8x32xf32> to vector<8x8xf32>
    "tpu.trace_start"() <{level = 10 : i32, message = "qd,kd->qk"}> : () -> ()
    %cst_16 = arith.constant dense<0.000000e+00> : vector<8x8xf32>
    %45 = tpu.matmul %43, %44, %cst_16 {dimension_numbers = #tpu.dot_dimension_numbers<[1], [1], [0], [0], [0, 0, 1, 0], [], []>} : vector<8x8xf32>, vector<8x8xf32>, vector<8x8xf32> -> vector<8x8xf32>
    "tpu.trace_stop"() : () -> ()
    %cst_17 = arith.constant 0.353553385 : f32
    %46 = vector.broadcast %cst_17 : f32 to vector<8x8xf32>
    %47 = arith.mulf %45, %46 : vector<8x8xf32>
    %cst_18 = arith.constant dense<0xFF800000> : vector<8xf32>
    %48 = vector.multi_reduction <maximumf>, %47, %cst_18 [1] : vector<8x8xf32> to vector<8xf32>
    %49 = vector.shape_cast %48 : vector<8xf32> to vector<8x1xf32>
    %50 = vector.broadcast %49 : vector<8x1xf32> to vector<8x8xf32>
    %51 = arith.subf %47, %50 : vector<8x8xf32>
    %52 = math.exp %51 : vector<8x8xf32>
    %cst_19 = arith.constant dense<0.000000e+00> : vector<8xf32>
    %53 = vector.multi_reduction <add>, %52, %cst_19 [1] : vector<8x8xf32> to vector<8xf32>
    %54 = vector.shape_cast %53 : vector<8xf32> to vector<8x1xf32>
    %55 = vector.broadcast %54 : vector<8x1xf32> to vector<8x8xf32>
    %56 = arith.divf %52, %55 : vector<8x8xf32>
    %57 = vector.extract_strided_slice %26 {offsets = [0, 8], sizes = [8, 8], strides = [1, 1]} : vector<8x32xf32> to vector<8x8xf32>
    %cst_20 = arith.constant dense<0.000000e+00> : vector<8x8xf32>
    %58 = tpu.matmul %56, %57, %cst_20 {dimension_numbers = #tpu.dot_dimension_numbers<[1], [0], [0], [1], [0, 0, 1, 1], [], []>} : vector<8x8xf32>, vector<8x8xf32>, vector<8x8xf32> -> vector<8x8xf32>
    %59 = vector.extract_strided_slice %24 {offsets = [0, 16], sizes = [8, 8], strides = [1, 1]} : vector<8x32xf32> to vector<8x8xf32>
    %60 = vector.extract_strided_slice %25 {offsets = [0, 16], sizes = [8, 8], strides = [1, 1]} : vector<8x32xf32> to vector<8x8xf32>
    "tpu.trace_start"() <{level = 10 : i32, message = "qd,kd->qk"}> : () -> ()
    %cst_21 = arith.constant dense<0.000000e+00> : vector<8x8xf32>
    %61 = tpu.matmul %59, %60, %cst_21 {dimension_numbers = #tpu.dot_dimension_numbers<[1], [1], [0], [0], [0, 0, 1, 0], [], []>} : vector<8x8xf32>, vector<8x8xf32>, vector<8x8xf32> -> vector<8x8xf32>
    "tpu.trace_stop"() : () -> ()
    %cst_22 = arith.constant 0.353553385 : f32
    %62 = vector.broadcast %cst_22 : f32 to vector<8x8xf32>
    %63 = arith.mulf %61, %62 : vector<8x8xf32>
    %cst_23 = arith.constant dense<0xFF800000> : vector<8xf32>
    %64 = vector.multi_reduction <maximumf>, %63, %cst_23 [1] : vector<8x8xf32> to vector<8xf32>
    %65 = vector.shape_cast %64 : vector<8xf32> to vector<8x1xf32>
    %66 = vector.broadcast %65 : vector<8x1xf32> to vector<8x8xf32>
    %67 = arith.subf %63, %66 : vector<8x8xf32>
    %68 = math.exp %67 : vector<8x8xf32>
    %cst_24 = arith.constant dense<0.000000e+00> : vector<8xf32>
    %69 = vector.multi_reduction <add>, %68, %cst_24 [1] : vector<8x8xf32> to vector<8xf32>
    %70 = vector.shape_cast %69 : vector<8xf32> to vector<8x1xf32>
    %71 = vector.broadcast %70 : vector<8x1xf32> to vector<8x8xf32>
    %72 = arith.divf %68, %71 : vector<8x8xf32>
    %73 = vector.extract_strided_slice %26 {offsets = [0, 16], sizes = [8, 8], strides = [1, 1]} : vector<8x32xf32> to vector<8x8xf32>
    %cst_25 = arith.constant dense<0.000000e+00> : vector<8x8xf32>
    %74 = tpu.matmul %72, %73, %cst_25 {dimension_numbers = #tpu.dot_dimension_numbers<[1], [0], [0], [1], [0, 0, 1, 1], [], []>} : vector<8x8xf32>, vector<8x8xf32>, vector<8x8xf32> -> vector<8x8xf32>
    %75 = vector.extract_strided_slice %24 {offsets = [0, 24], sizes = [8, 8], strides = [1, 1]} : vector<8x32xf32> to vector<8x8xf32>
    %76 = vector.extract_strided_slice %25 {offsets = [0, 24], sizes = [8, 8], strides = [1, 1]} : vector<8x32xf32> to vector<8x8xf32>
    "tpu.trace_start"() <{level = 10 : i32, message = "qd,kd->qk"}> : () -> ()
    %cst_26 = arith.constant dense<0.000000e+00> : vector<8x8xf32>
    %77 = tpu.matmul %75, %76, %cst_26 {dimension_numbers = #tpu.dot_dimension_numbers<[1], [1], [0], [0], [0, 0, 1, 0], [], []>} : vector<8x8xf32>, vector<8x8xf32>, vector<8x8xf32> -> vector<8x8xf32>
    "tpu.trace_stop"() : () -> ()
    %cst_27 = arith.constant 0.353553385 : f32
    %78 = vector.broadcast %cst_27 : f32 to vector<8x8xf32>
    %79 = arith.mulf %77, %78 : vector<8x8xf32>
    %cst_28 = arith.constant dense<0xFF800000> : vector<8xf32>
    %80 = vector.multi_reduction <maximumf>, %79, %cst_28 [1] : vector<8x8xf32> to vector<8xf32>
    %81 = vector.shape_cast %80 : vector<8xf32> to vector<8x1xf32>
    %82 = vector.broadcast %81 : vector<8x1xf32> to vector<8x8xf32>
    %83 = arith.subf %79, %82 : vector<8x8xf32>
    %84 = math.exp %83 : vector<8x8xf32>
    %cst_29 = arith.constant dense<0.000000e+00> : vector<8xf32>
    %85 = vector.multi_reduction <add>, %84, %cst_29 [1] : vector<8x8xf32> to vector<8xf32>
    %86 = vector.shape_cast %85 : vector<8xf32> to vector<8x1xf32>
    %87 = vector.broadcast %86 : vector<8x1xf32> to vector<8x8xf32>
    %88 = arith.divf %84, %87 : vector<8x8xf32>
    %89 = vector.extract_strided_slice %26 {offsets = [0, 24], sizes = [8, 8], strides = [1, 1]} : vector<8x32xf32> to vector<8x8xf32>
    %cst_30 = arith.constant dense<0.000000e+00> : vector<8x8xf32>
    %90 = tpu.matmul %88, %89, %cst_30 {dimension_numbers = #tpu.dot_dimension_numbers<[1], [0], [0], [1], [0, 0, 1, 1], [], []>} : vector<8x8xf32>, vector<8x8xf32>, vector<8x8xf32> -> vector<8x8xf32>
    %91 = tpu.concatenate %42, %58, %74, %90 in 1 : vector<8x8xf32>, vector<8x8xf32>, vector<8x8xf32>, vector<8x8xf32> -> vector<8x32xf32>
    %c88 = arith.constant 88 : index
    %c0_31 = arith.constant 0 : index
    %92 = vector.load %arg5[%c88, %c0_31] : memref<888x128xf32, #tpu.memory_space<vmem>>, vector<32x128xf32>
    %93 = vector.extract_strided_slice %92 {offsets = [0, 0], sizes = [32, 32], strides = [1, 1]} : vector<32x128xf32> to vector<32x32xf32>
    %cst_32 = arith.constant dense<0.000000e+00> : vector<8x32xf32>
    %94 = tpu.matmul %91, %93, %cst_32 {dimension_numbers = #tpu.dot_dimension_numbers<[1], [0], [0], [1], [0, 0, 1, 1], [], []>} : vector<8x32xf32>, vector<32x32xf32>, vector<8x32xf32> -> vector<8x32xf32>
    %c120 = arith.constant 120 : index
    %c0_33 = arith.constant 0 : index
    %95 = vector.load %arg5[%c120, %c0_33] : memref<888x128xf32, #tpu.memory_space<vmem>>, vector<8x128xf32>
    %96 = vector.extract_strided_slice %95 {offsets = [0, 0], sizes = [1, 32], strides = [1, 1]} : vector<8x128xf32> to vector<1x32xf32>
    %97 = vector.broadcast %96 : vector<1x32xf32> to vector<8x32xf32>
    %98 = arith.addf %94, %97 : vector<8x32xf32>
    %99 = arith.addf %16, %98 : vector<8x32xf32>
    %c240 = arith.constant 240 : index
    %c0_34 = arith.constant 0 : index
    %100 = vector.load %arg5[%c240, %c0_34] : memref<888x128xf32, #tpu.memory_space<vmem>>, vector<8x128xf32>
    %101 = vector.extract_strided_slice %100 {offsets = [0, 0], sizes = [1, 32], strides = [1, 1]} : vector<8x128xf32> to vector<1x32xf32>
    %c248 = arith.constant 248 : index
    %c0_35 = arith.constant 0 : index
    %102 = vector.load %arg5[%c248, %c0_35] : memref<888x128xf32, #tpu.memory_space<vmem>>, vector<8x128xf32>
    %103 = vector.extract_strided_slice %102 {offsets = [0, 0], sizes = [1, 32], strides = [1, 1]} : vector<8x128xf32> to vector<1x32xf32>
    %cst_36 = arith.constant dense<0.000000e+00> : vector<8xf32>
    %104 = vector.multi_reduction <add>, %99, %cst_36 [1] : vector<8x32xf32> to vector<8xf32>
    %105 = vector.shape_cast %104 : vector<8xf32> to vector<8x1xf32>
    %cst_37 = arith.constant 3.200000e+01 : f32
    %106 = vector.broadcast %cst_37 : f32 to vector<8x1xf32>
    %107 = arith.divf %105, %106 : vector<8x1xf32>
    %108 = vector.broadcast %107 : vector<8x1xf32> to vector<8x32xf32>
    %109 = arith.subf %99, %108 : vector<8x32xf32>
    %110 = arith.mulf %109, %109 : vector<8x32xf32>
    %cst_38 = arith.constant dense<0.000000e+00> : vector<8xf32>
    %111 = vector.multi_reduction <add>, %110, %cst_38 [1] : vector<8x32xf32> to vector<8xf32>
    %112 = vector.shape_cast %111 : vector<8xf32> to vector<8x1xf32>
    %cst_39 = arith.constant 3.200000e+01 : f32
    %113 = vector.broadcast %cst_39 : f32 to vector<8x1xf32>
    %114 = arith.divf %112, %113 : vector<8x1xf32>
    %cst_40 = arith.constant 9.99999974E-6 : f32
    %115 = vector.broadcast %cst_40 : f32 to vector<8x1xf32>
    %116 = arith.addf %114, %115 : vector<8x1xf32>
    %117 = math.rsqrt %116 : vector<8x1xf32>
    %118 = vector.broadcast %117 : vector<8x1xf32> to vector<8x32xf32>
    %119 = arith.mulf %109, %118 : vector<8x32xf32>
    %120 = vector.broadcast %101 : vector<1x32xf32> to vector<8x32xf32>
    %121 = arith.mulf %119, %120 : vector<8x32xf32>
    %122 = vector.broadcast %103 : vector<1x32xf32> to vector<8x32xf32>
    %123 = arith.addf %121, %122 : vector<8x32xf32>
    %c128 = arith.constant 128 : index
    %c0_41 = arith.constant 0 : index
    %124 = vector.load %arg5[%c128, %c0_41] : memref<888x128xf32, #tpu.memory_space<vmem>>, vector<32x128xf32>
    %125 = vector.extract_strided_slice %124 {offsets = [0, 0], sizes = [32, 64], strides = [1, 1]} : vector<32x128xf32> to vector<32x64xf32>
    %cst_42 = arith.constant dense<0.000000e+00> : vector<8x64xf32>
    %126 = tpu.matmul %123, %125, %cst_42 {dimension_numbers = #tpu.dot_dimension_numbers<[1], [0], [0], [1], [0, 0, 1, 1], [], []>} : vector<8x32xf32>, vector<32x64xf32>, vector<8x64xf32> -> vector<8x64xf32>
    %c160 = arith.constant 160 : index
    %c0_43 = arith.constant 0 : index
    %127 = vector.load %arg5[%c160, %c0_43] : memref<888x128xf32, #tpu.memory_space<vmem>>, vector<8x128xf32>
    %128 = vector.extract_strided_slice %127 {offsets = [0, 0], sizes = [1, 64], strides = [1, 1]} : vector<8x128xf32> to vector<1x64xf32>
    %129 = vector.broadcast %128 : vector<1x64xf32> to vector<8x64xf32>
    %130 = arith.addf %126, %129 : vector<8x64xf32>
    %cst_44 = arith.constant 0.000000e+00 : f32
    %131 = vector.broadcast %cst_44 : f32 to vector<8x64xf32>
    %132 = arith.maximumf %130, %131 : vector<8x64xf32>
    %c168 = arith.constant 168 : index
    %c0_45 = arith.constant 0 : index
    %133 = vector.load %arg5[%c168, %c0_45] : memref<888x128xf32, #tpu.memory_space<vmem>>, vector<64x128xf32>
    %134 = vector.extract_strided_slice %133 {offsets = [0, 0], sizes = [64, 32], strides = [1, 1]} : vector<64x128xf32> to vector<64x32xf32>
    %cst_46 = arith.constant dense<0.000000e+00> : vector<8x32xf32>
    %135 = tpu.matmul %132, %134, %cst_46 {dimension_numbers = #tpu.dot_dimension_numbers<[1], [0], [0], [1], [0, 0, 1, 1], [], []>} : vector<8x64xf32>, vector<64x32xf32>, vector<8x32xf32> -> vector<8x32xf32>
    %c232 = arith.constant 232 : index
    %c0_47 = arith.constant 0 : index
    %136 = vector.load %arg5[%c232, %c0_47] : memref<888x128xf32, #tpu.memory_space<vmem>>, vector<8x128xf32>
    %137 = vector.extract_strided_slice %136 {offsets = [0, 0], sizes = [1, 32], strides = [1, 1]} : vector<8x128xf32> to vector<1x32xf32>
    %138 = vector.broadcast %137 : vector<1x32xf32> to vector<8x32xf32>
    %139 = arith.addf %135, %138 : vector<8x32xf32>
    %140 = arith.addf %123, %139 : vector<8x32xf32>
    %c256 = arith.constant 256 : index
    %c0_48 = arith.constant 0 : index
    %141 = vector.load %arg5[%c256, %c0_48] : memref<888x128xf32, #tpu.memory_space<vmem>>, vector<8x128xf32>
    %142 = vector.extract_strided_slice %141 {offsets = [0, 0], sizes = [1, 32], strides = [1, 1]} : vector<8x128xf32> to vector<1x32xf32>
    %c264 = arith.constant 264 : index
    %c0_49 = arith.constant 0 : index
    %143 = vector.load %arg5[%c264, %c0_49] : memref<888x128xf32, #tpu.memory_space<vmem>>, vector<8x128xf32>
    %144 = vector.extract_strided_slice %143 {offsets = [0, 0], sizes = [1, 32], strides = [1, 1]} : vector<8x128xf32> to vector<1x32xf32>
    %cst_50 = arith.constant dense<0.000000e+00> : vector<8xf32>
    %145 = vector.multi_reduction <add>, %140, %cst_50 [1] : vector<8x32xf32> to vector<8xf32>
    %146 = vector.shape_cast %145 : vector<8xf32> to vector<8x1xf32>
    %cst_51 = arith.constant 3.200000e+01 : f32
    %147 = vector.broadcast %cst_51 : f32 to vector<8x1xf32>
    %148 = arith.divf %146, %147 : vector<8x1xf32>
    %149 = vector.broadcast %148 : vector<8x1xf32> to vector<8x32xf32>
    %150 = arith.subf %140, %149 : vector<8x32xf32>
    %151 = arith.mulf %150, %150 : vector<8x32xf32>
    %cst_52 = arith.constant dense<0.000000e+00> : vector<8xf32>
    %152 = vector.multi_reduction <add>, %151, %cst_52 [1] : vector<8x32xf32> to vector<8xf32>
    %153 = vector.shape_cast %152 : vector<8xf32> to vector<8x1xf32>
    %cst_53 = arith.constant 3.200000e+01 : f32
    %154 = vector.broadcast %cst_53 : f32 to vector<8x1xf32>
    %155 = arith.divf %153, %154 : vector<8x1xf32>
    %cst_54 = arith.constant 9.99999974E-6 : f32
    %156 = vector.broadcast %cst_54 : f32 to vector<8x1xf32>
    %157 = arith.addf %155, %156 : vector<8x1xf32>
    %158 = math.rsqrt %157 : vector<8x1xf32>
    %159 = vector.broadcast %158 : vector<8x1xf32> to vector<8x32xf32>
    %160 = arith.mulf %150, %159 : vector<8x32xf32>
    %161 = vector.broadcast %142 : vector<1x32xf32> to vector<8x32xf32>
    %162 = arith.mulf %160, %161 : vector<8x32xf32>
    %163 = vector.broadcast %144 : vector<1x32xf32> to vector<8x32xf32>
    %164 = arith.addf %162, %163 : vector<8x32xf32>
    %c272 = arith.constant 272 : index
    %c0_55 = arith.constant 0 : index
    %165 = vector.load %arg5[%c272, %c0_55] : memref<888x128xf32, #tpu.memory_space<vmem>>, vector<32x128xf32>
    %166 = vector.extract_strided_slice %165 {offsets = [0, 0], sizes = [32, 96], strides = [1, 1]} : vector<32x128xf32> to vector<32x96xf32>
    %c304 = arith.constant 304 : index
    %c0_56 = arith.constant 0 : index
    %167 = vector.load %arg5[%c304, %c0_56] : memref<888x128xf32, #tpu.memory_space<vmem>>, vector<8x128xf32>
    %168 = vector.extract_strided_slice %167 {offsets = [0, 0], sizes = [1, 96], strides = [1, 1]} : vector<8x128xf32> to vector<1x96xf32>
    %cst_57 = arith.constant dense<0.000000e+00> : vector<8x96xf32>
    %169 = tpu.matmul %164, %166, %cst_57 {dimension_numbers = #tpu.dot_dimension_numbers<[1], [0], [0], [1], [0, 0, 1, 1], [], []>} : vector<8x32xf32>, vector<32x96xf32>, vector<8x96xf32> -> vector<8x96xf32>
    %170 = vector.broadcast %168 : vector<1x96xf32> to vector<8x96xf32>
    %171 = arith.addf %169, %170 : vector<8x96xf32>
    %172 = vector.extract_strided_slice %171 {offsets = [0, 0], sizes = [8, 32], strides = [1, 1]} : vector<8x96xf32> to vector<8x32xf32>
    %173 = vector.extract_strided_slice %171 {offsets = [0, 32], sizes = [8, 32], strides = [1, 1]} : vector<8x96xf32> to vector<8x32xf32>
    %174 = vector.extract_strided_slice %171 {offsets = [0, 64], sizes = [8, 32], strides = [1, 1]} : vector<8x96xf32> to vector<8x32xf32>
    %175 = vector.extract_strided_slice %172 {offsets = [0, 0], sizes = [8, 8], strides = [1, 1]} : vector<8x32xf32> to vector<8x8xf32>
    %176 = vector.extract_strided_slice %173 {offsets = [0, 0], sizes = [8, 8], strides = [1, 1]} : vector<8x32xf32> to vector<8x8xf32>
    "tpu.trace_start"() <{level = 10 : i32, message = "qd,kd->qk"}> : () -> ()
    %cst_58 = arith.constant dense<0.000000e+00> : vector<8x8xf32>
    %177 = tpu.matmul %175, %176, %cst_58 {dimension_numbers = #tpu.dot_dimension_numbers<[1], [1], [0], [0], [0, 0, 1, 0], [], []>} : vector<8x8xf32>, vector<8x8xf32>, vector<8x8xf32> -> vector<8x8xf32>
    "tpu.trace_stop"() : () -> ()
    %cst_59 = arith.constant 0.353553385 : f32
    %178 = vector.broadcast %cst_59 : f32 to vector<8x8xf32>
    %179 = arith.mulf %177, %178 : vector<8x8xf32>
    %cst_60 = arith.constant dense<0xFF800000> : vector<8xf32>
    %180 = vector.multi_reduction <maximumf>, %179, %cst_60 [1] : vector<8x8xf32> to vector<8xf32>
    %181 = vector.shape_cast %180 : vector<8xf32> to vector<8x1xf32>
    %182 = vector.broadcast %181 : vector<8x1xf32> to vector<8x8xf32>
    %183 = arith.subf %179, %182 : vector<8x8xf32>
    %184 = math.exp %183 : vector<8x8xf32>
    %cst_61 = arith.constant dense<0.000000e+00> : vector<8xf32>
    %185 = vector.multi_reduction <add>, %184, %cst_61 [1] : vector<8x8xf32> to vector<8xf32>
    %186 = vector.shape_cast %185 : vector<8xf32> to vector<8x1xf32>
    %187 = vector.broadcast %186 : vector<8x1xf32> to vector<8x8xf32>
    %188 = arith.divf %184, %187 : vector<8x8xf32>
    %189 = vector.extract_strided_slice %174 {offsets = [0, 0], sizes = [8, 8], strides = [1, 1]} : vector<8x32xf32> to vector<8x8xf32>
    %cst_62 = arith.constant dense<0.000000e+00> : vector<8x8xf32>
    %190 = tpu.matmul %188, %189, %cst_62 {dimension_numbers = #tpu.dot_dimension_numbers<[1], [0], [0], [1], [0, 0, 1, 1], [], []>} : vector<8x8xf32>, vector<8x8xf32>, vector<8x8xf32> -> vector<8x8xf32>
    %191 = vector.extract_strided_slice %172 {offsets = [0, 8], sizes = [8, 8], strides = [1, 1]} : vector<8x32xf32> to vector<8x8xf32>
    %192 = vector.extract_strided_slice %173 {offsets = [0, 8], sizes = [8, 8], strides = [1, 1]} : vector<8x32xf32> to vector<8x8xf32>
    "tpu.trace_start"() <{level = 10 : i32, message = "qd,kd->qk"}> : () -> ()
    %cst_63 = arith.constant dense<0.000000e+00> : vector<8x8xf32>
    %193 = tpu.matmul %191, %192, %cst_63 {dimension_numbers = #tpu.dot_dimension_numbers<[1], [1], [0], [0], [0, 0, 1, 0], [], []>} : vector<8x8xf32>, vector<8x8xf32>, vector<8x8xf32> -> vector<8x8xf32>
    "tpu.trace_stop"() : () -> ()
    %cst_64 = arith.constant 0.353553385 : f32
    %194 = vector.broadcast %cst_64 : f32 to vector<8x8xf32>
    %195 = arith.mulf %193, %194 : vector<8x8xf32>
    %cst_65 = arith.constant dense<0xFF800000> : vector<8xf32>
    %196 = vector.multi_reduction <maximumf>, %195, %cst_65 [1] : vector<8x8xf32> to vector<8xf32>
    %197 = vector.shape_cast %196 : vector<8xf32> to vector<8x1xf32>
    %198 = vector.broadcast %197 : vector<8x1xf32> to vector<8x8xf32>
    %199 = arith.subf %195, %198 : vector<8x8xf32>
    %200 = math.exp %199 : vector<8x8xf32>
    %cst_66 = arith.constant dense<0.000000e+00> : vector<8xf32>
    %201 = vector.multi_reduction <add>, %200, %cst_66 [1] : vector<8x8xf32> to vector<8xf32>
    %202 = vector.shape_cast %201 : vector<8xf32> to vector<8x1xf32>
    %203 = vector.broadcast %202 : vector<8x1xf32> to vector<8x8xf32>
    %204 = arith.divf %200, %203 : vector<8x8xf32>
    %205 = vector.extract_strided_slice %174 {offsets = [0, 8], sizes = [8, 8], strides = [1, 1]} : vector<8x32xf32> to vector<8x8xf32>
    %cst_67 = arith.constant dense<0.000000e+00> : vector<8x8xf32>
    %206 = tpu.matmul %204, %205, %cst_67 {dimension_numbers = #tpu.dot_dimension_numbers<[1], [0], [0], [1], [0, 0, 1, 1], [], []>} : vector<8x8xf32>, vector<8x8xf32>, vector<8x8xf32> -> vector<8x8xf32>
    %207 = vector.extract_strided_slice %172 {offsets = [0, 16], sizes = [8, 8], strides = [1, 1]} : vector<8x32xf32> to vector<8x8xf32>
    %208 = vector.extract_strided_slice %173 {offsets = [0, 16], sizes = [8, 8], strides = [1, 1]} : vector<8x32xf32> to vector<8x8xf32>
    "tpu.trace_start"() <{level = 10 : i32, message = "qd,kd->qk"}> : () -> ()
    %cst_68 = arith.constant dense<0.000000e+00> : vector<8x8xf32>
    %209 = tpu.matmul %207, %208, %cst_68 {dimension_numbers = #tpu.dot_dimension_numbers<[1], [1], [0], [0], [0, 0, 1, 0], [], []>} : vector<8x8xf32>, vector<8x8xf32>, vector<8x8xf32> -> vector<8x8xf32>
    "tpu.trace_stop"() : () -> ()
    %cst_69 = arith.constant 0.353553385 : f32
    %210 = vector.broadcast %cst_69 : f32 to vector<8x8xf32>
    %211 = arith.mulf %209, %210 : vector<8x8xf32>
    %cst_70 = arith.constant dense<0xFF800000> : vector<8xf32>
    %212 = vector.multi_reduction <maximumf>, %211, %cst_70 [1] : vector<8x8xf32> to vector<8xf32>
    %213 = vector.shape_cast %212 : vector<8xf32> to vector<8x1xf32>
    %214 = vector.broadcast %213 : vector<8x1xf32> to vector<8x8xf32>
    %215 = arith.subf %211, %214 : vector<8x8xf32>
    %216 = math.exp %215 : vector<8x8xf32>
    %cst_71 = arith.constant dense<0.000000e+00> : vector<8xf32>
    %217 = vector.multi_reduction <add>, %216, %cst_71 [1] : vector<8x8xf32> to vector<8xf32>
    %218 = vector.shape_cast %217 : vector<8xf32> to vector<8x1xf32>
    %219 = vector.broadcast %218 : vector<8x1xf32> to vector<8x8xf32>
    %220 = arith.divf %216, %219 : vector<8x8xf32>
    %221 = vector.extract_strided_slice %174 {offsets = [0, 16], sizes = [8, 8], strides = [1, 1]} : vector<8x32xf32> to vector<8x8xf32>
    %cst_72 = arith.constant dense<0.000000e+00> : vector<8x8xf32>
    %222 = tpu.matmul %220, %221, %cst_72 {dimension_numbers = #tpu.dot_dimension_numbers<[1], [0], [0], [1], [0, 0, 1, 1], [], []>} : vector<8x8xf32>, vector<8x8xf32>, vector<8x8xf32> -> vector<8x8xf32>
    %223 = vector.extract_strided_slice %172 {offsets = [0, 24], sizes = [8, 8], strides = [1, 1]} : vector<8x32xf32> to vector<8x8xf32>
    %224 = vector.extract_strided_slice %173 {offsets = [0, 24], sizes = [8, 8], strides = [1, 1]} : vector<8x32xf32> to vector<8x8xf32>
    "tpu.trace_start"() <{level = 10 : i32, message = "qd,kd->qk"}> : () -> ()
    %cst_73 = arith.constant dense<0.000000e+00> : vector<8x8xf32>
    %225 = tpu.matmul %223, %224, %cst_73 {dimension_numbers = #tpu.dot_dimension_numbers<[1], [1], [0], [0], [0, 0, 1, 0], [], []>} : vector<8x8xf32>, vector<8x8xf32>, vector<8x8xf32> -> vector<8x8xf32>
    "tpu.trace_stop"() : () -> ()
    %cst_74 = arith.constant 0.353553385 : f32
    %226 = vector.broadcast %cst_74 : f32 to vector<8x8xf32>
    %227 = arith.mulf %225, %226 : vector<8x8xf32>
    %cst_75 = arith.constant dense<0xFF800000> : vector<8xf32>
    %228 = vector.multi_reduction <maximumf>, %227, %cst_75 [1] : vector<8x8xf32> to vector<8xf32>
    %229 = vector.shape_cast %228 : vector<8xf32> to vector<8x1xf32>
    %230 = vector.broadcast %229 : vector<8x1xf32> to vector<8x8xf32>
    %231 = arith.subf %227, %230 : vector<8x8xf32>
    %232 = math.exp %231 : vector<8x8xf32>
    %cst_76 = arith.constant dense<0.000000e+00> : vector<8xf32>
    %233 = vector.multi_reduction <add>, %232, %cst_76 [1] : vector<8x8xf32> to vector<8xf32>
    %234 = vector.shape_cast %233 : vector<8xf32> to vector<8x1xf32>
    %235 = vector.broadcast %234 : vector<8x1xf32> to vector<8x8xf32>
    %236 = arith.divf %232, %235 : vector<8x8xf32>
    %237 = vector.extract_strided_slice %174 {offsets = [0, 24], sizes = [8, 8], strides = [1, 1]} : vector<8x32xf32> to vector<8x8xf32>
    %cst_77 = arith.constant dense<0.000000e+00> : vector<8x8xf32>
    %238 = tpu.matmul %236, %237, %cst_77 {dimension_numbers = #tpu.dot_dimension_numbers<[1], [0], [0], [1], [0, 0, 1, 1], [], []>} : vector<8x8xf32>, vector<8x8xf32>, vector<8x8xf32> -> vector<8x8xf32>
    %239 = tpu.concatenate %190, %206, %222, %238 in 1 : vector<8x8xf32>, vector<8x8xf32>, vector<8x8xf32>, vector<8x8xf32> -> vector<8x32xf32>
    %c312 = arith.constant 312 : index
    %c0_78 = arith.constant 0 : index
    %240 = vector.load %arg5[%c312, %c0_78] : memref<888x128xf32, #tpu.memory_space<vmem>>, vector<32x128xf32>
    %241 = vector.extract_strided_slice %240 {offsets = [0, 0], sizes = [32, 32], strides = [1, 1]} : vector<32x128xf32> to vector<32x32xf32>
    %cst_79 = arith.constant dense<0.000000e+00> : vector<8x32xf32>
    %242 = tpu.matmul %239, %241, %cst_79 {dimension_numbers = #tpu.dot_dimension_numbers<[1], [0], [0], [1], [0, 0, 1, 1], [], []>} : vector<8x32xf32>, vector<32x32xf32>, vector<8x32xf32> -> vector<8x32xf32>
    %c344 = arith.constant 344 : index
    %c0_80 = arith.constant 0 : index
    %243 = vector.load %arg5[%c344, %c0_80] : memref<888x128xf32, #tpu.memory_space<vmem>>, vector<8x128xf32>
    %244 = vector.extract_strided_slice %243 {offsets = [0, 0], sizes = [1, 32], strides = [1, 1]} : vector<8x128xf32> to vector<1x32xf32>
    %245 = vector.broadcast %244 : vector<1x32xf32> to vector<8x32xf32>
    %246 = arith.addf %242, %245 : vector<8x32xf32>
    %247 = arith.addf %164, %246 : vector<8x32xf32>
    %c464 = arith.constant 464 : index
    %c0_81 = arith.constant 0 : index
    %248 = vector.load %arg5[%c464, %c0_81] : memref<888x128xf32, #tpu.memory_space<vmem>>, vector<8x128xf32>
    %249 = vector.extract_strided_slice %248 {offsets = [0, 0], sizes = [1, 32], strides = [1, 1]} : vector<8x128xf32> to vector<1x32xf32>
    %c472 = arith.constant 472 : index
    %c0_82 = arith.constant 0 : index
    %250 = vector.load %arg5[%c472, %c0_82] : memref<888x128xf32, #tpu.memory_space<vmem>>, vector<8x128xf32>
    %251 = vector.extract_strided_slice %250 {offsets = [0, 0], sizes = [1, 32], strides = [1, 1]} : vector<8x128xf32> to vector<1x32xf32>
    %cst_83 = arith.constant dense<0.000000e+00> : vector<8xf32>
    %252 = vector.multi_reduction <add>, %247, %cst_83 [1] : vector<8x32xf32> to vector<8xf32>
    %253 = vector.shape_cast %252 : vector<8xf32> to vector<8x1xf32>
    %cst_84 = arith.constant 3.200000e+01 : f32
    %254 = vector.broadcast %cst_84 : f32 to vector<8x1xf32>
    %255 = arith.divf %253, %254 : vector<8x1xf32>
    %256 = vector.broadcast %255 : vector<8x1xf32> to vector<8x32xf32>
    %257 = arith.subf %247, %256 : vector<8x32xf32>
    %258 = arith.mulf %257, %257 : vector<8x32xf32>
    %cst_85 = arith.constant dense<0.000000e+00> : vector<8xf32>
    %259 = vector.multi_reduction <add>, %258, %cst_85 [1] : vector<8x32xf32> to vector<8xf32>
    %260 = vector.shape_cast %259 : vector<8xf32> to vector<8x1xf32>
    %cst_86 = arith.constant 3.200000e+01 : f32
    %261 = vector.broadcast %cst_86 : f32 to vector<8x1xf32>
    %262 = arith.divf %260, %261 : vector<8x1xf32>
    %cst_87 = arith.constant 9.99999974E-6 : f32
    %263 = vector.broadcast %cst_87 : f32 to vector<8x1xf32>
    %264 = arith.addf %262, %263 : vector<8x1xf32>
    %265 = math.rsqrt %264 : vector<8x1xf32>
    %266 = vector.broadcast %265 : vector<8x1xf32> to vector<8x32xf32>
    %267 = arith.mulf %257, %266 : vector<8x32xf32>
    %268 = vector.broadcast %249 : vector<1x32xf32> to vector<8x32xf32>
    %269 = arith.mulf %267, %268 : vector<8x32xf32>
    %270 = vector.broadcast %251 : vector<1x32xf32> to vector<8x32xf32>
    %271 = arith.addf %269, %270 : vector<8x32xf32>
    %c352 = arith.constant 352 : index
    %c0_88 = arith.constant 0 : index
    %272 = vector.load %arg5[%c352, %c0_88] : memref<888x128xf32, #tpu.memory_space<vmem>>, vector<32x128xf32>
    %273 = vector.extract_strided_slice %272 {offsets = [0, 0], sizes = [32, 64], strides = [1, 1]} : vector<32x128xf32> to vector<32x64xf32>
    %cst_89 = arith.constant dense<0.000000e+00> : vector<8x64xf32>
    %274 = tpu.matmul %271, %273, %cst_89 {dimension_numbers = #tpu.dot_dimension_numbers<[1], [0], [0], [1], [0, 0, 1, 1], [], []>} : vector<8x32xf32>, vector<32x64xf32>, vector<8x64xf32> -> vector<8x64xf32>
    %c384 = arith.constant 384 : index
    %c0_90 = arith.constant 0 : index
    %275 = vector.load %arg5[%c384, %c0_90] : memref<888x128xf32, #tpu.memory_space<vmem>>, vector<8x128xf32>
    %276 = vector.extract_strided_slice %275 {offsets = [0, 0], sizes = [1, 64], strides = [1, 1]} : vector<8x128xf32> to vector<1x64xf32>
    %277 = vector.broadcast %276 : vector<1x64xf32> to vector<8x64xf32>
    %278 = arith.addf %274, %277 : vector<8x64xf32>
    %cst_91 = arith.constant 0.000000e+00 : f32
    %279 = vector.broadcast %cst_91 : f32 to vector<8x64xf32>
    %280 = arith.maximumf %278, %279 : vector<8x64xf32>
    %c392 = arith.constant 392 : index
    %c0_92 = arith.constant 0 : index
    %281 = vector.load %arg5[%c392, %c0_92] : memref<888x128xf32, #tpu.memory_space<vmem>>, vector<64x128xf32>
    %282 = vector.extract_strided_slice %281 {offsets = [0, 0], sizes = [64, 32], strides = [1, 1]} : vector<64x128xf32> to vector<64x32xf32>
    %cst_93 = arith.constant dense<0.000000e+00> : vector<8x32xf32>
    %283 = tpu.matmul %280, %282, %cst_93 {dimension_numbers = #tpu.dot_dimension_numbers<[1], [0], [0], [1], [0, 0, 1, 1], [], []>} : vector<8x64xf32>, vector<64x32xf32>, vector<8x32xf32> -> vector<8x32xf32>
    %c456 = arith.constant 456 : index
    %c0_94 = arith.constant 0 : index
    %284 = vector.load %arg5[%c456, %c0_94] : memref<888x128xf32, #tpu.memory_space<vmem>>, vector<8x128xf32>
    %285 = vector.extract_strided_slice %284 {offsets = [0, 0], sizes = [1, 32], strides = [1, 1]} : vector<8x128xf32> to vector<1x32xf32>
    %286 = vector.broadcast %285 : vector<1x32xf32> to vector<8x32xf32>
    %287 = arith.addf %283, %286 : vector<8x32xf32>
    %288 = arith.addf %271, %287 : vector<8x32xf32>
    %c480 = arith.constant 480 : index
    %c0_95 = arith.constant 0 : index
    %289 = vector.load %arg5[%c480, %c0_95] : memref<888x128xf32, #tpu.memory_space<vmem>>, vector<8x128xf32>
    %290 = vector.extract_strided_slice %289 {offsets = [0, 0], sizes = [1, 32], strides = [1, 1]} : vector<8x128xf32> to vector<1x32xf32>
    %c488 = arith.constant 488 : index
    %c0_96 = arith.constant 0 : index
    %291 = vector.load %arg5[%c488, %c0_96] : memref<888x128xf32, #tpu.memory_space<vmem>>, vector<8x128xf32>
    %292 = vector.extract_strided_slice %291 {offsets = [0, 0], sizes = [1, 32], strides = [1, 1]} : vector<8x128xf32> to vector<1x32xf32>
    %cst_97 = arith.constant dense<0.000000e+00> : vector<8xf32>
    %293 = vector.multi_reduction <add>, %288, %cst_97 [1] : vector<8x32xf32> to vector<8xf32>
    %294 = vector.shape_cast %293 : vector<8xf32> to vector<8x1xf32>
    %cst_98 = arith.constant 3.200000e+01 : f32
    %295 = vector.broadcast %cst_98 : f32 to vector<8x1xf32>
    %296 = arith.divf %294, %295 : vector<8x1xf32>
    %297 = vector.broadcast %296 : vector<8x1xf32> to vector<8x32xf32>
    %298 = arith.subf %288, %297 : vector<8x32xf32>
    %299 = arith.mulf %298, %298 : vector<8x32xf32>
    %cst_99 = arith.constant dense<0.000000e+00> : vector<8xf32>
    %300 = vector.multi_reduction <add>, %299, %cst_99 [1] : vector<8x32xf32> to vector<8xf32>
    %301 = vector.shape_cast %300 : vector<8xf32> to vector<8x1xf32>
    %cst_100 = arith.constant 3.200000e+01 : f32
    %302 = vector.broadcast %cst_100 : f32 to vector<8x1xf32>
    %303 = arith.divf %301, %302 : vector<8x1xf32>
    %cst_101 = arith.constant 9.99999974E-6 : f32
    %304 = vector.broadcast %cst_101 : f32 to vector<8x1xf32>
    %305 = arith.addf %303, %304 : vector<8x1xf32>
    %306 = math.rsqrt %305 : vector<8x1xf32>
    %307 = vector.broadcast %306 : vector<8x1xf32> to vector<8x32xf32>
    %308 = arith.mulf %298, %307 : vector<8x32xf32>
    %309 = vector.broadcast %290 : vector<1x32xf32> to vector<8x32xf32>
    %310 = arith.mulf %308, %309 : vector<8x32xf32>
    %311 = vector.broadcast %292 : vector<1x32xf32> to vector<8x32xf32>
    %312 = arith.addf %310, %311 : vector<8x32xf32>
    %c496 = arith.constant 496 : index
    %c0_102 = arith.constant 0 : index
    %313 = vector.load %arg5[%c496, %c0_102] : memref<888x128xf32, #tpu.memory_space<vmem>>, vector<8x128xf32>
    %314 = vector.extract_strided_slice %313 {offsets = [0, 0], sizes = [1, 32], strides = [1, 1]} : vector<8x128xf32> to vector<1x32xf32>
    %c504 = arith.constant 504 : index
    %c0_103 = arith.constant 0 : index
    %315 = vector.load %arg5[%c504, %c0_103] : memref<888x128xf32, #tpu.memory_space<vmem>>, vector<8x128xf32>
    %316 = vector.extract_strided_slice %315 {offsets = [0, 0], sizes = [1, 32], strides = [1, 1]} : vector<8x128xf32> to vector<1x32xf32>
    %cst_104 = arith.constant dense<0.000000e+00> : vector<8xf32>
    %317 = vector.multi_reduction <add>, %312, %cst_104 [1] : vector<8x32xf32> to vector<8xf32>
    %318 = vector.shape_cast %317 : vector<8xf32> to vector<8x1xf32>
    %cst_105 = arith.constant 3.200000e+01 : f32
    %319 = vector.broadcast %cst_105 : f32 to vector<8x1xf32>
    %320 = arith.divf %318, %319 : vector<8x1xf32>
    %321 = vector.broadcast %320 : vector<8x1xf32> to vector<8x32xf32>
    %322 = arith.subf %312, %321 : vector<8x32xf32>
    %323 = arith.mulf %322, %322 : vector<8x32xf32>
    %cst_106 = arith.constant dense<0.000000e+00> : vector<8xf32>
    %324 = vector.multi_reduction <add>, %323, %cst_106 [1] : vector<8x32xf32> to vector<8xf32>
    %325 = vector.shape_cast %324 : vector<8xf32> to vector<8x1xf32>
    %cst_107 = arith.constant 3.200000e+01 : f32
    %326 = vector.broadcast %cst_107 : f32 to vector<8x1xf32>
    %327 = arith.divf %325, %326 : vector<8x1xf32>
    %cst_108 = arith.constant 9.99999974E-6 : f32
    %328 = vector.broadcast %cst_108 : f32 to vector<8x1xf32>
    %329 = arith.addf %327, %328 : vector<8x1xf32>
    %330 = math.rsqrt %329 : vector<8x1xf32>
    %331 = vector.broadcast %330 : vector<8x1xf32> to vector<8x32xf32>
    %332 = arith.mulf %322, %331 : vector<8x32xf32>
    %333 = vector.broadcast %314 : vector<1x32xf32> to vector<8x32xf32>
    %334 = arith.mulf %332, %333 : vector<8x32xf32>
    %335 = vector.broadcast %316 : vector<1x32xf32> to vector<8x32xf32>
    %336 = arith.addf %334, %335 : vector<8x32xf32>
    %c0_109 = arith.constant 0 : index
    %c0_110 = arith.constant 0 : index
    %c0_111 = arith.constant 0 : index
    %337 = vector.load %arg3[%c0_109, %c0_110, %c0_111] : memref<1x8x4xf32, #tpu.memory_space<vmem>>, vector<1x8x4xf32>
    %338 = vector.shape_cast %337 : vector<1x8x4xf32> to vector<8x4xf32>
    %c0_112 = arith.constant 0 : index
    %c0_113 = arith.constant 0 : index
    %c0_114 = arith.constant 0 : index
    %339 = vector.load %arg4[%c0_112, %c0_113, %c0_114] : memref<1x8x4xf32, #tpu.memory_space<vmem>>, vector<1x8x4xf32>
    %340 = vector.shape_cast %339 : vector<1x8x4xf32> to vector<8x4xf32>
    %341 = vector.extract_strided_slice %338 {offsets = [7, 0], sizes = [1, 4], strides = [1, 1]} : vector<8x4xf32> to vector<1x4xf32>
    %342 = vector.extract_strided_slice %338 {offsets = [0, 0], sizes = [7, 4], strides = [1, 1]} : vector<8x4xf32> to vector<7x4xf32>
    %343 = tpu.concatenate %341, %342 in 0 : vector<1x4xf32>, vector<7x4xf32> -> vector<8x4xf32>
    %344 = vector.extract_strided_slice %338 {offsets = [1, 0], sizes = [7, 4], strides = [1, 1]} : vector<8x4xf32> to vector<7x4xf32>
    %345 = vector.extract_strided_slice %338 {offsets = [0, 0], sizes = [1, 4], strides = [1, 1]} : vector<8x4xf32> to vector<1x4xf32>
    %346 = tpu.concatenate %344, %345 in 0 : vector<7x4xf32>, vector<1x4xf32> -> vector<8x4xf32>
    %347 = tpu.concatenate %343, %338, %346, %340 in 1 : vector<8x4xf32>, vector<8x4xf32>, vector<8x4xf32>, vector<8x4xf32> -> vector<8x16xf32>
    %c24 = arith.constant 24 : index
    %c0_115 = arith.constant 0 : index
    %348 = vector.load %arg5[%c24, %c0_115] : memref<888x128xf32, #tpu.memory_space<vmem>>, vector<16x128xf32>
    %349 = vector.extract_strided_slice %348 {offsets = [0, 0], sizes = [16, 32], strides = [1, 1]} : vector<16x128xf32> to vector<16x32xf32>
    %cst_116 = arith.constant dense<0.000000e+00> : vector<8x32xf32>
    %350 = tpu.matmul %347, %349, %cst_116 {dimension_numbers = #tpu.dot_dimension_numbers<[1], [0], [0], [1], [0, 0, 1, 1], [], []>} : vector<8x16xf32>, vector<16x32xf32>, vector<8x32xf32> -> vector<8x32xf32>
    %c40 = arith.constant 40 : index
    %c0_117 = arith.constant 0 : index
    %351 = vector.load %arg5[%c40, %c0_117] : memref<888x128xf32, #tpu.memory_space<vmem>>, vector<8x128xf32>
    %352 = vector.extract_strided_slice %351 {offsets = [0, 0], sizes = [8, 32], strides = [1, 1]} : vector<8x128xf32> to vector<8x32xf32>
    %353 = arith.addf %350, %352 : vector<8x32xf32>
    %c512 = arith.constant 512 : index
    %c0_118 = arith.constant 0 : index
    %354 = vector.load %arg5[%c512, %c0_118] : memref<888x128xf32, #tpu.memory_space<vmem>>, vector<32x128xf32>
    %355 = vector.extract_strided_slice %354 {offsets = [0, 0], sizes = [32, 96], strides = [1, 1]} : vector<32x128xf32> to vector<32x96xf32>
    %c544 = arith.constant 544 : index
    %c0_119 = arith.constant 0 : index
    %356 = vector.load %arg5[%c544, %c0_119] : memref<888x128xf32, #tpu.memory_space<vmem>>, vector<8x128xf32>
    %357 = vector.extract_strided_slice %356 {offsets = [0, 0], sizes = [1, 96], strides = [1, 1]} : vector<8x128xf32> to vector<1x96xf32>
    %cst_120 = arith.constant dense<0.000000e+00> : vector<8x96xf32>
    %358 = tpu.matmul %353, %355, %cst_120 {dimension_numbers = #tpu.dot_dimension_numbers<[1], [0], [0], [1], [0, 0, 1, 1], [], []>} : vector<8x32xf32>, vector<32x96xf32>, vector<8x96xf32> -> vector<8x96xf32>
    %359 = vector.broadcast %357 : vector<1x96xf32> to vector<8x96xf32>
    %360 = arith.addf %358, %359 : vector<8x96xf32>
    %361 = vector.extract_strided_slice %360 {offsets = [0, 0], sizes = [8, 32], strides = [1, 1]} : vector<8x96xf32> to vector<8x32xf32>
    %362 = vector.extract_strided_slice %360 {offsets = [0, 32], sizes = [8, 32], strides = [1, 1]} : vector<8x96xf32> to vector<8x32xf32>
    %363 = vector.extract_strided_slice %360 {offsets = [0, 64], sizes = [8, 32], strides = [1, 1]} : vector<8x96xf32> to vector<8x32xf32>
    %364 = tpu.iota {dimensions = array<i32: 0>} : vector<8x8xi32>
    %365 = tpu.iota {dimensions = array<i32: 1>} : vector<8x8xi32>
    %366 = vector.extract_strided_slice %361 {offsets = [0, 0], sizes = [8, 8], strides = [1, 1]} : vector<8x32xf32> to vector<8x8xf32>
    %367 = vector.extract_strided_slice %362 {offsets = [0, 0], sizes = [8, 8], strides = [1, 1]} : vector<8x32xf32> to vector<8x8xf32>
    "tpu.trace_start"() <{level = 10 : i32, message = "qd,kd->qk"}> : () -> ()
    %cst_121 = arith.constant dense<0.000000e+00> : vector<8x8xf32>
    %368 = tpu.matmul %366, %367, %cst_121 {dimension_numbers = #tpu.dot_dimension_numbers<[1], [1], [0], [0], [0, 0, 1, 0], [], []>} : vector<8x8xf32>, vector<8x8xf32>, vector<8x8xf32> -> vector<8x8xf32>
    "tpu.trace_stop"() : () -> ()
    %cst_122 = arith.constant 0.353553385 : f32
    %369 = vector.broadcast %cst_122 : f32 to vector<8x8xf32>
    %370 = arith.mulf %368, %369 : vector<8x8xf32>
    %371 = arith.cmpi sle, %365, %364 : vector<8x8xi32>
    %cst_123 = arith.constant -3.400000e+38 : f32
    %372 = vector.broadcast %cst_123 : f32 to vector<8x8xf32>
    %373 = arith.select %371, %370, %372 : vector<8x8xi1>, vector<8x8xf32>
    %cst_124 = arith.constant dense<0xFF800000> : vector<8xf32>
    %374 = vector.multi_reduction <maximumf>, %373, %cst_124 [1] : vector<8x8xf32> to vector<8xf32>
    %375 = vector.shape_cast %374 : vector<8xf32> to vector<8x1xf32>
    %376 = vector.broadcast %375 : vector<8x1xf32> to vector<8x8xf32>
    %377 = arith.subf %373, %376 : vector<8x8xf32>
    %378 = math.exp %377 : vector<8x8xf32>
    %cst_125 = arith.constant dense<0.000000e+00> : vector<8xf32>
    %379 = vector.multi_reduction <add>, %378, %cst_125 [1] : vector<8x8xf32> to vector<8xf32>
    %380 = vector.shape_cast %379 : vector<8xf32> to vector<8x1xf32>
    %381 = vector.broadcast %380 : vector<8x1xf32> to vector<8x8xf32>
    %382 = arith.divf %378, %381 : vector<8x8xf32>
    %383 = vector.extract_strided_slice %363 {offsets = [0, 0], sizes = [8, 8], strides = [1, 1]} : vector<8x32xf32> to vector<8x8xf32>
    %cst_126 = arith.constant dense<0.000000e+00> : vector<8x8xf32>
    %384 = tpu.matmul %382, %383, %cst_126 {dimension_numbers = #tpu.dot_dimension_numbers<[1], [0], [0], [1], [0, 0, 1, 1], [], []>} : vector<8x8xf32>, vector<8x8xf32>, vector<8x8xf32> -> vector<8x8xf32>
    %385 = vector.extract_strided_slice %361 {offsets = [0, 8], sizes = [8, 8], strides = [1, 1]} : vector<8x32xf32> to vector<8x8xf32>
    %386 = vector.extract_strided_slice %362 {offsets = [0, 8], sizes = [8, 8], strides = [1, 1]} : vector<8x32xf32> to vector<8x8xf32>
    "tpu.trace_start"() <{level = 10 : i32, message = "qd,kd->qk"}> : () -> ()
    %cst_127 = arith.constant dense<0.000000e+00> : vector<8x8xf32>
    %387 = tpu.matmul %385, %386, %cst_127 {dimension_numbers = #tpu.dot_dimension_numbers<[1], [1], [0], [0], [0, 0, 1, 0], [], []>} : vector<8x8xf32>, vector<8x8xf32>, vector<8x8xf32> -> vector<8x8xf32>
    "tpu.trace_stop"() : () -> ()
    %cst_128 = arith.constant 0.353553385 : f32
    %388 = vector.broadcast %cst_128 : f32 to vector<8x8xf32>
    %389 = arith.mulf %387, %388 : vector<8x8xf32>
    %390 = arith.cmpi sle, %365, %364 : vector<8x8xi32>
    %cst_129 = arith.constant -3.400000e+38 : f32
    %391 = vector.broadcast %cst_129 : f32 to vector<8x8xf32>
    %392 = arith.select %390, %389, %391 : vector<8x8xi1>, vector<8x8xf32>
    %cst_130 = arith.constant dense<0xFF800000> : vector<8xf32>
    %393 = vector.multi_reduction <maximumf>, %392, %cst_130 [1] : vector<8x8xf32> to vector<8xf32>
    %394 = vector.shape_cast %393 : vector<8xf32> to vector<8x1xf32>
    %395 = vector.broadcast %394 : vector<8x1xf32> to vector<8x8xf32>
    %396 = arith.subf %392, %395 : vector<8x8xf32>
    %397 = math.exp %396 : vector<8x8xf32>
    %cst_131 = arith.constant dense<0.000000e+00> : vector<8xf32>
    %398 = vector.multi_reduction <add>, %397, %cst_131 [1] : vector<8x8xf32> to vector<8xf32>
    %399 = vector.shape_cast %398 : vector<8xf32> to vector<8x1xf32>
    %400 = vector.broadcast %399 : vector<8x1xf32> to vector<8x8xf32>
    %401 = arith.divf %397, %400 : vector<8x8xf32>
    %402 = vector.extract_strided_slice %363 {offsets = [0, 8], sizes = [8, 8], strides = [1, 1]} : vector<8x32xf32> to vector<8x8xf32>
    %cst_132 = arith.constant dense<0.000000e+00> : vector<8x8xf32>
    %403 = tpu.matmul %401, %402, %cst_132 {dimension_numbers = #tpu.dot_dimension_numbers<[1], [0], [0], [1], [0, 0, 1, 1], [], []>} : vector<8x8xf32>, vector<8x8xf32>, vector<8x8xf32> -> vector<8x8xf32>
    %404 = vector.extract_strided_slice %361 {offsets = [0, 16], sizes = [8, 8], strides = [1, 1]} : vector<8x32xf32> to vector<8x8xf32>
    %405 = vector.extract_strided_slice %362 {offsets = [0, 16], sizes = [8, 8], strides = [1, 1]} : vector<8x32xf32> to vector<8x8xf32>
    "tpu.trace_start"() <{level = 10 : i32, message = "qd,kd->qk"}> : () -> ()
    %cst_133 = arith.constant dense<0.000000e+00> : vector<8x8xf32>
    %406 = tpu.matmul %404, %405, %cst_133 {dimension_numbers = #tpu.dot_dimension_numbers<[1], [1], [0], [0], [0, 0, 1, 0], [], []>} : vector<8x8xf32>, vector<8x8xf32>, vector<8x8xf32> -> vector<8x8xf32>
    "tpu.trace_stop"() : () -> ()
    %cst_134 = arith.constant 0.353553385 : f32
    %407 = vector.broadcast %cst_134 : f32 to vector<8x8xf32>
    %408 = arith.mulf %406, %407 : vector<8x8xf32>
    %409 = arith.cmpi sle, %365, %364 : vector<8x8xi32>
    %cst_135 = arith.constant -3.400000e+38 : f32
    %410 = vector.broadcast %cst_135 : f32 to vector<8x8xf32>
    %411 = arith.select %409, %408, %410 : vector<8x8xi1>, vector<8x8xf32>
    %cst_136 = arith.constant dense<0xFF800000> : vector<8xf32>
    %412 = vector.multi_reduction <maximumf>, %411, %cst_136 [1] : vector<8x8xf32> to vector<8xf32>
    %413 = vector.shape_cast %412 : vector<8xf32> to vector<8x1xf32>
    %414 = vector.broadcast %413 : vector<8x1xf32> to vector<8x8xf32>
    %415 = arith.subf %411, %414 : vector<8x8xf32>
    %416 = math.exp %415 : vector<8x8xf32>
    %cst_137 = arith.constant dense<0.000000e+00> : vector<8xf32>
    %417 = vector.multi_reduction <add>, %416, %cst_137 [1] : vector<8x8xf32> to vector<8xf32>
    %418 = vector.shape_cast %417 : vector<8xf32> to vector<8x1xf32>
    %419 = vector.broadcast %418 : vector<8x1xf32> to vector<8x8xf32>
    %420 = arith.divf %416, %419 : vector<8x8xf32>
    %421 = vector.extract_strided_slice %363 {offsets = [0, 16], sizes = [8, 8], strides = [1, 1]} : vector<8x32xf32> to vector<8x8xf32>
    %cst_138 = arith.constant dense<0.000000e+00> : vector<8x8xf32>
    %422 = tpu.matmul %420, %421, %cst_138 {dimension_numbers = #tpu.dot_dimension_numbers<[1], [0], [0], [1], [0, 0, 1, 1], [], []>} : vector<8x8xf32>, vector<8x8xf32>, vector<8x8xf32> -> vector<8x8xf32>
    %423 = vector.extract_strided_slice %361 {offsets = [0, 24], sizes = [8, 8], strides = [1, 1]} : vector<8x32xf32> to vector<8x8xf32>
    %424 = vector.extract_strided_slice %362 {offsets = [0, 24], sizes = [8, 8], strides = [1, 1]} : vector<8x32xf32> to vector<8x8xf32>
    "tpu.trace_start"() <{level = 10 : i32, message = "qd,kd->qk"}> : () -> ()
    %cst_139 = arith.constant dense<0.000000e+00> : vector<8x8xf32>
    %425 = tpu.matmul %423, %424, %cst_139 {dimension_numbers = #tpu.dot_dimension_numbers<[1], [1], [0], [0], [0, 0, 1, 0], [], []>} : vector<8x8xf32>, vector<8x8xf32>, vector<8x8xf32> -> vector<8x8xf32>
    "tpu.trace_stop"() : () -> ()
    %cst_140 = arith.constant 0.353553385 : f32
    %426 = vector.broadcast %cst_140 : f32 to vector<8x8xf32>
    %427 = arith.mulf %425, %426 : vector<8x8xf32>
    %428 = arith.cmpi sle, %365, %364 : vector<8x8xi32>
    %cst_141 = arith.constant -3.400000e+38 : f32
    %429 = vector.broadcast %cst_141 : f32 to vector<8x8xf32>
    %430 = arith.select %428, %427, %429 : vector<8x8xi1>, vector<8x8xf32>
    %cst_142 = arith.constant dense<0xFF800000> : vector<8xf32>
    %431 = vector.multi_reduction <maximumf>, %430, %cst_142 [1] : vector<8x8xf32> to vector<8xf32>
    %432 = vector.shape_cast %431 : vector<8xf32> to vector<8x1xf32>
    %433 = vector.broadcast %432 : vector<8x1xf32> to vector<8x8xf32>
    %434 = arith.subf %430, %433 : vector<8x8xf32>
    %435 = math.exp %434 : vector<8x8xf32>
    %cst_143 = arith.constant dense<0.000000e+00> : vector<8xf32>
    %436 = vector.multi_reduction <add>, %435, %cst_143 [1] : vector<8x8xf32> to vector<8xf32>
    %437 = vector.shape_cast %436 : vector<8xf32> to vector<8x1xf32>
    %438 = vector.broadcast %437 : vector<8x1xf32> to vector<8x8xf32>
    %439 = arith.divf %435, %438 : vector<8x8xf32>
    %440 = vector.extract_strided_slice %363 {offsets = [0, 24], sizes = [8, 8], strides = [1, 1]} : vector<8x32xf32> to vector<8x8xf32>
    %cst_144 = arith.constant dense<0.000000e+00> : vector<8x8xf32>
    %441 = tpu.matmul %439, %440, %cst_144 {dimension_numbers = #tpu.dot_dimension_numbers<[1], [0], [0], [1], [0, 0, 1, 1], [], []>} : vector<8x8xf32>, vector<8x8xf32>, vector<8x8xf32> -> vector<8x8xf32>
    %442 = tpu.concatenate %384, %403, %422, %441 in 1 : vector<8x8xf32>, vector<8x8xf32>, vector<8x8xf32>, vector<8x8xf32> -> vector<8x32xf32>
    %c552 = arith.constant 552 : index
    %c0_145 = arith.constant 0 : index
    %443 = vector.load %arg5[%c552, %c0_145] : memref<888x128xf32, #tpu.memory_space<vmem>>, vector<32x128xf32>
    %444 = vector.extract_strided_slice %443 {offsets = [0, 0], sizes = [32, 32], strides = [1, 1]} : vector<32x128xf32> to vector<32x32xf32>
    %cst_146 = arith.constant dense<0.000000e+00> : vector<8x32xf32>
    %445 = tpu.matmul %442, %444, %cst_146 {dimension_numbers = #tpu.dot_dimension_numbers<[1], [0], [0], [1], [0, 0, 1, 1], [], []>} : vector<8x32xf32>, vector<32x32xf32>, vector<8x32xf32> -> vector<8x32xf32>
    %c584 = arith.constant 584 : index
    %c0_147 = arith.constant 0 : index
    %446 = vector.load %arg5[%c584, %c0_147] : memref<888x128xf32, #tpu.memory_space<vmem>>, vector<8x128xf32>
    %447 = vector.extract_strided_slice %446 {offsets = [0, 0], sizes = [1, 32], strides = [1, 1]} : vector<8x128xf32> to vector<1x32xf32>
    %448 = vector.broadcast %447 : vector<1x32xf32> to vector<8x32xf32>
    %449 = arith.addf %445, %448 : vector<8x32xf32>
    %450 = arith.addf %353, %449 : vector<8x32xf32>
    %c784 = arith.constant 784 : index
    %c0_148 = arith.constant 0 : index
    %451 = vector.load %arg5[%c784, %c0_148] : memref<888x128xf32, #tpu.memory_space<vmem>>, vector<8x128xf32>
    %452 = vector.extract_strided_slice %451 {offsets = [0, 0], sizes = [1, 32], strides = [1, 1]} : vector<8x128xf32> to vector<1x32xf32>
    %c792 = arith.constant 792 : index
    %c0_149 = arith.constant 0 : index
    %453 = vector.load %arg5[%c792, %c0_149] : memref<888x128xf32, #tpu.memory_space<vmem>>, vector<8x128xf32>
    %454 = vector.extract_strided_slice %453 {offsets = [0, 0], sizes = [1, 32], strides = [1, 1]} : vector<8x128xf32> to vector<1x32xf32>
    %cst_150 = arith.constant dense<0.000000e+00> : vector<8xf32>
    %455 = vector.multi_reduction <add>, %450, %cst_150 [1] : vector<8x32xf32> to vector<8xf32>
    %456 = vector.shape_cast %455 : vector<8xf32> to vector<8x1xf32>
    %cst_151 = arith.constant 3.200000e+01 : f32
    %457 = vector.broadcast %cst_151 : f32 to vector<8x1xf32>
    %458 = arith.divf %456, %457 : vector<8x1xf32>
    %459 = vector.broadcast %458 : vector<8x1xf32> to vector<8x32xf32>
    %460 = arith.subf %450, %459 : vector<8x32xf32>
    %461 = arith.mulf %460, %460 : vector<8x32xf32>
    %cst_152 = arith.constant dense<0.000000e+00> : vector<8xf32>
    %462 = vector.multi_reduction <add>, %461, %cst_152 [1] : vector<8x32xf32> to vector<8xf32>
    %463 = vector.shape_cast %462 : vector<8xf32> to vector<8x1xf32>
    %cst_153 = arith.constant 3.200000e+01 : f32
    %464 = vector.broadcast %cst_153 : f32 to vector<8x1xf32>
    %465 = arith.divf %463, %464 : vector<8x1xf32>
    %cst_154 = arith.constant 9.99999974E-6 : f32
    %466 = vector.broadcast %cst_154 : f32 to vector<8x1xf32>
    %467 = arith.addf %465, %466 : vector<8x1xf32>
    %468 = math.rsqrt %467 : vector<8x1xf32>
    %469 = vector.broadcast %468 : vector<8x1xf32> to vector<8x32xf32>
    %470 = arith.mulf %460, %469 : vector<8x32xf32>
    %471 = vector.broadcast %452 : vector<1x32xf32> to vector<8x32xf32>
    %472 = arith.mulf %470, %471 : vector<8x32xf32>
    %473 = vector.broadcast %454 : vector<1x32xf32> to vector<8x32xf32>
    %474 = arith.addf %472, %473 : vector<8x32xf32>
    %c592 = arith.constant 592 : index
    %c0_155 = arith.constant 0 : index
    %475 = vector.load %arg5[%c592, %c0_155] : memref<888x128xf32, #tpu.memory_space<vmem>>, vector<32x128xf32>
    %476 = vector.extract_strided_slice %475 {offsets = [0, 0], sizes = [32, 96], strides = [1, 1]} : vector<32x128xf32> to vector<32x96xf32>
    %c624 = arith.constant 624 : index
    %c0_156 = arith.constant 0 : index
    %477 = vector.load %arg5[%c624, %c0_156] : memref<888x128xf32, #tpu.memory_space<vmem>>, vector<8x128xf32>
    %478 = vector.extract_strided_slice %477 {offsets = [0, 0], sizes = [1, 96], strides = [1, 1]} : vector<8x128xf32> to vector<1x96xf32>
    %479 = vector.extract_strided_slice %476 {offsets = [0, 0], sizes = [32, 32], strides = [1, 1]} : vector<32x96xf32> to vector<32x32xf32>
    %cst_157 = arith.constant dense<0.000000e+00> : vector<8x32xf32>
    %480 = tpu.matmul %474, %479, %cst_157 {dimension_numbers = #tpu.dot_dimension_numbers<[1], [0], [0], [1], [0, 0, 1, 1], [], []>} : vector<8x32xf32>, vector<32x32xf32>, vector<8x32xf32> -> vector<8x32xf32>
    %481 = vector.extract_strided_slice %478 {offsets = [0, 0], sizes = [1, 32], strides = [1, 1]} : vector<1x96xf32> to vector<1x32xf32>
    %482 = vector.broadcast %481 : vector<1x32xf32> to vector<8x32xf32>
    %483 = arith.addf %480, %482 : vector<8x32xf32>
    %484 = vector.extract_strided_slice %476 {offsets = [0, 32], sizes = [32, 64], strides = [1, 1]} : vector<32x96xf32> to vector<32x64xf32>
    %cst_158 = arith.constant dense<0.000000e+00> : vector<8x64xf32>
    %485 = tpu.matmul %336, %484, %cst_158 {dimension_numbers = #tpu.dot_dimension_numbers<[1], [0], [0], [1], [0, 0, 1, 1], [], []>} : vector<8x32xf32>, vector<32x64xf32>, vector<8x64xf32> -> vector<8x64xf32>
    %486 = vector.extract_strided_slice %478 {offsets = [0, 32], sizes = [1, 64], strides = [1, 1]} : vector<1x96xf32> to vector<1x64xf32>
    %487 = vector.broadcast %486 : vector<1x64xf32> to vector<8x64xf32>
    %488 = arith.addf %485, %487 : vector<8x64xf32>
    %489 = vector.extract_strided_slice %488 {offsets = [0, 0], sizes = [8, 32], strides = [1, 1]} : vector<8x64xf32> to vector<8x32xf32>
    %490 = vector.extract_strided_slice %488 {offsets = [0, 32], sizes = [8, 32], strides = [1, 1]} : vector<8x64xf32> to vector<8x32xf32>
    %491 = vector.extract_strided_slice %483 {offsets = [0, 0], sizes = [8, 8], strides = [1, 1]} : vector<8x32xf32> to vector<8x8xf32>
    %492 = vector.extract_strided_slice %489 {offsets = [0, 0], sizes = [8, 8], strides = [1, 1]} : vector<8x32xf32> to vector<8x8xf32>
    "tpu.trace_start"() <{level = 10 : i32, message = "qd,kd->qk"}> : () -> ()
    %cst_159 = arith.constant dense<0.000000e+00> : vector<8x8xf32>
    %493 = tpu.matmul %491, %492, %cst_159 {dimension_numbers = #tpu.dot_dimension_numbers<[1], [1], [0], [0], [0, 0, 1, 0], [], []>} : vector<8x8xf32>, vector<8x8xf32>, vector<8x8xf32> -> vector<8x8xf32>
    "tpu.trace_stop"() : () -> ()
    %cst_160 = arith.constant 0.353553385 : f32
    %494 = vector.broadcast %cst_160 : f32 to vector<8x8xf32>
    %495 = arith.mulf %493, %494 : vector<8x8xf32>
    %cst_161 = arith.constant dense<0xFF800000> : vector<8xf32>
    %496 = vector.multi_reduction <maximumf>, %495, %cst_161 [1] : vector<8x8xf32> to vector<8xf32>
    %497 = vector.shape_cast %496 : vector<8xf32> to vector<8x1xf32>
    %498 = vector.broadcast %497 : vector<8x1xf32> to vector<8x8xf32>
    %499 = arith.subf %495, %498 : vector<8x8xf32>
    %500 = math.exp %499 : vector<8x8xf32>
    %cst_162 = arith.constant dense<0.000000e+00> : vector<8xf32>
    %501 = vector.multi_reduction <add>, %500, %cst_162 [1] : vector<8x8xf32> to vector<8xf32>
    %502 = vector.shape_cast %501 : vector<8xf32> to vector<8x1xf32>
    %503 = vector.broadcast %502 : vector<8x1xf32> to vector<8x8xf32>
    %504 = arith.divf %500, %503 : vector<8x8xf32>
    %505 = vector.extract_strided_slice %490 {offsets = [0, 0], sizes = [8, 8], strides = [1, 1]} : vector<8x32xf32> to vector<8x8xf32>
    %cst_163 = arith.constant dense<0.000000e+00> : vector<8x8xf32>
    %506 = tpu.matmul %504, %505, %cst_163 {dimension_numbers = #tpu.dot_dimension_numbers<[1], [0], [0], [1], [0, 0, 1, 1], [], []>} : vector<8x8xf32>, vector<8x8xf32>, vector<8x8xf32> -> vector<8x8xf32>
    %507 = vector.extract_strided_slice %483 {offsets = [0, 8], sizes = [8, 8], strides = [1, 1]} : vector<8x32xf32> to vector<8x8xf32>
    %508 = vector.extract_strided_slice %489 {offsets = [0, 8], sizes = [8, 8], strides = [1, 1]} : vector<8x32xf32> to vector<8x8xf32>
    "tpu.trace_start"() <{level = 10 : i32, message = "qd,kd->qk"}> : () -> ()
    %cst_164 = arith.constant dense<0.000000e+00> : vector<8x8xf32>
    %509 = tpu.matmul %507, %508, %cst_164 {dimension_numbers = #tpu.dot_dimension_numbers<[1], [1], [0], [0], [0, 0, 1, 0], [], []>} : vector<8x8xf32>, vector<8x8xf32>, vector<8x8xf32> -> vector<8x8xf32>
    "tpu.trace_stop"() : () -> ()
    %cst_165 = arith.constant 0.353553385 : f32
    %510 = vector.broadcast %cst_165 : f32 to vector<8x8xf32>
    %511 = arith.mulf %509, %510 : vector<8x8xf32>
    %cst_166 = arith.constant dense<0xFF800000> : vector<8xf32>
    %512 = vector.multi_reduction <maximumf>, %511, %cst_166 [1] : vector<8x8xf32> to vector<8xf32>
    %513 = vector.shape_cast %512 : vector<8xf32> to vector<8x1xf32>
    %514 = vector.broadcast %513 : vector<8x1xf32> to vector<8x8xf32>
    %515 = arith.subf %511, %514 : vector<8x8xf32>
    %516 = math.exp %515 : vector<8x8xf32>
    %cst_167 = arith.constant dense<0.000000e+00> : vector<8xf32>
    %517 = vector.multi_reduction <add>, %516, %cst_167 [1] : vector<8x8xf32> to vector<8xf32>
    %518 = vector.shape_cast %517 : vector<8xf32> to vector<8x1xf32>
    %519 = vector.broadcast %518 : vector<8x1xf32> to vector<8x8xf32>
    %520 = arith.divf %516, %519 : vector<8x8xf32>
    %521 = vector.extract_strided_slice %490 {offsets = [0, 8], sizes = [8, 8], strides = [1, 1]} : vector<8x32xf32> to vector<8x8xf32>
    %cst_168 = arith.constant dense<0.000000e+00> : vector<8x8xf32>
    %522 = tpu.matmul %520, %521, %cst_168 {dimension_numbers = #tpu.dot_dimension_numbers<[1], [0], [0], [1], [0, 0, 1, 1], [], []>} : vector<8x8xf32>, vector<8x8xf32>, vector<8x8xf32> -> vector<8x8xf32>
    %523 = vector.extract_strided_slice %483 {offsets = [0, 16], sizes = [8, 8], strides = [1, 1]} : vector<8x32xf32> to vector<8x8xf32>
    %524 = vector.extract_strided_slice %489 {offsets = [0, 16], sizes = [8, 8], strides = [1, 1]} : vector<8x32xf32> to vector<8x8xf32>
    "tpu.trace_start"() <{level = 10 : i32, message = "qd,kd->qk"}> : () -> ()
    %cst_169 = arith.constant dense<0.000000e+00> : vector<8x8xf32>
    %525 = tpu.matmul %523, %524, %cst_169 {dimension_numbers = #tpu.dot_dimension_numbers<[1], [1], [0], [0], [0, 0, 1, 0], [], []>} : vector<8x8xf32>, vector<8x8xf32>, vector<8x8xf32> -> vector<8x8xf32>
    "tpu.trace_stop"() : () -> ()
    %cst_170 = arith.constant 0.353553385 : f32
    %526 = vector.broadcast %cst_170 : f32 to vector<8x8xf32>
    %527 = arith.mulf %525, %526 : vector<8x8xf32>
    %cst_171 = arith.constant dense<0xFF800000> : vector<8xf32>
    %528 = vector.multi_reduction <maximumf>, %527, %cst_171 [1] : vector<8x8xf32> to vector<8xf32>
    %529 = vector.shape_cast %528 : vector<8xf32> to vector<8x1xf32>
    %530 = vector.broadcast %529 : vector<8x1xf32> to vector<8x8xf32>
    %531 = arith.subf %527, %530 : vector<8x8xf32>
    %532 = math.exp %531 : vector<8x8xf32>
    %cst_172 = arith.constant dense<0.000000e+00> : vector<8xf32>
    %533 = vector.multi_reduction <add>, %532, %cst_172 [1] : vector<8x8xf32> to vector<8xf32>
    %534 = vector.shape_cast %533 : vector<8xf32> to vector<8x1xf32>
    %535 = vector.broadcast %534 : vector<8x1xf32> to vector<8x8xf32>
    %536 = arith.divf %532, %535 : vector<8x8xf32>
    %537 = vector.extract_strided_slice %490 {offsets = [0, 16], sizes = [8, 8], strides = [1, 1]} : vector<8x32xf32> to vector<8x8xf32>
    %cst_173 = arith.constant dense<0.000000e+00> : vector<8x8xf32>
    %538 = tpu.matmul %536, %537, %cst_173 {dimension_numbers = #tpu.dot_dimension_numbers<[1], [0], [0], [1], [0, 0, 1, 1], [], []>} : vector<8x8xf32>, vector<8x8xf32>, vector<8x8xf32> -> vector<8x8xf32>
    %539 = vector.extract_strided_slice %483 {offsets = [0, 24], sizes = [8, 8], strides = [1, 1]} : vector<8x32xf32> to vector<8x8xf32>
    %540 = vector.extract_strided_slice %489 {offsets = [0, 24], sizes = [8, 8], strides = [1, 1]} : vector<8x32xf32> to vector<8x8xf32>
    "tpu.trace_start"() <{level = 10 : i32, message = "qd,kd->qk"}> : () -> ()
    %cst_174 = arith.constant dense<0.000000e+00> : vector<8x8xf32>
    %541 = tpu.matmul %539, %540, %cst_174 {dimension_numbers = #tpu.dot_dimension_numbers<[1], [1], [0], [0], [0, 0, 1, 0], [], []>} : vector<8x8xf32>, vector<8x8xf32>, vector<8x8xf32> -> vector<8x8xf32>
    "tpu.trace_stop"() : () -> ()
    %cst_175 = arith.constant 0.353553385 : f32
    %542 = vector.broadcast %cst_175 : f32 to vector<8x8xf32>
    %543 = arith.mulf %541, %542 : vector<8x8xf32>
    %cst_176 = arith.constant dense<0xFF800000> : vector<8xf32>
    %544 = vector.multi_reduction <maximumf>, %543, %cst_176 [1] : vector<8x8xf32> to vector<8xf32>
    %545 = vector.shape_cast %544 : vector<8xf32> to vector<8x1xf32>
    %546 = vector.broadcast %545 : vector<8x1xf32> to vector<8x8xf32>
    %547 = arith.subf %543, %546 : vector<8x8xf32>
    %548 = math.exp %547 : vector<8x8xf32>
    %cst_177 = arith.constant dense<0.000000e+00> : vector<8xf32>
    %549 = vector.multi_reduction <add>, %548, %cst_177 [1] : vector<8x8xf32> to vector<8xf32>
    %550 = vector.shape_cast %549 : vector<8xf32> to vector<8x1xf32>
    %551 = vector.broadcast %550 : vector<8x1xf32> to vector<8x8xf32>
    %552 = arith.divf %548, %551 : vector<8x8xf32>
    %553 = vector.extract_strided_slice %490 {offsets = [0, 24], sizes = [8, 8], strides = [1, 1]} : vector<8x32xf32> to vector<8x8xf32>
    %cst_178 = arith.constant dense<0.000000e+00> : vector<8x8xf32>
    %554 = tpu.matmul %552, %553, %cst_178 {dimension_numbers = #tpu.dot_dimension_numbers<[1], [0], [0], [1], [0, 0, 1, 1], [], []>} : vector<8x8xf32>, vector<8x8xf32>, vector<8x8xf32> -> vector<8x8xf32>
    %555 = tpu.concatenate %506, %522, %538, %554 in 1 : vector<8x8xf32>, vector<8x8xf32>, vector<8x8xf32>, vector<8x8xf32> -> vector<8x32xf32>
    %c632 = arith.constant 632 : index
    %c0_179 = arith.constant 0 : index
    %556 = vector.load %arg5[%c632, %c0_179] : memref<888x128xf32, #tpu.memory_space<vmem>>, vector<32x128xf32>
    %557 = vector.extract_strided_slice %556 {offsets = [0, 0], sizes = [32, 32], strides = [1, 1]} : vector<32x128xf32> to vector<32x32xf32>
    %cst_180 = arith.constant dense<0.000000e+00> : vector<8x32xf32>
    %558 = tpu.matmul %555, %557, %cst_180 {dimension_numbers = #tpu.dot_dimension_numbers<[1], [0], [0], [1], [0, 0, 1, 1], [], []>} : vector<8x32xf32>, vector<32x32xf32>, vector<8x32xf32> -> vector<8x32xf32>
    %c664 = arith.constant 664 : index
    %c0_181 = arith.constant 0 : index
    %559 = vector.load %arg5[%c664, %c0_181] : memref<888x128xf32, #tpu.memory_space<vmem>>, vector<8x128xf32>
    %560 = vector.extract_strided_slice %559 {offsets = [0, 0], sizes = [1, 32], strides = [1, 1]} : vector<8x128xf32> to vector<1x32xf32>
    %561 = vector.broadcast %560 : vector<1x32xf32> to vector<8x32xf32>
    %562 = arith.addf %558, %561 : vector<8x32xf32>
    %563 = arith.addf %474, %562 : vector<8x32xf32>
    %c800 = arith.constant 800 : index
    %c0_182 = arith.constant 0 : index
    %564 = vector.load %arg5[%c800, %c0_182] : memref<888x128xf32, #tpu.memory_space<vmem>>, vector<8x128xf32>
    %565 = vector.extract_strided_slice %564 {offsets = [0, 0], sizes = [1, 32], strides = [1, 1]} : vector<8x128xf32> to vector<1x32xf32>
    %c808 = arith.constant 808 : index
    %c0_183 = arith.constant 0 : index
    %566 = vector.load %arg5[%c808, %c0_183] : memref<888x128xf32, #tpu.memory_space<vmem>>, vector<8x128xf32>
    %567 = vector.extract_strided_slice %566 {offsets = [0, 0], sizes = [1, 32], strides = [1, 1]} : vector<8x128xf32> to vector<1x32xf32>
    %cst_184 = arith.constant dense<0.000000e+00> : vector<8xf32>
    %568 = vector.multi_reduction <add>, %563, %cst_184 [1] : vector<8x32xf32> to vector<8xf32>
    %569 = vector.shape_cast %568 : vector<8xf32> to vector<8x1xf32>
    %cst_185 = arith.constant 3.200000e+01 : f32
    %570 = vector.broadcast %cst_185 : f32 to vector<8x1xf32>
    %571 = arith.divf %569, %570 : vector<8x1xf32>
    %572 = vector.broadcast %571 : vector<8x1xf32> to vector<8x32xf32>
    %573 = arith.subf %563, %572 : vector<8x32xf32>
    %574 = arith.mulf %573, %573 : vector<8x32xf32>
    %cst_186 = arith.constant dense<0.000000e+00> : vector<8xf32>
    %575 = vector.multi_reduction <add>, %574, %cst_186 [1] : vector<8x32xf32> to vector<8xf32>
    %576 = vector.shape_cast %575 : vector<8xf32> to vector<8x1xf32>
    %cst_187 = arith.constant 3.200000e+01 : f32
    %577 = vector.broadcast %cst_187 : f32 to vector<8x1xf32>
    %578 = arith.divf %576, %577 : vector<8x1xf32>
    %cst_188 = arith.constant 9.99999974E-6 : f32
    %579 = vector.broadcast %cst_188 : f32 to vector<8x1xf32>
    %580 = arith.addf %578, %579 : vector<8x1xf32>
    %581 = math.rsqrt %580 : vector<8x1xf32>
    %582 = vector.broadcast %581 : vector<8x1xf32> to vector<8x32xf32>
    %583 = arith.mulf %573, %582 : vector<8x32xf32>
    %584 = vector.broadcast %565 : vector<1x32xf32> to vector<8x32xf32>
    %585 = arith.mulf %583, %584 : vector<8x32xf32>
    %586 = vector.broadcast %567 : vector<1x32xf32> to vector<8x32xf32>
    %587 = arith.addf %585, %586 : vector<8x32xf32>
    %c672 = arith.constant 672 : index
    %c0_189 = arith.constant 0 : index
    %588 = vector.load %arg5[%c672, %c0_189] : memref<888x128xf32, #tpu.memory_space<vmem>>, vector<32x128xf32>
    %589 = vector.extract_strided_slice %588 {offsets = [0, 0], sizes = [32, 64], strides = [1, 1]} : vector<32x128xf32> to vector<32x64xf32>
    %cst_190 = arith.constant dense<0.000000e+00> : vector<8x64xf32>
    %590 = tpu.matmul %587, %589, %cst_190 {dimension_numbers = #tpu.dot_dimension_numbers<[1], [0], [0], [1], [0, 0, 1, 1], [], []>} : vector<8x32xf32>, vector<32x64xf32>, vector<8x64xf32> -> vector<8x64xf32>
    %c704 = arith.constant 704 : index
    %c0_191 = arith.constant 0 : index
    %591 = vector.load %arg5[%c704, %c0_191] : memref<888x128xf32, #tpu.memory_space<vmem>>, vector<8x128xf32>
    %592 = vector.extract_strided_slice %591 {offsets = [0, 0], sizes = [1, 64], strides = [1, 1]} : vector<8x128xf32> to vector<1x64xf32>
    %593 = vector.broadcast %592 : vector<1x64xf32> to vector<8x64xf32>
    %594 = arith.addf %590, %593 : vector<8x64xf32>
    %cst_192 = arith.constant 0.000000e+00 : f32
    %595 = vector.broadcast %cst_192 : f32 to vector<8x64xf32>
    %596 = arith.maximumf %594, %595 : vector<8x64xf32>
    %c712 = arith.constant 712 : index
    %c0_193 = arith.constant 0 : index
    %597 = vector.load %arg5[%c712, %c0_193] : memref<888x128xf32, #tpu.memory_space<vmem>>, vector<64x128xf32>
    %598 = vector.extract_strided_slice %597 {offsets = [0, 0], sizes = [64, 32], strides = [1, 1]} : vector<64x128xf32> to vector<64x32xf32>
    %cst_194 = arith.constant dense<0.000000e+00> : vector<8x32xf32>
    %599 = tpu.matmul %596, %598, %cst_194 {dimension_numbers = #tpu.dot_dimension_numbers<[1], [0], [0], [1], [0, 0, 1, 1], [], []>} : vector<8x64xf32>, vector<64x32xf32>, vector<8x32xf32> -> vector<8x32xf32>
    %c776 = arith.constant 776 : index
    %c0_195 = arith.constant 0 : index
    %600 = vector.load %arg5[%c776, %c0_195] : memref<888x128xf32, #tpu.memory_space<vmem>>, vector<8x128xf32>
    %601 = vector.extract_strided_slice %600 {offsets = [0, 0], sizes = [1, 32], strides = [1, 1]} : vector<8x128xf32> to vector<1x32xf32>
    %602 = vector.broadcast %601 : vector<1x32xf32> to vector<8x32xf32>
    %603 = arith.addf %599, %602 : vector<8x32xf32>
    %604 = arith.addf %587, %603 : vector<8x32xf32>
    %c816 = arith.constant 816 : index
    %c0_196 = arith.constant 0 : index
    %605 = vector.load %arg5[%c816, %c0_196] : memref<888x128xf32, #tpu.memory_space<vmem>>, vector<8x128xf32>
    %606 = vector.extract_strided_slice %605 {offsets = [0, 0], sizes = [1, 32], strides = [1, 1]} : vector<8x128xf32> to vector<1x32xf32>
    %c824 = arith.constant 824 : index
    %c0_197 = arith.constant 0 : index
    %607 = vector.load %arg5[%c824, %c0_197] : memref<888x128xf32, #tpu.memory_space<vmem>>, vector<8x128xf32>
    %608 = vector.extract_strided_slice %607 {offsets = [0, 0], sizes = [1, 32], strides = [1, 1]} : vector<8x128xf32> to vector<1x32xf32>
    %cst_198 = arith.constant dense<0.000000e+00> : vector<8xf32>
    %609 = vector.multi_reduction <add>, %604, %cst_198 [1] : vector<8x32xf32> to vector<8xf32>
    %610 = vector.shape_cast %609 : vector<8xf32> to vector<8x1xf32>
    %cst_199 = arith.constant 3.200000e+01 : f32
    %611 = vector.broadcast %cst_199 : f32 to vector<8x1xf32>
    %612 = arith.divf %610, %611 : vector<8x1xf32>
    %613 = vector.broadcast %612 : vector<8x1xf32> to vector<8x32xf32>
    %614 = arith.subf %604, %613 : vector<8x32xf32>
    %615 = arith.mulf %614, %614 : vector<8x32xf32>
    %cst_200 = arith.constant dense<0.000000e+00> : vector<8xf32>
    %616 = vector.multi_reduction <add>, %615, %cst_200 [1] : vector<8x32xf32> to vector<8xf32>
    %617 = vector.shape_cast %616 : vector<8xf32> to vector<8x1xf32>
    %cst_201 = arith.constant 3.200000e+01 : f32
    %618 = vector.broadcast %cst_201 : f32 to vector<8x1xf32>
    %619 = arith.divf %617, %618 : vector<8x1xf32>
    %cst_202 = arith.constant 9.99999974E-6 : f32
    %620 = vector.broadcast %cst_202 : f32 to vector<8x1xf32>
    %621 = arith.addf %619, %620 : vector<8x1xf32>
    %622 = math.rsqrt %621 : vector<8x1xf32>
    %623 = vector.broadcast %622 : vector<8x1xf32> to vector<8x32xf32>
    %624 = arith.mulf %614, %623 : vector<8x32xf32>
    %625 = vector.broadcast %606 : vector<1x32xf32> to vector<8x32xf32>
    %626 = arith.mulf %624, %625 : vector<8x32xf32>
    %627 = vector.broadcast %608 : vector<1x32xf32> to vector<8x32xf32>
    %628 = arith.addf %626, %627 : vector<8x32xf32>
    %c832 = arith.constant 832 : index
    %c0_203 = arith.constant 0 : index
    %629 = vector.load %arg5[%c832, %c0_203] : memref<888x128xf32, #tpu.memory_space<vmem>>, vector<8x128xf32>
    %630 = vector.extract_strided_slice %629 {offsets = [0, 0], sizes = [1, 32], strides = [1, 1]} : vector<8x128xf32> to vector<1x32xf32>
    %c840 = arith.constant 840 : index
    %c0_204 = arith.constant 0 : index
    %631 = vector.load %arg5[%c840, %c0_204] : memref<888x128xf32, #tpu.memory_space<vmem>>, vector<8x128xf32>
    %632 = vector.extract_strided_slice %631 {offsets = [0, 0], sizes = [1, 32], strides = [1, 1]} : vector<8x128xf32> to vector<1x32xf32>
    %cst_205 = arith.constant dense<0.000000e+00> : vector<8xf32>
    %633 = vector.multi_reduction <add>, %628, %cst_205 [1] : vector<8x32xf32> to vector<8xf32>
    %634 = vector.shape_cast %633 : vector<8xf32> to vector<8x1xf32>
    %cst_206 = arith.constant 3.200000e+01 : f32
    %635 = vector.broadcast %cst_206 : f32 to vector<8x1xf32>
    %636 = arith.divf %634, %635 : vector<8x1xf32>
    %637 = vector.broadcast %636 : vector<8x1xf32> to vector<8x32xf32>
    %638 = arith.subf %628, %637 : vector<8x32xf32>
    %639 = arith.mulf %638, %638 : vector<8x32xf32>
    %cst_207 = arith.constant dense<0.000000e+00> : vector<8xf32>
    %640 = vector.multi_reduction <add>, %639, %cst_207 [1] : vector<8x32xf32> to vector<8xf32>
    %641 = vector.shape_cast %640 : vector<8xf32> to vector<8x1xf32>
    %cst_208 = arith.constant 3.200000e+01 : f32
    %642 = vector.broadcast %cst_208 : f32 to vector<8x1xf32>
    %643 = arith.divf %641, %642 : vector<8x1xf32>
    %cst_209 = arith.constant 9.99999974E-6 : f32
    %644 = vector.broadcast %cst_209 : f32 to vector<8x1xf32>
    %645 = arith.addf %643, %644 : vector<8x1xf32>
    %646 = math.rsqrt %645 : vector<8x1xf32>
    %647 = vector.broadcast %646 : vector<8x1xf32> to vector<8x32xf32>
    %648 = arith.mulf %638, %647 : vector<8x32xf32>
    %649 = vector.broadcast %630 : vector<1x32xf32> to vector<8x32xf32>
    %650 = arith.mulf %648, %649 : vector<8x32xf32>
    %651 = vector.broadcast %632 : vector<1x32xf32> to vector<8x32xf32>
    %652 = arith.addf %650, %651 : vector<8x32xf32>
    %c848 = arith.constant 848 : index
    %c0_210 = arith.constant 0 : index
    %653 = vector.load %arg5[%c848, %c0_210] : memref<888x128xf32, #tpu.memory_space<vmem>>, vector<32x128xf32>
    %654 = vector.extract_strided_slice %653 {offsets = [0, 0], sizes = [32, 4], strides = [1, 1]} : vector<32x128xf32> to vector<32x4xf32>
    %cst_211 = arith.constant dense<0.000000e+00> : vector<8x4xf32>
    %655 = tpu.matmul %652, %654, %cst_211 {dimension_numbers = #tpu.dot_dimension_numbers<[1], [0], [0], [1], [0, 0, 1, 1], [], []>} : vector<8x32xf32>, vector<32x4xf32>, vector<8x4xf32> -> vector<8x4xf32>
    %c880 = arith.constant 880 : index
    %c0_212 = arith.constant 0 : index
    %656 = vector.load %arg5[%c880, %c0_212] : memref<888x128xf32, #tpu.memory_space<vmem>>, vector<8x128xf32>
    %657 = vector.extract_strided_slice %656 {offsets = [0, 0], sizes = [1, 4], strides = [1, 1]} : vector<8x128xf32> to vector<1x4xf32>
    %658 = vector.broadcast %657 : vector<1x4xf32> to vector<8x4xf32>
    %659 = arith.addf %655, %658 : vector<8x4xf32>
    %660 = vector.extract_strided_slice %659 {offsets = [4, 0], sizes = [4, 4], strides = [1, 1]} : vector<8x4xf32> to vector<4x4xf32>
    %c0_213 = arith.constant 0 : index
    %c0_214 = arith.constant 0 : index
    %c0_215 = arith.constant 0 : index
    %661 = vector.load %arg6[%c0_213, %c0_214, %c0_215] : memref<1x4x4xf32, #tpu.memory_space<vmem>>, vector<1x4x4xf32>
    %662 = vector.shape_cast %661 : vector<1x4x4xf32> to vector<4x4xf32>
    %663 = vector.shape_cast %660 : vector<4x4xf32> to vector<1x4x4xf32>
    tpu.vector_store %arg6[%c0_213, %c0_214, %c0_215], %663 {strides = array<i32>} : memref<1x4x4xf32, #tpu.memory_space<vmem>>, vector<1x4x4xf32>,
    return
  }
  func.func @transform_0(%arg0: i32) -> (i32, i32, i32) {
    %c0_i32 = arith.constant 0 : i32
    %c0_i32_0 = arith.constant 0 : i32
    %c0_i32_1 = arith.constant 0 : i32
    return %arg0, %c0_i32, %c0_i32_0 : i32, i32, i32
  }
  func.func @transform_1(%arg0: i32) -> (i32, i32, i32) {
    %c0_i32 = arith.constant 0 : i32
    %c0_i32_0 = arith.constant 0 : i32
    %c0_i32_1 = arith.constant 0 : i32
    return %arg0, %c0_i32, %c0_i32_0 : i32, i32, i32
  }
  func.func @transform_2(%arg0: i32) -> (i32, i32, i32) {
    %c0_i32 = arith.constant 0 : i32
    %c0_i32_0 = arith.constant 0 : i32
    %c0_i32_1 = arith.constant 0 : i32
    return %arg0, %c0_i32, %c0_i32_0 : i32, i32, i32
  }
  func.func @transform_3(%arg0: i32) -> (i32, i32, i32) {
    %c0_i32 = arith.constant 0 : i32
    %c0_i32_0 = arith.constant 0 : i32
    %c0_i32_1 = arith.constant 0 : i32
    return %arg0, %c0_i32, %c0_i32_0 : i32, i32, i32
  }
  func.func @transform_4(%arg0: i32) -> (i32, i32) {
    %c0_i32 = arith.constant 0 : i32
    %c0_i32_0 = arith.constant 0 : i32
    %c0_i32_1 = arith.constant 0 : i32
    return %c0_i32, %c0_i32_0 : i32, i32
  }
  func.func @transform_5(%arg0: i32) -> (i32, i32, i32) {
    %c0_i32 = arith.constant 0 : i32
    %c0_i32_0 = arith.constant 0 : i32
    %c0_i32_1 = arith.constant 0 : i32
    return %arg0, %c0_i32, %c0_i32_0 : i32, i32, i32
  }
}

</mosaic_0001>

<bundles_post_ra>
// kernel: _lambda_.1
= control target key start
LH: loop header
LB: loop body
LE: loop exit
PB: predicated region body
PF: predicated region fallthrough
CT: control target
= control target key end

     0   :  { %10 = vsyncpa [#allocation3], 0  ;;  %s6482_s0 = inlined_call_operand.vmem [shape: f32[2,8,4], index: 0, kind: input, shape index: {}]   ;;  %s6483_s1 = inlined_call_operand.vmem [shape: f32[2,8,4], index: 1, kind: input, shape index: {}]   ;;  %s6484_s2 = inlined_call_operand.vmem [shape: f32[2,8,4], index: 2, kind: input, shape index: {}]   ;;  %s6485_s3 = inlined_call_operand.vmem [shape: f32[2,8,4], index: 3, kind: input, shape index: {}]   ;;  %s6486_s4 = inlined_call_operand.hbm [shape: f32[888,128], index: 4, kind: input, shape index: {}]   ;;  %s6487_s5 = inlined_call_operand.hbm [shape: f32[2,4,4], index: 5, kind: output, shape index: {}]  }
   0x1   :  { %11 = vsyncpa [#allocation4], 0 }
   0x2   :  { %13 = vsyncpa [#allocation4 + $0x1], 0  ;;  %s5820_s18 = smov 0   ;;  %s5822_s19 = smov 0  }
   0x3   :  { %s5824_s20 = smov 0   ;;  %s5826_s21 = smov 0  }
   0x4 LB: > { %s5841_s22 = sadd.s32 4294967295, %s5766_s21   ;;  %s4907_s23 = sadd.s32 4294967294, %s5766_s21   ;;  %s5766_s21 = sphi %s5826_s21, %s6511_s21   ;;  %s5762_s20 = sphi %s5824_s20, %s6510_s20   ;;  %s5758_s19 = sphi %s5822_s19, %s6509_s19   ;;  %s5754_s18 = sphi %s5820_s18, %s6508_s18  }
   0x5   : > { %s5845_s24 = sadd.s32 1, %s5766_s21   ;;  %s151_s25 = sadd.s32 1, %s5762_s20 }
   0x6   : > { %s148_s26 = ssub.s32 %s5766_s21, %s5845_s24  ;;  %p161_p0 = scmp.ne.s32.totalorder %s5762_s20, %s5758_s19 }
   0x7   : > { %p149_p1 = scmp.eq.s32.totalorder %s148_s26, 0  ;;  %p162_p2 = scmp.eq.s32.totalorder %s5841_s22, 1 }
   0x8   : > { %p167_p3 = scmp.ne.s32.totalorder %s5758_s19, %s5754_s18  ;;  %p168_p4 = scmp.eq.s32.totalorder %s4907_s23, 1 }
   0x9   : > { %s5856_s27 = scalar_select %p149_p1, %s5762_s20, %s151_s25  }
   0xa   : > { %p5858_p5 = por %p162_p2, %p161_p0  ;;  %p5862_p6 = por %p168_p4, %p167_p3 }
   0xb   : > { %p4908_p7 = scmp.ge.s32.totalorder %s5766_s21, 1  ;;  %p175_p8 = scmp.lt.s32.totalorder %s5766_s21, 3 }
   0xc   : > { %s6498_s29 = scalar_select %p5862_p6, 1, 0 }
   0xd   : > { %p5538_p9 = scmp.eq.s32.totalorder %s5841_s22, 0  ;;  %p5869_p10 = pnand %p4908_p7, %p175_p8 }
   0xe   : > { %s5768_s6 = smov [#allocation2]  }
   0xf   : > { %s187_s7 = sshll.u32 %s5768_s6, 4  ;;  %p5530_p11 = pneg %p5869_p10  ;;  %s188_s7 = int_to_ptr.vmem [resolvable:$true] %s187_s7 }
  0x10   : > { %s5687_s8 = scalar_lea.vmem %s188_s7, 14208  ;;  %p5695_p3 = scmp.lt.s32.totalorder %s188_s7, %s188_s7 }
  0x11   : > { %p5531_p12 = pnand %p5538_p9, %p5530_p11  ;;  %p5688_p0 = scmp.ne.s32.totalorder %s188_s7, %s5687_s8 }
  0x12   : > { %p5696_p4 = scmp.lt.s32.totalorder %s5687_s8, %s5687_s8 }
  0x13   : > { %p5678_p13 = pneg %p5531_p12 }
  0x14   : > { %p5697_p6 = por %p5696_p4, %p5695_p3 }
  0x15   : > { %p5690_p1 = pnand %p5688_p0, %p5678_p13 }
  0x17   : > { %p5691_p2 = pneg %p5690_p1 }
  0x19   : > { %p5698_p7 = pnand %p5697_p6, %p5691_p2 }
  0x1b   : > { %5701 = shalt.err (!%p5698_p7)
}
  0x1c   : > { %s5769_s9 = smov 128   ;;  %s5770_s10 = smov 8  }
  0x1d   : > { %5533 = dma.hbm_to_vmem [thread:$0]  (!%p5531_p12), %s6486_s4, 14208, %s188_s7, [#allocation3], %s5769_s9, %s5769_s9, %s5770_s10  }
  0x1e   : > { %231 = sbr.rel (%p5869_p10) target bundleno = 9126 (0x23a6), region = 40 }
  0x23   : > { %5745 = dma.done.wait (%p5538_p9), [#allocation3], 14208  }
  0x24   : > { %5747 = vsyncadd (%p5538_p9), [#allocation3], 4294953088  ;;  %p270_p8 = scmp.lt.s32.totalorder %s5841_s22, 1  ;;  %v5771_v0 = vmov 0.0   ;;  %vm5772_vm0 = vmmov 0   ;;  %v315_v3 = vld [vmem:[#allocation2 + $0x8] sm:$0xff]  ;;  %v396_v21 = vlaneseq }
  0x25   : > { %5150 = vmatprep.subr.mxu1 %v5771_v0  ;;  %5168 = vmatprep.subr.mxu0 %v5771_v0  ;;  %s6488_s30 = smov 4   ;;  %s5774_s6 = smov 12   ;;  %v314_v5 = vld [vmem:[#allocation2] sm:$0xff]  ;;  %vm308_vm1 = vcmask 31744   ;;  %vm310_vm2 = vcmask 64512   ;;  %vm312_vm3 = vcmask 97280  }
  0x26   : > { %s271_s13 = scalar_select %p270_p8, %s5841_s22, 1  ;;  %5154 = vmatprep.mubr.msk.f32.mxu1 %vm5772_vm0, %v5771_v0  ;;  %5170 = vmatprep.mubr.msk.f32.mxu0 %vm5772_vm0, %v5771_v0  ;;  %vm317_vm4 = vcmask 130048   ;;  %v394_v12 = vld [vmem:[#allocation2 + $0x48] sm:$0xff]  ;;  %v393_v14 = vld [vmem:[#allocation2 + $0x40] sm:$0xff]  ;;  %v392_v15 = vld [vmem:[#allocation2 + $0x38] sm:$0xff]  ;;  %vm400_vm5 = vcmask 261120  }
  0x27   : > { %5151 = vmatpush3.msra.mxu1 %v315_v3  ;;  %s5775_s7 = smov 8   ;;  %v391_v16 = vld [vmem:[#allocation2 + $0x30] sm:$0xff]  ;;  %v5926_v22 = vshrl.u32 %v396_v21, 7  ;;  %s5776_s8 = smov 88   ;;  %vm1151_vm6 = vcmask 195584   ;;  %vm1358_vm7 = vcmask 523264  }
  0x28   : > { %s5894_s14 = sshll.u32 %s271_s13, 3  ;;  %5152 = vmatprep.subr.mxu1 %v5771_v0  ;;  %v316_v17 = vld [vmem:[#allocation2 + $0x10] sm:$0xff]  ;;  %s5777_s9 = smov 96   ;;  %vm4784_vm9 = vcmask 31748  }
  0x29   : > { %s273_s17 = scalar_lea.vmem %s6482_s0, %s5894_s14  ;;  %s277_s26 = scalar_lea.vmem %s6483_s1, %s5894_s14  ;;  %5153 = vmatpush3.msra.mxu1 %v314_v5  ;;  %v5929_v23 = vsub.s32 0, %v5926_v22  ;;  %v395_v24 = vld [vmem:[#allocation2 + $0x50] sm:$0xff] }
  0x2a   : > { %v286_v1 = vld [vmem:[%s273_s17] sm:$0xff]  ;;  %5157 = vmatprep.subr.mxu1 %v5771_v0  ;;  %s5778_s10 = smov 80   ;;  %s5779_s11 = smov 120  }
  0x2b   : > { %v287_v2 = vld [vmem:[%s277_s26] sm:$0xff]  ;;  %297 = vrot.lane.b32.xlu0 %v286_v1, %s6488_s30  ;;  %v293_v4 = vrot.slane %v286_v1, 1  ;;  %v289_v6 = vrot.slane %v286_v1, 7  ;;  %v399_v25 = vrot.slane %v395_v24, %v5929_v23  ;;  %s5780_s12 = smov 72   ;;  %s5781_s13 = smov 112  }
  0x2c   : > { %305 = vrot.lane.b32.xlu1 %v287_v2, %s5774_s6  ;;  %s5782_s15 = smov 104   ;;  %s6495_s16 = smov 64  }
  0x2d   : > { %s6494_s17 = smov 48   ;;  %s6493_s23 = smov 40  }
  0x2e   : > { %s6496_s25 = smov 56   ;;  %s6491_s26 = smov 16  }
  0x2f   : > { %301 = vrot.lane.b32.xlu0 %v293_v4, %s5775_s7  ;;  %s6489_s30 = smov 24  }
  0x9d   : > { %v298_v7 = vpop.permute.xlu0 %297 }
  0x9e   : > { %v306_v8 = vpop.permute.xlu1 %305  ;;  %v309_v9 = vsel %vm308_vm1, %v289_v6, %v298_v7 }
  0xa1   : > { %v302_v10 = vpop.permute.xlu0 %301 }
  0xa2   : > { %v311_v11 = vsel %vm310_vm2, %v309_v9, %v302_v10 }
  0xa3   : > { %v313_v13 = vsel %vm312_vm3, %v311_v11, %v306_v8 }
  0xa4   : > { %5155 = vmatmul.mubr.msk.f32.vlgmr.msra.gmra.mxu1 %vm317_vm4, %v313_v13 }
  0xa5   : > { %5158 = vmatpush3.msra.mxu1 %v394_v12  ;;  %5165 = vmatprep.mubr.msk.f32.mxu1 %vm5772_vm0, %v5771_v0 }
  0xa6   : > { %5159 = vmatprep.subr.mxu1 %v5771_v0 }
  0xa7   : > { %5160 = vmatpush3.msra.mxu1 %v393_v14 }
  0xa8   : > { %5161 = vmatprep.subr.mxu1 %v5771_v0 }
  0xa9   : > { %5162 = vmatpush3.msra.mxu1 %v392_v15 }
  0xaa   : > { %5163 = vmatprep.subr.mxu1 %v5771_v0 }
  0xab   : > { %5164 = vmatpush3.msra.mxu1 %v391_v16 }
  0xac   : > { %5178 = vmatprep.subr.mxu1 %v5771_v0 }
 0x164   : > { %v387_v18 = vpop.f32.mrf.mxu1 }
 0x165   : > { %v5919_v19 = vadd.f32 %v387_v18, %v316_v17 }
 0x166   : > { %v5156_v20 = vpop.f32.mrf.mxu1 }
 0x167   : > { %5166 = vmatmul.mubr.msk.f32.vlgmr.msra.gmra.mxu1 %vm400_vm5, %v5919_v19 }
 0x168   : > { %5180 = vmatprep.mubr.msk.f32.mxu1 %vm5772_vm0, %v5771_v0 }
 0x227   : > { %v470_v26 = vpop.f32.mrf.mxu1 }
 0x228   : > { %v5932_v27 = vadd.f32 %v470_v26, %v399_v25 }
 0x229   : > { %v5167_v28 = vpop.f32.mrf.mxu1 }
 0x22a   : > { %641 = vrot.lane.b32.xlu0 %v5932_v27, %s5776_s8  ;;  %475 = vrot.lane.b32.xlu1 %v5932_v27, %s5777_s9 }
 0x22e   : > { %807 = vrot.lane.b32.xlu0 %v5932_v27, %s5778_s10  ;;  %639 = vrot.lane.b32.xlu1 %v5932_v27, %s5779_s11 }
 0x232   : > { %973 = vrot.lane.b32.xlu0 %v5932_v27, %s5780_s12  ;;  %805 = vrot.lane.b32.xlu1 %v5932_v27, %s5781_s13 }
 0x236   : > { %971 = vrot.lane.b32.xlu1 %v5932_v27, %s5782_s15 }
 0x29c   : > { %v642_v29 = vpop.permute.xlu0 %641  ;;  %v476_v30 = vpop.permute.xlu1 %475 }
 0x29d   : > { %5169 = vmatpush3.xpose.msk.msra.mxu0 %vm310_vm2, %v476_v30  ;;  %5179 = vmatpush3.xpose.msk.msra.mxu1 %vm310_vm2, %v642_v29  ;;  %v1156_v29 = vld [vmem:[#allocation2 + $0x70] sm:$0xff]  ;;  %v1155_v30 = vld [vmem:[#allocation2 + $0x68] sm:$0xff] }
 0x29e   : > { %5188 = vmatprep.subr.mxu1 %v5771_v0  ;;  %5173 = vmatprep.subr.mxu0 %v5771_v0 }
 0x2a0   : > { %v808_v31 = vpop.permute.xlu0 %807  ;;  %5171 = vmatmul.mubr.msk.f32.vlgmr.msra.gmra.mxu0 %vm310_vm2, %v5932_v27  ;;  %v640_v32 = vpop.permute.xlu1 %639 }
 0x2a1   : > { %5181 = vmatmul.mubr.msk.f32.vlgmr.msra.gmra.mxu1 %vm310_vm2, %v640_v32  ;;  %5175 = vmatprep.mubr.msk.f32.mxu0 %vm5772_vm0, %v5771_v0 }
 0x2a2   : > { %5189 = vmatpush3.xpose.msk.msra.mxu1 %vm310_vm2, %v808_v31  ;;  %5190 = vmatprep.mubr.msk.f32.mxu1 %vm5772_vm0, %v5771_v0  ;;  %v1154_v31 = vld [vmem:[#allocation2 + $0x60] sm:$0xff] }
 0x2a3   : > { %5198 = vmatprep.subr.mxu1 %v5771_v0 }
 0x2a4   : > { %v974_v33 = vpop.permute.xlu0 %973  ;;  %v806_v34 = vpop.permute.xlu1 %805 }
 0x2a5   : > { %5191 = vmatmul.mubr.msk.f32.vlgmr.msra.gmra.mxu1 %vm310_vm2, %v806_v34 }
 0x2a6   : > { %5199 = vmatpush3.xpose.msk.msra.mxu1 %vm310_vm2, %v974_v33  ;;  %5200 = vmatprep.mubr.msk.f32.mxu1 %vm5772_vm0, %v5771_v0  ;;  %v1153_v33 = vld [vmem:[#allocation2 + $0x58] sm:$0xff] }
 0x2a7   : > { %5208 = vmatprep.subr.mxu1 %v5771_v0 }
 0x2a8   : > { %v972_v35 = vpop.permute.xlu1 %971 }
 0x2a9   : > { %5201 = vmatmul.mubr.msk.f32.vlgmr.msra.gmra.mxu1 %vm310_vm2, %v972_v35 }
 0x2aa   : > { %5216 = vmatprep.mubr.msk.f32.mxu1 %vm5772_vm0, %v5771_v0  ;;  %5209 = vmatpush3.msra.mxu1 %v1156_v29 }
 0x2ab   : > { %5210 = vmatprep.subr.mxu1 %v5771_v0 }
 0x2ac   : > { %5211 = vmatpush3.msra.mxu1 %v1155_v30 }
 0x2ad   : > { %5212 = vmatprep.subr.mxu1 %v5771_v0 }
 0x2ae   : > { %5213 = vmatpush3.msra.mxu1 %v1154_v31 }
 0x2af   : > { %5214 = vmatprep.subr.mxu1 %v5771_v0 }
 0x2b0   : > { %5215 = vmatpush3.msra.mxu1 %v1153_v33 }
 0x2b1   : > { %5230 = vmatprep.subr.mxu1 %v5771_v0 }
 0x360   : > { %v547_v36 = vpop.f32.mrf.mxu0 }
 0x361   : > { %v551_v37 = vmul.f32 0.35355338, %v547_v36  ;;  %v713_v38 = vpop.f32.mrf.mxu1 }
 0x362   : > { %v717_v39 = vmul.f32 0.35355338, %v713_v38  ;;  %v5172_v40 = vpop.f32.mrf.mxu0 }
 0x363   : > { %v5182_v41 = vpop.f32.mrf.mxu1  ;;  %v552_v42 = vsel %vm310_vm2, %v551_v37, -inf }
 0x364   : > { %553 = vmax.xlane.f32.xlu0 %v552_v42  ;;  %v718_v43 = vsel %vm310_vm2, %v717_v39, -inf }
 0x365   : > { %719 = vmax.xlane.f32.xlu1 %v718_v43  ;;  %v879_v44 = vpop.f32.mrf.mxu1 }
 0x366   : > { %v883_v45 = vmul.f32 0.35355338, %v879_v44 }
 0x367   : > { %v5192_v46 = vpop.f32.mrf.mxu1 }
 0x368   : > { %v884_v47 = vsel %vm310_vm2, %v883_v45, -inf }
 0x369   : > { %885 = vmax.xlane.f32.xlu0 %v884_v47  ;;  %v1045_v48 = vpop.f32.mrf.mxu1  ;;  %v1157_v47 = vld [vmem:[#allocation2 + $0x78] sm:$0xff] }
 0x36a   : > { %v1049_v49 = vmul.f32 0.35355338, %v1045_v48  ;;  %v1161_v48 = vrot.slane %v1157_v47, %v5929_v23  ;;  %v1433_v47 = vld [vmem:[#allocation2 + $0x100] sm:$0xff] }
 0x36b   : > { %v5202_v50 = vpop.f32.mrf.mxu1 }
 0x36c   : > { %v1050_v51 = vsel %vm310_vm2, %v1049_v49, -inf }
 0x36d   : > { %1051 = vmax.xlane.f32.xlu0 %v1050_v51 }
 0x376   : > { %563 = vrot.lane.b32.xlu1 %v5932_v27, %s6495_s16 }
 0x3ed   : > { %v554_v52 = vpop.xlane.xlu0 %553 }
 0x3ee   : > { %v555_v53 = vsub.f32 %v551_v37, %v554_v52  ;;  %v720_v54 = vpop.xlane.xlu1 %719 }
 0x3ef   : > { %v721_v55 = vsub.f32 %v717_v39, %v720_v54 }
 0x3f0   : > { %v556_v56 = vmul.f32 1.442695, %v555_v53 }
 0x3f1   : > { %v722_v57 = vmul.f32 1.442695, %v721_v55 }
 0x3f2   : > { %5594 = vpow2.f32 %v556_v56  ;;  %v564_v58 = vpop.permute.xlu1 %563  ;;  %v886_v59 = vpop.xlane.xlu0 %885 }
 0x3f3   : > { %5596 = vpow2.f32 %v722_v57  ;;  %v887_v60 = vsub.f32 %v883_v45, %v886_v59  ;;  %5174 = vmatpush3.msra.mxu0 %v564_v58  ;;  %v1265_v59 = vld [vmem:[#allocation2 + $0x98] sm:$0xff] }
 0x3f4   : > { %5183 = vmatprep.subr.mxu0 %v5771_v0 }
 0x3f5   : > { %v888_v61 = vmul.f32 1.442695, %v887_v60  ;;  %v1264_v60 = vld [vmem:[#allocation2 + $0x90] sm:$0xff] }
 0x3f6   : > { %v1052_v62 = vpop.xlane.xlu0 %1051 }
 0x3f7   : > { %5598 = vpow2.f32 %v888_v61  ;;  %v1053_v63 = vsub.f32 %v1049_v49, %v1052_v62  ;;  %v1263_v61 = vld [vmem:[#allocation2 + $0x88] sm:$0xff]  ;;  %v1352_v62 = vld [vmem:[#allocation2 + $0xe0] sm:$0xff] }
 0x3f9   : > { %v1054_v1 = vmul.f32 1.442695, %v1053_v63  ;;  %v1351_v63 = vld [vmem:[#allocation2 + $0xd8] sm:$0xff] }
 0x3fb   : > { %5600 = vpow2.f32 %v1054_v1  ;;  %v1350_v1 = vld [vmem:[#allocation2 + $0xd0] sm:$0xff] }
 0x3ff   : > { %v5595_v2 = vpop.eup %5594 }
 0x400   : > { %v5597_v3 = vpop.eup %5596  ;;  %v558_v4 = vsel %vm310_vm2, %v5595_v2, 0.0 }
 0x401   : > { %559 = vadd.xlane.f32.xlu1 %v558_v4  ;;  %v724_v5 = vsel %vm310_vm2, %v5597_v3, 0.0 }
 0x402   : > { %725 = vadd.xlane.f32.xlu0 %v724_v5 }
 0x404   : > { %v5599_v6 = vpop.eup %5598 }
 0x405   : > { %v890_v7 = vsel %vm310_vm2, %v5599_v6, 0.0 }
 0x406   : > { %891 = vadd.xlane.f32.xlu1 %v890_v7  ;;  %v1236_v7 = vld [vmem:[#allocation2 + $0xf0] sm:$0xff] }
 0x408   : > { %v5601_v8 = vpop.eup %5600 }
 0x409   : > { %v1056_v9 = vsel %vm310_vm2, %v5601_v8, 0.0 }
 0x40a   : > { %1057 = vadd.xlane.f32.xlu0 %v1056_v9  ;;  %v1255_v9 = vrot.slane %v1236_v7, %v5929_v23 }
 0x417   : > { %895 = vrot.lane.b32.xlu1 %v5932_v27, %s6494_s17 }
 0x41b   : > { %1061 = vrot.lane.b32.xlu1 %v5932_v27, %s6493_s23 }
 0x420   : > { %729 = vrot.lane.b32.xlu0 %v5932_v27, %s6496_s25 }
 0x48a   : > { %v560_v10 = vpop.xlane.xlu1 %559 }
 0x48b   : > { %5602 = vrcp.f32 %v560_v10  ;;  %v726_v11 = vpop.xlane.xlu0 %725 }
 0x48c   : > { %5604 = vrcp.f32 %v726_v11 }
 0x48f   : > { %v892_v12 = vpop.xlane.xlu1 %891 }
 0x490   : > { %5606 = vrcp.f32 %v892_v12 }
 0x493   : > { %v1058_v13 = vpop.xlane.xlu0 %1057  ;;  %v896_v18 = vpop.permute.xlu1 %895 }
 0x494   : > { %5608 = vrcp.f32 %v1058_v13 }
 0x497   : > { %v730_v17 = vpop.permute.xlu0 %729  ;;  %v1062_v27 = vpop.permute.xlu1 %1061 }
 0x498   : > { %v5603_v14 = vpop.eup %5602 }
 0x499   : > { %v562_v15 = vmul.f32 %v5603_v14, %v5595_v2  ;;  %v5605_v16 = vpop.eup %5604  ;;  %v1349_v2 = vld [vmem:[#allocation2 + $0xc8] sm:$0xff] }
 0x49a   : > { %v728_v20 = vmul.f32 %v5605_v16, %v5597_v3  ;;  %v1348_v3 = vld [vmem:[#allocation2 + $0xc0] sm:$0xff]  ;;  %v1346_v16 = vld [vmem:[#allocation2 + $0xb0] sm:$0xff] }
 0x49b   : > { %5176 = vmatmul.mubr.msk.f32.vlgmr.msra.gmra.mxu0 %vm310_vm2, %v562_v15  ;;  %v1347_v15 = vld [vmem:[#allocation2 + $0xb8] sm:$0xff] }
 0x49c   : > { %5184 = vmatpush3.msra.mxu0 %v730_v17  ;;  %5185 = vmatprep.mubr.msk.f32.mxu0 %vm5772_vm0, %v5771_v0  ;;  %v1345_v17 = vld [vmem:[#allocation2 + $0xa8] sm:$0xff] }
 0x49d   : > { %5193 = vmatprep.subr.mxu0 %v5771_v0  ;;  %v5607_v24 = vpop.eup %5606 }
 0x49e   : > { %v894_v25 = vmul.f32 %v5607_v24, %v5599_v6 }
 0x49f   : > { %5186 = vmatmul.mubr.msk.f32.vlgmr.msra.gmra.mxu0 %vm310_vm2, %v728_v20 }
 0x4a0   : > { %5194 = vmatpush3.msra.mxu0 %v896_v18  ;;  %5195 = vmatprep.mubr.msk.f32.mxu0 %vm5772_vm0, %v5771_v0  ;;  %v1266_v18 = vld [vmem:[#allocation2 + $0xa0] sm:$0xff] }
 0x4a1   : > { %5203 = vmatprep.subr.mxu0 %v5771_v0  ;;  %v5609_v26 = vpop.eup %5608  ;;  %v1270_v20 = vrot.slane %v1266_v18, %v5929_v23 }
 0x4a2   : > { %v1060_v28 = vmul.f32 %v5609_v26, %v5601_v8  ;;  %v1237_v8 = vld [vmem:[#allocation2 + $0xf8] sm:$0xff] }
 0x4a3   : > { %5196 = vmatmul.mubr.msk.f32.vlgmr.msra.gmra.mxu0 %vm310_vm2, %v894_v25  ;;  %v1260_v12 = vrot.slane %v1237_v8, %v5929_v23 }
 0x4a4   : > { %5204 = vmatpush3.msra.mxu0 %v1062_v27  ;;  %5205 = vmatprep.mubr.msk.f32.mxu0 %vm5772_vm0, %v5771_v0 }
 0x4a5   : > { %5219 = vmatprep.subr.mxu0 %v5771_v0 }
 0x4a7   : > { %5206 = vmatmul.mubr.msk.f32.vlgmr.msra.gmra.mxu0 %vm310_vm2, %v1060_v28  ;;  %v1353_v28 = vld [vmem:[#allocation2 + $0xe8] sm:$0xff] }
 0x4a8   : > { %5227 = vmatprep.mubr.msk.f32.mxu0 %vm5772_vm0, %v5771_v0  ;;  %5220 = vmatpush3.msra.mxu0 %v1265_v59  ;;  %v1357_v29 = vrot.slane %v1353_v28, %v5929_v23 }
 0x4a9   : > { %5221 = vmatprep.subr.mxu0 %v5771_v0 }
 0x4aa   : > { %5222 = vmatpush3.msra.mxu0 %v1264_v60 }
 0x4ab   : > { %5223 = vmatprep.subr.mxu0 %v5771_v0 }
 0x4ac   : > { %5224 = vmatpush3.msra.mxu0 %v1263_v61 }
 0x4ad   : > { %5225 = vmatprep.subr.mxu0 %v5771_v0 }
 0x55b   : > { %v635_v32 = vpop.f32.mrf.mxu0 }
 0x55d   : > { %v5177_v34 = vpop.f32.mrf.mxu0 }
 0x55f   : > { %v801_v35 = vpop.f32.mrf.mxu0 }
 0x560   : > { %1138 = vrot.lane.b32.xlu0 %v801_v35, %s5775_s7 }
 0x561   : > { %v5187_v36 = vpop.f32.mrf.mxu0 }
 0x563   : > { %v967_v37 = vpop.f32.mrf.mxu0 }
 0x564   : > { %1142 = vrot.lane.b32.xlu1 %v967_v37, %s6491_s26 }
 0x565   : > { %v5197_v38 = vpop.f32.mrf.mxu0 }
 0x567   : > { %v1133_v39 = vpop.f32.mrf.mxu0 }
 0x568   : > { %1146 = vrot.lane.b32.xlu0 %v1133_v39, %s6489_s30 }
 0x569   : > { %v5207_v40 = vpop.f32.mrf.mxu0 }
 0x56a   : > { %v1461_v40 = vld [vmem:[#allocation2 + $0x128] sm:$0xff] }
 0x5d2   : > { %v1139_v41 = vpop.permute.xlu0 %1138 }
 0x5d3   : > { %v1149_v43 = vsel %vm310_vm2, %v635_v32, %v1139_v41  ;;  %v1460_v41 = vld [vmem:[#allocation2 + $0x120] sm:$0xff] }
 0x5d6   : > { %v1143_v42 = vpop.permute.xlu1 %1142 }
 0x5d7   : > { %v1150_v44 = vsel %vm317_vm4, %v1149_v43, %v1143_v42  ;;  %v1459_v42 = vld [vmem:[#allocation2 + $0x118] sm:$0xff]  ;;  %v1458_v43 = vld [vmem:[#allocation2 + $0x110] sm:$0xff] }
 0x5da   : > { %v1147_v45 = vpop.permute.xlu0 %1146 }
 0x5db   : > { %v1152_v46 = vsel %vm1151_vm6, %v1150_v44, %v1147_v45 }
 0x5dc   : > { %5217 = vmatmul.mubr.msk.f32.vlgmr.msra.gmra.mxu1 %vm400_vm5, %v1152_v46 }
 0x5dd   : > { %5246 = vmatprep.mubr.msk.f32.mxu1 %vm5772_vm0, %v5771_v0  ;;  %5231 = vmatpush3.msra.mxu1 %v1352_v62 }
 0x5de   : > { %5232 = vmatprep.subr.mxu1 %v5771_v0 }
 0x5df   : > { %5233 = vmatpush3.msra.mxu1 %v1351_v63 }
 0x5e0   : > { %5234 = vmatprep.subr.mxu1 %v5771_v0 }
 0x5e1   : > { %5235 = vmatpush3.msra.mxu1 %v1350_v1 }
 0x5e2   : > { %5236 = vmatprep.subr.mxu1 %v5771_v0 }
 0x5e3   : > { %5237 = vmatpush3.msra.mxu1 %v1349_v2 }
 0x5e4   : > { %5238 = vmatprep.subr.mxu1 %v5771_v0 }
 0x5e5   : > { %5239 = vmatpush3.msra.mxu1 %v1348_v3 }
 0x5e6   : > { %5240 = vmatprep.subr.mxu1 %v5771_v0 }
 0x5e7   : > { %5241 = vmatpush3.msra.mxu1 %v1347_v15 }
 0x5e8   : > { %5242 = vmatprep.subr.mxu1 %v5771_v0 }
 0x5e9   : > { %5243 = vmatpush3.msra.mxu1 %v1346_v16 }
 0x5ea   : > { %5244 = vmatprep.subr.mxu1 %v5771_v0 }
 0x5eb   : > { %5245 = vmatpush3.msra.mxu1 %v1345_v17 }
 0x5ec   : > { %5270 = vmatprep.subr.mxu1 %v5771_v0 }
 0x69c   : > { %v1231_v49 = vpop.f32.mrf.mxu1 }
 0x69d   : > { %v1232_v50 = vadd.f32 %v1231_v49, %v1161_v48  ;;  %v1434_v48 = vld [vmem:[#allocation2 + $0x108] sm:$0xff]  ;;  %v1451_v49 = vrot.slane %v1433_v47, %v5929_v23 }
 0x69e   : > { %v5218_v51 = vpop.f32.mrf.mxu1 }
 0x69f   : > { %v1235_v52 = vadd.f32 %v1232_v50, %v5919_v19  ;;  %v1262_v19 = vld [vmem:[#allocation2 + $0x80] sm:$0xff] }
 0x6a0   : > { %5226 = vmatpush3.msra.mxu0 %v1262_v19 }
 0x6a1   : > { %v1238_v53 = vsel %vm400_vm5, %v1235_v52, 0.0  ;;  %5249 = vmatprep.subr.mxu0 %v5771_v0 }
 0x6a2   : > { %1239 = vadd.xlane.f32.xlu1 %v1238_v53 }
 0x72b   : > { %v1240_v54 = vpop.xlane.xlu1 %1239 }
 0x72c   : > { %v1242_v55 = vmul.f32 0.03125, %v1240_v54 }
 0x72e   : > { %v1243_v56 = vsub.f32 %v1235_v52, %v1242_v55  ;;  %v1456_v52 = vrot.slane %v1434_v48, %v5929_v23  ;;  %v1462_v55 = vld [vmem:[#allocation2 + $0x130] sm:$0xff] }
 0x730   : > { %v1244_v57 = vmul.f32 %v1243_v56, %v1243_v56 }
 0x732   : > { %v1245_v58 = vsel %vm400_vm5, %v1244_v57, 0.0 }
 0x733   : > { %1246 = vadd.xlane.f32.xlu0 %v1245_v58 }
 0x7bc   : > { %v1247_v4 = vpop.xlane.xlu0 %1246 }
 0x7bd   : > { %v1248_v5 = vmul.f32 0.03125, %v1247_v4 }
 0x7bf   : > { %v1249_v6 = vadd.f32 1e-05, %v1248_v5 }
 0x7c1   : > { %5610 = vrsqrt.f32 %v1249_v6 }
 0x7ce   : > { %v5611_v10 = vpop.eup %5610 }
 0x7cf   : > { %v1251_v11 = vmul.f32 %v5611_v10, %v1243_v56  ;;  %v1466_v56 = vrot.slane %v1462_v55, %v5929_v23 }
 0x7d1   : > { %v1256_v13 = vmul.f32 %v1255_v9, %v1251_v11 }
 0x7d3   : > { %v1261_v14 = vadd.f32 %v1260_v12, %v1256_v13 }
 0x7d5   : > { %5228 = vmatmul.mubr.msk.f32.vlgmr.msra.gmra.mxu0 %vm400_vm5, %v1261_v14 }
 0x7d6   : > { %5257 = vmatprep.mubr.msk.f32.mxu0 %vm5772_vm0, %v5771_v0  ;;  %5250 = vmatpush3.msra.mxu0 %v1461_v40 }
 0x7d7   : > { %5251 = vmatprep.subr.mxu0 %v5771_v0 }
 0x7d8   : > { %5252 = vmatpush3.msra.mxu0 %v1460_v41 }
 0x7d9   : > { %5253 = vmatprep.subr.mxu0 %v5771_v0 }
 0x7da   : > { %5254 = vmatpush3.msra.mxu0 %v1459_v42 }
 0x7db   : > { %5255 = vmatprep.subr.mxu0 %v5771_v0 }
 0x7dc   : > { %5256 = vmatpush3.msra.mxu0 %v1458_v43 }
 0x7dd   : > { %5260 = vmatprep.subr.mxu0 %v5771_v0 }
 0x895   : > { %v1340_v24 = vpop.f32.mrf.mxu0 }
 0x896   : > { %v1341_v25 = vadd.f32 %v1340_v24, %v1270_v20 }
 0x897   : > { %v5229_v26 = vpop.f32.mrf.mxu0 }
 0x898   : > { %v1344_v27 = vmax.f32 %v1341_v25, 0.0 }
 0x89a   : > { %5247 = vmatmul.mubr.msk.f32.vlgmr.msra.gmra.mxu1 %vm1358_vm7, %v1344_v27 }
 0x89b   : > { %5272 = vmatprep.mubr.msk.f32.mxu1 %vm5772_vm0, %v5771_v0 }
 0x95a   : > { %v1428_v30 = vpop.f32.mrf.mxu1 }
 0x95b   : > { %v1429_v31 = vadd.f32 %v1428_v30, %v1357_v29 }
 0x95c   : > { %v5248_v32 = vpop.f32.mrf.mxu1 }
 0x95d   : > { %v1432_v33 = vadd.f32 %v1429_v31, %v1261_v14 }
 0x95f   : > { %v1435_v34 = vsel %vm400_vm5, %v1432_v33, 0.0 }
 0x960   : > { %1436 = vadd.xlane.f32.xlu0 %v1435_v34 }
 0x9e9   : > { %v1437_v35 = vpop.xlane.xlu0 %1436 }
 0x9ea   : > { %v1438_v36 = vmul.f32 0.03125, %v1437_v35 }
 0x9ec   : > { %v1439_v37 = vsub.f32 %v1432_v33, %v1438_v36 }
 0x9ee   : > { %v1440_v38 = vmul.f32 %v1439_v37, %v1439_v37 }
 0x9f0   : > { %v1441_v39 = vsel %vm400_vm5, %v1440_v38, 0.0 }
 0x9f1   : > { %1442 = vadd.xlane.f32.xlu1 %v1441_v39 }
 0xa7a   : > { %v1443_v44 = vpop.xlane.xlu1 %1442 }
 0xa7b   : > { %v1444_v45 = vmul.f32 0.03125, %v1443_v44 }
 0xa7d   : > { %v1445_v46 = vadd.f32 1e-05, %v1444_v45 }
 0xa7f   : > { %5612 = vrsqrt.f32 %v1445_v46 }
 0xa8c   : > { %v5613_v50 = vpop.eup %5612 }
 0xa8d   : > { %v1447_v51 = vmul.f32 %v5613_v50, %v1439_v37 }
 0xa8f   : > { %v1452_v53 = vmul.f32 %v1451_v49, %v1447_v51 }
 0xa91   : > { %v6048_v54 = vadd.f32 %v1456_v52, %v1452_v53 }
 0xa93   : > { %5258 = vmatmul.mubr.msk.f32.vlgmr.msra.gmra.mxu0 %vm400_vm5, %v6048_v54 }
 0xa94   : > { %5262 = vmatprep.mubr.msk.f32.mxu0 %vm5772_vm0, %v5771_v0 }
 0xb53   : > { %v1536_v57 = vpop.f32.mrf.mxu0 }
 0xb54   : > { %v6055_v58 = vadd.f32 %v1536_v57, %v1466_v56 }
 0xb55   : > { %v5259_v59 = vpop.f32.mrf.mxu0 }
 0xb56   : > { %1707 = vrot.lane.b32.xlu1 %v6055_v58, %s5776_s8  ;;  %1541 = vrot.lane.b32.xlu0 %v6055_v58, %s5777_s9 }
 0xb5a   : > { %1705 = vrot.lane.b32.xlu1 %v6055_v58, %s5779_s11  ;;  %1873 = vrot.lane.b32.xlu0 %v6055_v58, %s5778_s10 }
 0xb5e   : > { %1871 = vrot.lane.b32.xlu1 %v6055_v58, %s5781_s13  ;;  %2039 = vrot.lane.b32.xlu0 %v6055_v58, %s5780_s12 }
 0xb62   : > { %2037 = vrot.lane.b32.xlu1 %v6055_v58, %s5782_s15 }
 0xbc8   : > { %v1708_v60 = vpop.permute.xlu1 %1707  ;;  %v1542_v61 = vpop.permute.xlu0 %1541 }
 0xbc9   : > { %5261 = vmatpush3.xpose.msk.msra.mxu0 %vm310_vm2, %v1542_v61  ;;  %5271 = vmatpush3.xpose.msk.msra.mxu1 %vm310_vm2, %v1708_v60  ;;  %v2221_v60 = vld [vmem:[#allocation2 + $0x150] sm:$0xff]  ;;  %v2220_v61 = vld [vmem:[#allocation2 + $0x148] sm:$0xff] }
 0xbca   : > { %5280 = vmatprep.subr.mxu1 %v5771_v0  ;;  %5265 = vmatprep.subr.mxu0 %v5771_v0 }
 0xbcc   : > { %v1706_v19 = vpop.permute.xlu1 %1705  ;;  %5263 = vmatmul.mubr.msk.f32.vlgmr.msra.gmra.mxu0 %vm310_vm2, %v6055_v58  ;;  %v1874_v62 = vpop.permute.xlu0 %1873 }
 0xbcd   : > { %5273 = vmatmul.mubr.msk.f32.vlgmr.msra.gmra.mxu1 %vm310_vm2, %v1706_v19  ;;  %5267 = vmatprep.mubr.msk.f32.mxu0 %vm5772_vm0, %v5771_v0  ;;  %v2219_v19 = vld [vmem:[#allocation2 + $0x140] sm:$0xff] }
 0xbce   : > { %5281 = vmatpush3.xpose.msk.msra.mxu1 %vm310_vm2, %v1874_v62  ;;  %5282 = vmatprep.mubr.msk.f32.mxu1 %vm5772_vm0, %v5771_v0 }
 0xbcf   : > { %5290 = vmatprep.subr.mxu1 %v5771_v0 }
 0xbd0   : > { %v1872_v63 = vpop.permute.xlu1 %1871  ;;  %v2040_v1 = vpop.permute.xlu0 %2039 }
 0xbd1   : > { %5283 = vmatmul.mubr.msk.f32.vlgmr.msra.gmra.mxu1 %vm310_vm2, %v1872_v63  ;;  %v2218_v63 = vld [vmem:[#allocation2 + $0x138] sm:$0xff] }
 0xbd2   : > { %5291 = vmatpush3.xpose.msk.msra.mxu1 %vm310_vm2, %v2040_v1  ;;  %5292 = vmatprep.mubr.msk.f32.mxu1 %vm5772_vm0, %v5771_v0 }
 0xbd3   : > { %5300 = vmatprep.subr.mxu1 %v5771_v0 }
 0xbd4   : > { %v2038_v2 = vpop.permute.xlu1 %2037 }
 0xbd5   : > { %5293 = vmatmul.mubr.msk.f32.vlgmr.msra.gmra.mxu1 %vm310_vm2, %v2038_v2 }
 0xbd6   : > { %5308 = vmatprep.mubr.msk.f32.mxu1 %vm5772_vm0, %v5771_v0  ;;  %5301 = vmatpush3.msra.mxu1 %v2221_v60  ;;  %v2569_v60 = vld [vmem:[#allocation2 + $0x18] sm:$0xff] }
 0xbd7   : > { %5302 = vmatprep.subr.mxu1 %v5771_v0 }
 0xbd8   : > { %5303 = vmatpush3.msra.mxu1 %v2220_v61 }
 0xbd9   : > { %5304 = vmatprep.subr.mxu1 %v5771_v0 }
 0xbda   : > { %5305 = vmatpush3.msra.mxu1 %v2219_v19  ;;  %v2411_v19 = vld [vmem:[#allocation2 + $0x198] sm:$0xff] }
 0xbdb   : > { %5306 = vmatprep.subr.mxu1 %v5771_v0 }
 0xbdc   : > { %5307 = vmatpush3.msra.mxu1 %v2218_v63  ;;  %v2410_v63 = vld [vmem:[#allocation2 + $0x190] sm:$0xff] }
 0xbdd   : > { %5322 = vmatprep.subr.mxu1 %v5771_v0 }
 0xc8c   : > { %v1613_v3 = vpop.f32.mrf.mxu0 }
 0xc8d   : > { %v1617_v4 = vmul.f32 0.35355338, %v1613_v3  ;;  %v1779_v5 = vpop.f32.mrf.mxu1 }
 0xc8e   : > { %v1783_v6 = vmul.f32 0.35355338, %v1779_v5  ;;  %v5264_v7 = vpop.f32.mrf.mxu0 }
 0xc8f   : > { %v5274_v8 = vpop.f32.mrf.mxu1  ;;  %v1618_v9 = vsel %vm310_vm2, %v1617_v4, -inf }
 0xc90   : > { %1619 = vmax.xlane.f32.xlu0 %v1618_v9  ;;  %v1784_v10 = vsel %vm310_vm2, %v1783_v6, -inf }
 0xc91   : > { %1785 = vmax.xlane.f32.xlu1 %v1784_v10  ;;  %v1945_v11 = vpop.f32.mrf.mxu1 }
 0xc92   : > { %v1949_v12 = vmul.f32 0.35355338, %v1945_v11 }
 0xc93   : > { %v5284_v13 = vpop.f32.mrf.mxu1 }
 0xc94   : > { %v1950_v14 = vsel %vm310_vm2, %v1949_v12, -inf }
 0xc95   : > { %1951 = vmax.xlane.f32.xlu0 %v1950_v14  ;;  %v2111_v15 = vpop.f32.mrf.mxu1  ;;  %v2222_v14 = vld [vmem:[#allocation2 + $0x158] sm:$0xff] }
 0xc96   : > { %v2115_v16 = vmul.f32 0.35355338, %v2111_v15  ;;  %v2226_v15 = vrot.slane %v2222_v14, %v5929_v23 }
 0xc97   : > { %v5294_v17 = vpop.f32.mrf.mxu1 }
 0xc98   : > { %v2116_v18 = vsel %vm310_vm2, %v2115_v16, -inf }
 0xc99   : > { %2117 = vmax.xlane.f32.xlu0 %v2116_v18 }
 0xca2   : > { %1629 = vrot.lane.b32.xlu1 %v6055_v58, %s6495_s16  ;;  %s6503_s16 = smov 48  }
 0xd19   : > { %v1620_v20 = vpop.xlane.xlu0 %1619 }
 0xd1a   : > { %v1621_v24 = vsub.f32 %v1617_v4, %v1620_v20  ;;  %v1786_v25 = vpop.xlane.xlu1 %1785 }
 0xd1b   : > { %v1787_v26 = vsub.f32 %v1783_v6, %v1786_v25 }
 0xd1c   : > { %v1622_v27 = vmul.f32 1.442695, %v1621_v24 }
 0xd1d   : > { %v1788_v28 = vmul.f32 1.442695, %v1787_v26 }
 0xd1e   : > { %5614 = vpow2.f32 %v1622_v27  ;;  %v1630_v29 = vpop.permute.xlu1 %1629  ;;  %v1952_v30 = vpop.xlane.xlu0 %1951 }
 0xd1f   : > { %5616 = vpow2.f32 %v1788_v28  ;;  %v1953_v31 = vsub.f32 %v1949_v12, %v1952_v30  ;;  %5266 = vmatpush3.msra.mxu0 %v1630_v29 }
 0xd20   : > { %5275 = vmatprep.subr.mxu0 %v5771_v0 }
 0xd21   : > { %v1954_v32 = vmul.f32 1.442695, %v1953_v31 }
 0xd22   : > { %v2118_v33 = vpop.xlane.xlu0 %2117 }
 0xd23   : > { %5618 = vpow2.f32 %v1954_v32  ;;  %v2119_v34 = vsub.f32 %v2115_v16, %v2118_v33  ;;  %v2329_v32 = vld [vmem:[#allocation2 + $0x178] sm:$0xff]  ;;  %v2328_v33 = vld [vmem:[#allocation2 + $0x170] sm:$0xff] }
 0xd25   : > { %v2120_v35 = vmul.f32 1.442695, %v2119_v34  ;;  %v2327_v34 = vld [vmem:[#allocation2 + $0x168] sm:$0xff] }
 0xd27   : > { %5620 = vpow2.f32 %v2120_v35  ;;  %v2326_v35 = vld [vmem:[#allocation2 + $0x160] sm:$0xff] }
 0xd2b   : > { %v5615_v36 = vpop.eup %5614 }
 0xd2c   : > { %v5617_v37 = vpop.eup %5616  ;;  %v1624_v38 = vsel %vm310_vm2, %v5615_v36, 0.0 }
 0xd2d   : > { %1625 = vadd.xlane.f32.xlu1 %v1624_v38  ;;  %v1790_v39 = vsel %vm310_vm2, %v5617_v37, 0.0  ;;  %v2414_v38 = vld [vmem:[#allocation2 + $0x1b0] sm:$0xff] }
 0xd2e   : > { %1791 = vadd.xlane.f32.xlu0 %v1790_v39  ;;  %v2413_v39 = vld [vmem:[#allocation2 + $0x1a8] sm:$0xff] }
 0xd30   : > { %v5619_v40 = vpop.eup %5618 }
 0xd31   : > { %v1956_v41 = vsel %vm310_vm2, %v5619_v40, 0.0 }
 0xd32   : > { %1957 = vadd.xlane.f32.xlu1 %v1956_v41 }
 0xd34   : > { %v5621_v42 = vpop.eup %5620 }
 0xd35   : > { %v2122_v43 = vsel %vm310_vm2, %v5621_v42, 0.0 }
 0xd36   : > { %2123 = vadd.xlane.f32.xlu0 %v2122_v43 }
 0xd43   : > { %1961 = vrot.lane.b32.xlu1 %v6055_v58, %s6494_s17  ;;  %s6504_s17 = smov 40  }
 0xd47   : > { %2127 = vrot.lane.b32.xlu1 %v6055_v58, %s6493_s23  ;;  %s281_s23 = scalar_lea.vmem %s6484_s2, %s5894_s14 }
 0xd48   : > { %v2546_v25 = vld [vmem:[%s281_s23] sm:$0xff]  ;;  %s6505_s23 = smov 16  }
 0xd49   : > { %v2552_v26 = vrot.slane %v2546_v25, 1 }
 0xd4c   : > { %1795 = vrot.lane.b32.xlu0 %v6055_v58, %s6496_s25  ;;  %s285_s25 = scalar_lea.vmem %s6485_s3, %s5894_s14  ;;  %s6501_s14 = smov 56  }
 0xd4d   : > { %v2547_v27 = vld [vmem:[%s285_s25] sm:$0xff]  ;;  %s6506_s25 = smov 24  }
 0xdb6   : > { %v1626_v44 = vpop.xlane.xlu1 %1625 }
 0xdb7   : > { %5622 = vrcp.f32 %v1626_v44  ;;  %v1792_v45 = vpop.xlane.xlu0 %1791  ;;  %v2301_v44 = vld [vmem:[#allocation2 + $0x1d0] sm:$0xff] }
 0xdb8   : > { %5624 = vrcp.f32 %v1792_v45  ;;  %v2302_v45 = vld [vmem:[#allocation2 + $0x1d8] sm:$0xff] }
 0xdbb   : > { %v1958_v46 = vpop.xlane.xlu1 %1957 }
 0xdbc   : > { %5626 = vrcp.f32 %v1958_v46  ;;  %v2319_v46 = vrot.slane %v2301_v44, %v5929_v23 }
 0xdbf   : > { %v2124_v47 = vpop.xlane.xlu0 %2123  ;;  %v1962_v52 = vpop.permute.xlu1 %1961 }
 0xdc0   : > { %5628 = vrcp.f32 %v2124_v47 }
 0xdc3   : > { %v1796_v51 = vpop.permute.xlu0 %1795  ;;  %v2128_v58 = vpop.permute.xlu1 %2127 }
 0xdc4   : > { %v5623_v48 = vpop.eup %5622 }
 0xdc5   : > { %v1628_v49 = vmul.f32 %v5623_v48, %v5615_v36  ;;  %v5625_v50 = vpop.eup %5624  ;;  %v2416_v36 = vld [vmem:[#allocation2 + $0x1c0] sm:$0xff]  ;;  %v2549_v48 = vrot.slane %v2546_v25, 7 }
 0xdc6   : > { %v1794_v53 = vmul.f32 %v5625_v50, %v5617_v37  ;;  %v2415_v37 = vld [vmem:[#allocation2 + $0x1b8] sm:$0xff] }
 0xdc7   : > { %5268 = vmatmul.mubr.msk.f32.vlgmr.msra.gmra.mxu0 %vm310_vm2, %v1628_v49 }
 0xdc8   : > { %5276 = vmatpush3.msra.mxu0 %v1796_v51  ;;  %5277 = vmatprep.mubr.msk.f32.mxu0 %vm5772_vm0, %v5771_v0 }
 0xdc9   : > { %5285 = vmatprep.subr.mxu0 %v5771_v0  ;;  %v5627_v55 = vpop.eup %5626 }
 0xdca   : > { %v1960_v56 = vmul.f32 %v5627_v55, %v5619_v40  ;;  %v2412_v40 = vld [vmem:[#allocation2 + $0x1a0] sm:$0xff] }
 0xdcb   : > { %5278 = vmatmul.mubr.msk.f32.vlgmr.msra.gmra.mxu0 %vm310_vm2, %v1794_v53 }
 0xdcc   : > { %5286 = vmatpush3.msra.mxu0 %v1962_v52  ;;  %5287 = vmatprep.mubr.msk.f32.mxu0 %vm5772_vm0, %v5771_v0  ;;  %v2324_v52 = vrot.slane %v2302_v45, %v5929_v23 }
 0xdcd   : > { %5295 = vmatprep.subr.mxu0 %v5771_v0  ;;  %v5629_v57 = vpop.eup %5628 }
 0xdce   : > { %v2126_v59 = vmul.f32 %v5629_v57, %v5621_v42  ;;  %v2570_v57 = vld [vmem:[#allocation2 + $0x20] sm:$0xff] }
 0xdcf   : > { %5288 = vmatmul.mubr.msk.f32.vlgmr.msra.gmra.mxu0 %vm310_vm2, %v1960_v56 }
 0xdd0   : > { %5296 = vmatpush3.msra.mxu0 %v2128_v58  ;;  %5297 = vmatprep.mubr.msk.f32.mxu0 %vm5772_vm0, %v5771_v0 }
 0xdd1   : > { %5311 = vmatprep.subr.mxu0 %v5771_v0 }
 0xdd3   : > { %5298 = vmatmul.mubr.msk.f32.vlgmr.msra.gmra.mxu0 %vm310_vm2, %v2126_v59 }
 0xdd4   : > { %5319 = vmatprep.mubr.msk.f32.mxu0 %vm5772_vm0, %v5771_v0  ;;  %5312 = vmatpush3.msra.mxu0 %v2329_v32  ;;  %v2730_v32 = vand.u32 127, %v396_v21 }
 0xdd5   : > { %5313 = vmatprep.subr.mxu0 %v5771_v0 }
 0xdd6   : > { %5314 = vmatpush3.msra.mxu0 %v2328_v33  ;;  %vm2809_vm8 = vcmp.le.s32.totalorder %v2730_v32, %v5926_v22 }
 0xdd7   : > { %5315 = vmatprep.subr.mxu0 %v5771_v0 }
 0xdd8   : > { %5316 = vmatpush3.msra.mxu0 %v2327_v34 }
 0xdd9   : > { %5317 = vmatprep.subr.mxu0 %v5771_v0 }
 0xdda   : > { %5318 = vmatpush3.msra.mxu0 %v2326_v35 }
 0xddb   : > { %5341 = vmatprep.subr.mxu0 %v5771_v0 }
 0xe87   : > { %v1701_v62 = vpop.f32.mrf.mxu0 }
 0xe89   : > { %v5269_v1 = vpop.f32.mrf.mxu0 }
 0xe8a   : > { %v2647_v1 = vld [vmem:[#allocation2 + $0x210] sm:$0xff] }
 0xe8b   : > { %v1867_v2 = vpop.f32.mrf.mxu0 }
 0xe8c   : > { %2204 = vrot.lane.b32.xlu0 %v1867_v2, %s5775_s7  ;;  %v2409_v2 = vld [vmem:[#allocation2 + $0x188] sm:$0xff] }
 0xe8d   : > { %v5279_v3 = vpop.f32.mrf.mxu0 }
 0xe8e   : > { %v2646_v3 = vld [vmem:[#allocation2 + $0x208] sm:$0xff] }
 0xe8f   : > { %v2033_v4 = vpop.f32.mrf.mxu0 }
 0xe90   : > { %2208 = vrot.lane.b32.xlu1 %v2033_v4, %s6491_s26  ;;  %v2645_v4 = vld [vmem:[#allocation2 + $0x200] sm:$0xff] }
 0xe91   : > { %v5289_v5 = vpop.f32.mrf.mxu0 }
 0xe92   : > { %v2330_v5 = vld [vmem:[#allocation2 + $0x180] sm:$0xff] }
 0xe93   : > { %v2199_v6 = vpop.f32.mrf.mxu0 }
 0xe94   : > { %2212 = vrot.lane.b32.xlu0 %v2199_v6, %s6489_s30  ;;  %s6500_s30 = smov 4   ;;  %v2334_v6 = vrot.slane %v2330_v5, %v5929_v23 }
 0xe95   : > { %v5299_v7 = vpop.f32.mrf.mxu0 }
 0xefe   : > { %v2205_v8 = vpop.permute.xlu0 %2204 }
 0xeff   : > { %v2215_v10 = vsel %vm310_vm2, %v1701_v62, %v2205_v8  ;;  %v2648_v62 = vld [vmem:[#allocation2 + $0x218] sm:$0xff] }
 0xf02   : > { %v2209_v9 = vpop.permute.xlu1 %2208 }
 0xf03   : > { %v2216_v11 = vsel %vm317_vm4, %v2215_v10, %v2209_v9  ;;  %v2571_v10 = vld [vmem:[#allocation2 + $0x28] sm:$0xff] }
 0xf06   : > { %v2213_v12 = vpop.permute.xlu0 %2212 }
 0xf07   : > { %v2217_v13 = vsel %vm1151_vm6, %v2216_v11, %v2213_v12 }
 0xf08   : > { %5309 = vmatmul.mubr.msk.f32.vlgmr.msra.gmra.mxu1 %vm400_vm5, %v2217_v13 }
 0xf09   : > { %5338 = vmatprep.mubr.msk.f32.mxu1 %vm5772_vm0, %v5771_v0  ;;  %5323 = vmatpush3.msra.mxu1 %v2416_v36 }
 0xf0a   : > { %5324 = vmatprep.subr.mxu1 %v5771_v0 }
 0xf0b   : > { %5325 = vmatpush3.msra.mxu1 %v2415_v37 }
 0xf0c   : > { %5326 = vmatprep.subr.mxu1 %v5771_v0 }
 0xf0d   : > { %5327 = vmatpush3.msra.mxu1 %v2414_v38 }
 0xf0e   : > { %5328 = vmatprep.subr.mxu1 %v5771_v0 }
 0xf0f   : > { %5329 = vmatpush3.msra.mxu1 %v2413_v39 }
 0xf10   : > { %5330 = vmatprep.subr.mxu1 %v5771_v0 }
 0xf11   : > { %5331 = vmatpush3.msra.mxu1 %v2412_v40 }
 0xf12   : > { %5332 = vmatprep.subr.mxu1 %v5771_v0 }
 0xf13   : > { %5333 = vmatpush3.msra.mxu1 %v2411_v19 }
 0xf14   : > { %5334 = vmatprep.subr.mxu1 %v5771_v0 }
 0xf15   : > { %5335 = vmatpush3.msra.mxu1 %v2410_v63 }
 0xf16   : > { %5336 = vmatprep.subr.mxu1 %v5771_v0 }
 0xf17   : > { %5337 = vmatpush3.msra.mxu1 %v2409_v2 }
 0xf18   : > { %5364 = vmatprep.subr.mxu1 %v5771_v0 }
 0xfc8   : > { %v2296_v16 = vpop.f32.mrf.mxu1 }
 0xfc9   : > { %v2297_v17 = vadd.f32 %v2296_v16, %v2226_v15  ;;  %v2649_v15 = vld [vmem:[#allocation2 + $0x220] sm:$0xff] }
 0xfca   : > { %v5310_v18 = vpop.f32.mrf.mxu1  ;;  %v2653_v16 = vrot.slane %v2649_v15, %v5929_v23 }
 0xfcb   : > { %v2300_v20 = vadd.f32 %v2297_v17, %v6048_v54 }
 0xfcd   : > { %v2303_v24 = vsel %vm400_vm5, %v2300_v20, 0.0 }
 0xfce   : > { %2304 = vadd.xlane.f32.xlu1 %v2303_v24 }
 0xfdf   : > { %2559 = vrot.lane.b32.xlu1 %v2552_v26, %s5775_s7 }
 0xfe3   : > { %2563 = vrot.lane.b32.xlu1 %v2547_v27, %s5774_s6  ;;  %s6502_s6 = smov 64  }
0x1057   : > { %v2305_v28 = vpop.xlane.xlu1 %2304 }
0x1058   : > { %v2306_v54 = vmul.f32 0.03125, %v2305_v28 }
0x105a   : > { %v2307_v29 = vsub.f32 %v2300_v20, %v2306_v54 }
0x105b   : > { %v2560_v50 = vpop.permute.xlu1 %2559 }
0x105c   : > { %v2308_v30 = vmul.f32 %v2307_v29, %v2307_v29 }
0x105e   : > { %v2309_v31 = vsel %vm400_vm5, %v2308_v30, 0.0 }
0x105f   : > { %2310 = vadd.xlane.f32.xlu0 %v2309_v31  ;;  %v2564_v59 = vpop.permute.xlu1 %2563 }
0x1075   : > { %2555 = vrot.lane.b32.xlu0 %v2546_v25, %s6500_s30 }
0x10e8   : > { %v2311_v41 = vpop.xlane.xlu0 %2310 }
0x10e9   : > { %v2312_v42 = vmul.f32 0.03125, %v2311_v41 }
0x10eb   : > { %v2313_v43 = vadd.f32 1e-05, %v2312_v42 }
0x10ec   : > { %v2556_v51 = vpop.permute.xlu0 %2555 }
0x10ed   : > { %5630 = vrsqrt.f32 %v2313_v43  ;;  %v2566_v55 = vsel %vm308_vm1, %v2549_v48, %v2556_v51 }
0x10ee   : > { %v2567_v58 = vsel %vm310_vm2, %v2566_v55, %v2560_v50 }
0x10ef   : > { %v2568_v61 = vsel %vm312_vm3, %v2567_v58, %v2564_v59 }
0x10fa   : > { %v5631_v47 = vpop.eup %5630 }
0x10fb   : > { %v2315_v49 = vmul.f32 %v5631_v47, %v2307_v29 }
0x10fd   : > { %v2320_v53 = vmul.f32 %v2319_v46, %v2315_v49 }
0x10ff   : > { %v6164_v56 = vadd.f32 %v2324_v52, %v2320_v53 }
0x1101   : > { %5320 = vmatmul.mubr.msk.f32.vlgmr.msra.gmra.mxu0 %vm400_vm5, %v6164_v56 }
0x1102   : > { %5342 = vmatpush3.msra.mxu0 %v2570_v57  ;;  %5345 = vmatprep.mubr.msk.f32.mxu0 %vm5772_vm0, %v5771_v0 }
0x1103   : > { %5343 = vmatprep.subr.mxu0 %v5771_v0 }
0x1104   : > { %5344 = vmatpush3.msra.mxu0 %v2569_v60 }
0x1105   : > { %5346 = vmatmul.mubr.msk.f32.vlgmr.msra.gmra.mxu0 %vm317_vm4, %v2568_v61  ;;  %5348 = vmatprep.subr.mxu0 %v5771_v0 }
0x1106   : > { %5356 = vmatprep.mubr.msk.f32.mxu0 %vm5772_vm0, %v5771_v0  ;;  %5349 = vmatpush3.msra.mxu0 %v2648_v62 }
0x1107   : > { %5350 = vmatprep.subr.mxu0 %v5771_v0 }
0x1108   : > { %5351 = vmatpush3.msra.mxu0 %v2647_v1 }
0x1109   : > { %5352 = vmatprep.subr.mxu0 %v5771_v0 }
0x110a   : > { %5353 = vmatpush3.msra.mxu0 %v2646_v3 }
0x110b   : > { %5354 = vmatprep.subr.mxu0 %v5771_v0 }
0x110c   : > { %5355 = vmatpush3.msra.mxu0 %v2645_v4 }
0x110d   : > { %5359 = vmatprep.subr.mxu0 %v5771_v0 }
0x11c1   : > { %v2404_v7 = vpop.f32.mrf.mxu0 }
0x11c2   : > { %v2405_v8 = vadd.f32 %v2404_v7, %v2334_v6 }
0x11c3   : > { %v5321_v9 = vpop.f32.mrf.mxu0 }
0x11c4   : > { %v2408_v11 = vmax.f32 %v2405_v8, 0.0 }
0x11c5   : > { %v2641_v12 = vpop.f32.mrf.mxu0 }
0x11c6   : > { %v6185_v13 = vadd.f32 %v2641_v12, %v2571_v10  ;;  %5339 = vmatmul.mubr.msk.f32.vlgmr.msra.gmra.mxu1 %vm1358_vm7, %v2408_v11 }
0x11c7   : > { %v5347_v14 = vpop.f32.mrf.mxu0  ;;  %5366 = vmatprep.mubr.msk.f32.mxu1 %vm5772_vm0, %v5771_v0 }
0x11c8   : > { %5357 = vmatmul.mubr.msk.f32.vlgmr.msra.gmra.mxu0 %vm400_vm5, %v6185_v13 }
0x11c9   : > { %5361 = vmatprep.mubr.msk.f32.mxu0 %vm5772_vm0, %v5771_v0 }
0x1286   : > { %v6195_v17 = vpop.f32.mrf.mxu1 }
0x1288   : > { %v5340_v18 = vpop.f32.mrf.mxu1  ;;  %v2723_v20 = vpop.f32.mrf.mxu0 }
0x1289   : > { %v6197_v24 = vadd.f32 %v2723_v20, %v2653_v16 }
0x128a   : > { %v5358_v25 = vpop.f32.mrf.mxu0 }
0x128b   : > { %2900 = vrot.lane.b32.xlu1 %v6197_v24, %s5776_s8  ;;  %2732 = vrot.lane.b32.xlu0 %v6197_v24, %s5777_s9 }
0x128f   : > { %3067 = vrot.lane.b32.xlu1 %v6197_v24, %s5778_s10  ;;  %2898 = vrot.lane.b32.xlu0 %v6197_v24, %s5779_s11 }
0x1293   : > { %3234 = vrot.lane.b32.xlu1 %v6197_v24, %s5780_s12  ;;  %3065 = vrot.lane.b32.xlu0 %v6197_v24, %s5781_s13 }
0x1297   : > { %3232 = vrot.lane.b32.xlu0 %v6197_v24, %s5782_s15 }
0x12fd   : > { %v2901_v26 = vpop.permute.xlu1 %2900  ;;  %v2733_v27 = vpop.permute.xlu0 %2732 }
0x12fe   : > { %5360 = vmatpush3.xpose.msk.msra.mxu0 %vm310_vm2, %v2733_v27 }
0x12ff   : > { %5369 = vmatprep.subr.mxu0 %v5771_v0 }
0x1301   : > { %5362 = vmatmul.mubr.msk.f32.vlgmr.msra.gmra.mxu0 %vm310_vm2, %v6197_v24  ;;  %v2899_v28 = vpop.permute.xlu0 %2898  ;;  %v3068_v54 = vpop.permute.xlu1 %3067 }
0x1302   : > { %5370 = vmatpush3.xpose.msk.msra.mxu0 %vm310_vm2, %v2901_v26  ;;  %5371 = vmatprep.mubr.msk.f32.mxu0 %vm5772_vm0, %v5771_v0 }
0x1303   : > { %5379 = vmatprep.subr.mxu0 %v5771_v0 }
0x1305   : > { %5372 = vmatmul.mubr.msk.f32.vlgmr.msra.gmra.mxu0 %vm310_vm2, %v2899_v28  ;;  %v3066_v29 = vpop.permute.xlu0 %3065  ;;  %v3235_v30 = vpop.permute.xlu1 %3234 }
0x1306   : > { %5380 = vmatpush3.xpose.msk.msra.mxu0 %vm310_vm2, %v3068_v54  ;;  %5381 = vmatprep.mubr.msk.f32.mxu0 %vm5772_vm0, %v5771_v0 }
0x1307   : > { %5389 = vmatprep.subr.mxu0 %v5771_v0 }
0x1309   : > { %5382 = vmatmul.mubr.msk.f32.vlgmr.msra.gmra.mxu0 %vm310_vm2, %v3066_v29  ;;  %v3233_v31 = vpop.permute.xlu0 %3232 }
0x130a   : > { %5390 = vmatpush3.xpose.msk.msra.mxu0 %vm310_vm2, %v3235_v30  ;;  %5391 = vmatprep.mubr.msk.f32.mxu0 %vm5772_vm0, %v5771_v0  ;;  %v3417_v30 = vld [vmem:[#allocation2 + $0x240] sm:$0xff] }
0x130b   : > { %5399 = vmatprep.subr.mxu0 %v5771_v0 }
0x130d   : > { %5392 = vmatmul.mubr.msk.f32.vlgmr.msra.gmra.mxu0 %vm310_vm2, %v3233_v31 }
0x130e   : > { %5407 = vmatprep.mubr.msk.f32.mxu0 %vm5772_vm0, %v5771_v0  ;;  %5400 = vmatpush3.msra.mxu0 %v3417_v30 }
0x130f   : > { %5401 = vmatprep.subr.mxu0 %v5771_v0 }
0x13c1   : > { %v2804_v33 = vpop.f32.mrf.mxu0 }
0x13c2   : > { %v2808_v34 = vmul.f32 0.35355338, %v2804_v33 }
0x13c3   : > { %v5363_v35 = vpop.f32.mrf.mxu0 }
0x13c4   : > { %v2810_v36 = vsel %vm2809_vm8, %v2808_v34, -3.4e+38  ;;  %v3416_v35 = vld [vmem:[#allocation2 + $0x238] sm:$0xff] }
0x13c5   : > { %v2972_v37 = vpop.f32.mrf.mxu0  ;;  %v2811_v38 = vsel %vm310_vm2, %v2810_v36, -inf  ;;  %5402 = vmatpush3.msra.mxu0 %v3416_v35 }
0x13c6   : > { %v2976_v39 = vmul.f32 0.35355338, %v2972_v37  ;;  %2812 = vmax.xlane.f32.xlu1 %v2811_v38  ;;  %5403 = vmatprep.subr.mxu0 %v5771_v0  ;;  %v3414_v37 = vld [vmem:[#allocation2 + $0x228] sm:$0xff] }
0x13c7   : > { %v5373_v40 = vpop.f32.mrf.mxu0 }
0x13c8   : > { %v2977_v41 = vsel %vm2809_vm8, %v2976_v39, -3.4e+38 }
0x13c9   : > { %v3139_v42 = vpop.f32.mrf.mxu0  ;;  %v2978_v21 = vsel %vm310_vm2, %v2977_v41, -inf }
0x13ca   : > { %v3143_v43 = vmul.f32 0.35355338, %v3139_v42  ;;  %2979 = vmax.xlane.f32.xlu0 %v2978_v21  ;;  %v2417_v42 = vld [vmem:[#allocation2 + $0x1c8] sm:$0xff] }
0x13cb   : > { %v5383_v44 = vpop.f32.mrf.mxu0  ;;  %v2421_v21 = vrot.slane %v2417_v42, %v5929_v23  ;;  %v2522_v42 = vld [vmem:[#allocation2 + $0x1f8] sm:$0xff] }
0x13cc   : > { %v3144_v45 = vsel %vm2809_vm8, %v3143_v43, -3.4e+38 }
0x13cd   : > { %v3306_v46 = vpop.f32.mrf.mxu0  ;;  %v3145_v47 = vsel %vm310_vm2, %v3144_v45, -inf  ;;  %v2492_v43 = vadd.f32 %v6195_v17, %v2421_v21 }
0x13ce   : > { %v3310_v48 = vmul.f32 0.35355338, %v3306_v46  ;;  %3146 = vmax.xlane.f32.xlu0 %v3145_v47 }
0x13cf   : > { %v5393_v49 = vpop.f32.mrf.mxu0  ;;  %v2495_v44 = vadd.f32 %v2492_v43, %v6164_v56 }
0x13d0   : > { %v3311_v50 = vsel %vm2809_vm8, %v3310_v48, -3.4e+38 }
0x13d1   : > { %v3312_v51 = vsel %vm310_vm2, %v3311_v50, -inf }
0x13d2   : > { %3313 = vmax.xlane.f32.xlu1 %v3312_v51 }
0x13e3   : > { %2989 = vrot.lane.b32.xlu1 %v6197_v24, %s6501_s14 }
0x144f   : > { %v2813_v52 = vpop.xlane.xlu1 %2812 }
0x1450   : > { %v2814_v53 = vsub.f32 %v2810_v36, %v2813_v52  ;;  %v3415_v36 = vld [vmem:[#allocation2 + $0x230] sm:$0xff] }
0x1451   : > { %5404 = vmatpush3.msra.mxu0 %v3415_v36 }
0x1452   : > { %v2815_v55 = vmul.f32 1.442695, %v2814_v53  ;;  %5405 = vmatprep.subr.mxu0 %v5771_v0 }
0x1453   : > { %v2980_v57 = vpop.xlane.xlu0 %2979  ;;  %5406 = vmatpush3.msra.mxu0 %v3414_v37 }
0x1454   : > { %5632 = vpow2.f32 %v2815_v55  ;;  %v2981_v58 = vsub.f32 %v2977_v41, %v2980_v57  ;;  %5421 = vmatprep.subr.mxu0 %v5771_v0 }
0x1456   : > { %v2982_v59 = vmul.f32 1.442695, %v2981_v58 }
0x1457   : > { %v3147_v4 = vpop.xlane.xlu0 %3146 }
0x1458   : > { %5634 = vpow2.f32 %v2982_v59  ;;  %v3148_v5 = vsub.f32 %v3144_v45, %v3147_v4  ;;  %v2498_v45 = vsel %vm400_vm5, %v2495_v44, 0.0 }
0x145a   : > { %v3149_v6 = vmul.f32 1.442695, %v3148_v5 }
0x145b   : > { %v3314_v60 = vpop.xlane.xlu1 %3313 }
0x145c   : > { %v3315_v61 = vsub.f32 %v3311_v50, %v3314_v60 }
0x145e   : > { %v3316_v19 = vmul.f32 1.442695, %v3315_v61 }
0x145f   : > { %v2990_v9 = vpop.permute.xlu1 %2989 }
0x1460   : > { %5636 = vpow2.f32 %v3316_v19  ;;  %v3418_v19 = vld [vmem:[#allocation2 + $0x248] sm:$0xff] }
0x1461   : > { %v5633_v22 = vpop.eup %5632  ;;  %5638 = vpow2.f32 %v3149_v6 }
0x1462   : > { %v2817_v62 = vsel %vm310_vm2, %v5633_v22, 0.0 }
0x1463   : > { %2818 = vadd.xlane.f32.xlu0 %v2817_v62  ;;  %v2497_v62 = vld [vmem:[#allocation2 + $0x1e8] sm:$0xff] }
0x1464   : > { %v2519_v4 = vrot.slane %v2497_v62, %v5929_v23 }
0x1465   : > { %v5635_v63 = vpop.eup %5634 }
0x1466   : > { %v2984_v1 = vsel %vm310_vm2, %v5635_v63, 0.0 }
0x1467   : > { %2985 = vadd.xlane.f32.xlu1 %v2984_v1 }
0x146d   : > { %v5637_v2 = vpop.eup %5636 }
0x146e   : > { %v3318_v3 = vsel %vm310_vm2, %v5637_v2, 0.0  ;;  %v5639_v7 = vpop.eup %5638 }
0x146f   : > { %3319 = vadd.xlane.f32.xlu1 %v3318_v3  ;;  %v3151_v8 = vsel %vm310_vm2, %v5639_v7, 0.0 }
0x1479   : > { %2822 = vrot.lane.b32.xlu0 %v6197_v24, %s6502_s6 }
0x1480   : > { %3156 = vrot.lane.b32.xlu1 %v6197_v24, %s6503_s16 }
0x1498   : > { %3152 = vadd.xlane.f32.xlu0 %v3151_v8 }
0x14ae   : > { %3323 = vrot.lane.b32.xlu0 %v6197_v24, %s6504_s17 }
0x14ec   : > { %v2819_v10 = vpop.xlane.xlu0 %2818 }
0x14ed   : > { %5640 = vrcp.f32 %v2819_v10 }
0x14f0   : > { %v2823_v11 = vpop.permute.xlu0 %2822  ;;  %v2986_v12 = vpop.xlane.xlu1 %2985 }
0x14f1   : > { %5642 = vrcp.f32 %v2986_v12  ;;  %5365 = vmatpush3.msra.mxu1 %v2823_v11  ;;  %v3525_v11 = vld [vmem:[#allocation2 + $0x268] sm:$0xff]  ;;  %v3524_v12 = vld [vmem:[#allocation2 + $0x260] sm:$0xff] }
0x14f2   : > { %5374 = vmatprep.subr.mxu1 %v5771_v0 }
0x14f8   : > { %v3320_v15 = vpop.xlane.xlu1 %3319 }
0x14fa   : > { %v5641_v14 = vpop.eup %5640 }
0x14fb   : > { %v2821_v16 = vmul.f32 %v5641_v14, %v5633_v22  ;;  %v2496_v22 = vld [vmem:[#allocation2 + $0x1e0] sm:$0xff]  ;;  %v3523_v14 = vld [vmem:[#allocation2 + $0x258] sm:$0xff] }
0x14fc   : > { %v3157_v24 = vpop.permute.xlu1 %3156  ;;  %v2514_v1 = vrot.slane %v2496_v22, %v5929_v23 }
0x14fd   : > { %5367 = vmatmul.mubr.msk.f32.vlgmr.msra.gmra.mxu1 %vm310_vm2, %v2821_v16 }
0x14fe   : > { %v5643_v18 = vpop.eup %5642  ;;  %5375 = vmatpush3.msra.mxu1 %v2990_v9  ;;  %5376 = vmatprep.mubr.msk.f32.mxu1 %vm5772_vm0, %v5771_v0 }
0x14ff   : > { %5384 = vmatprep.subr.mxu1 %v5771_v0  ;;  %v2988_v20 = vmul.f32 %v5643_v18, %v5635_v63  ;;  %v3422_v63 = vrot.slane %v3418_v19, %v5929_v23 }
0x1501   : > { %5377 = vmatmul.mubr.msk.f32.vlgmr.msra.gmra.mxu1 %vm310_vm2, %v2988_v20 }
0x1502   : > { %5385 = vmatpush3.msra.mxu1 %v3157_v24  ;;  %5386 = vmatprep.mubr.msk.f32.mxu1 %vm5772_vm0, %v5771_v0 }
0x1503   : > { %5394 = vmatprep.subr.mxu1 %v5771_v0 }
0x1521   : > { %v3153_v25 = vpop.xlane.xlu0 %3152 }
0x1522   : > { %5644 = vrcp.f32 %v3153_v25 }
0x1523   : > { %5646 = vrcp.f32 %v3320_v15  ;;  %v3522_v15 = vld [vmem:[#allocation2 + $0x250] sm:$0xff] }
0x1525   : > { %v3324_v54 = vpop.permute.xlu0 %3323 }
0x152f   : > { %v5645_v26 = vpop.eup %5644 }
0x1530   : > { %v3155_v27 = vmul.f32 %v5645_v26, %v5639_v7  ;;  %v5647_v28 = vpop.eup %5646 }
0x1531   : > { %v3322_v29 = vmul.f32 %v5647_v28, %v5637_v2 }
0x1532   : > { %5387 = vmatmul.mubr.msk.f32.vlgmr.msra.gmra.mxu1 %vm310_vm2, %v3155_v27 }
0x1533   : > { %5395 = vmatpush3.msra.mxu1 %v3324_v54  ;;  %5396 = vmatprep.mubr.msk.f32.mxu1 %vm5772_vm0, %v5771_v0 }
0x1534   : > { %5410 = vmatprep.subr.mxu1 %v5771_v0 }
0x1536   : > { %5397 = vmatmul.mubr.msk.f32.vlgmr.msra.gmra.mxu1 %vm310_vm2, %v3322_v29  ;;  %v3526_v29 = vld [vmem:[#allocation2 + $0x270] sm:$0xff] }
0x1537   : > { %5418 = vmatprep.mubr.msk.f32.mxu1 %vm5772_vm0, %v5771_v0  ;;  %5411 = vmatpush3.msra.mxu1 %v3525_v11  ;;  %v3530_v30 = vrot.slane %v3526_v29, %v5929_v23 }
0x1538   : > { %5412 = vmatprep.subr.mxu1 %v5771_v0 }
0x1539   : > { %5413 = vmatpush3.msra.mxu1 %v3524_v12 }
0x153a   : > { %5414 = vmatprep.subr.mxu1 %v5771_v0 }
0x153b   : > { %5415 = vmatpush3.msra.mxu1 %v3523_v14 }
0x153c   : > { %5416 = vmatprep.subr.mxu1 %v5771_v0 }
0x153d   : > { %5417 = vmatpush3.msra.mxu1 %v3522_v15 }
0x153e   : > { %5432 = vmatprep.subr.mxu1 %v5771_v0 }
0x15bd   : > { %v2894_v31 = vpop.f32.mrf.mxu1 }
0x15bf   : > { %v5368_v32 = vpop.f32.mrf.mxu1 }
0x15c1   : > { %v3061_v33 = vpop.f32.mrf.mxu1 }
0x15c2   : > { %3400 = vrot.lane.b32.xlu1 %v3061_v33, %s5775_s7 }
0x15c3   : > { %v5378_v34 = vpop.f32.mrf.mxu1 }
0x15f2   : > { %v3228_v38 = vpop.f32.mrf.mxu1 }
0x15f3   : > { %3404 = vrot.lane.b32.xlu0 %v3228_v38, %s6505_s23 }
0x15f4   : > { %v5388_v39 = vpop.f32.mrf.mxu1 }
0x15f6   : > { %v3395_v40 = vpop.f32.mrf.mxu1 }
0x15f7   : > { %3408 = vrot.lane.b32.xlu1 %v3395_v40, %s6506_s25 }
0x15f8   : > { %v5398_v41 = vpop.f32.mrf.mxu1 }
0x15f9   : > { %v2521_v41 = vld [vmem:[#allocation2 + $0x1f0] sm:$0xff] }
0x15fa   : > { %v2539_v21 = vrot.slane %v2521_v41, %v5929_v23 }
0x1612   : > { %2499 = vadd.xlane.f32.xlu0 %v2498_v45 }
0x1634   : > { %v3401_v46 = vpop.permute.xlu1 %3400 }
0x1635   : > { %v3411_v48 = vsel %vm310_vm2, %v2894_v31, %v3401_v46  ;;  %v2544_v46 = vrot.slane %v2522_v42, %v5929_v23 }
0x1665   : > { %v3405_v47 = vpop.permute.xlu0 %3404 }
0x1666   : > { %v3412_v49 = vsel %vm317_vm4, %v3411_v48, %v3405_v47  ;;  %v3498_v47 = vld [vmem:[#allocation2 + $0x318] sm:$0xff] }
0x1669   : > { %v3409_v50 = vpop.permute.xlu1 %3408 }
0x166a   : > { %v3413_v51 = vsel %vm1151_vm6, %v3412_v49, %v3409_v50 }
0x166b   : > { %5408 = vmatmul.mubr.msk.f32.vlgmr.msra.gmra.mxu0 %vm400_vm5, %v3413_v51 }
0x166c   : > { %5429 = vmatprep.mubr.msk.f32.mxu0 %vm5772_vm0, %v5771_v0 }
0x169b   : > { %v2500_v17 = vpop.xlane.xlu0 %2499 }
0x169c   : > { %v2501_v52 = vmul.f32 0.03125, %v2500_v17 }
0x169e   : > { %v2502_v56 = vsub.f32 %v2495_v44, %v2501_v52  ;;  %v3497_v44 = vld [vmem:[#allocation2 + $0x310] sm:$0xff]  ;;  %v3520_v52 = vrot.slane %v3498_v47, %v5929_v23 }
0x169f   : > { %v3515_v49 = vrot.slane %v3497_v44, %v5929_v23 }
0x16a0   : > { %v2503_v53 = vmul.f32 %v2502_v56, %v2502_v56 }
0x16a2   : > { %v2504_v55 = vsel %vm400_vm5, %v2503_v53, 0.0 }
0x16a3   : > { %2505 = vadd.xlane.f32.xlu1 %v2504_v55 }
0x172b   : > { %v3492_v57 = vpop.f32.mrf.mxu0 }
0x172c   : > { %v2506_v58 = vpop.xlane.xlu1 %2505  ;;  %v3493_v5 = vadd.f32 %v3492_v57, %v3422_v63 }
0x172d   : > { %v2507_v59 = vmul.f32 0.03125, %v2506_v58  ;;  %v5409_v60 = vpop.f32.mrf.mxu0 }
0x172e   : > { %v3496_v9 = vadd.f32 %v3493_v5, %v6185_v13 }
0x172f   : > { %v2508_v61 = vadd.f32 1e-05, %v2507_v59 }
0x1730   : > { %v3499_v10 = vsel %vm400_vm5, %v3496_v9, 0.0 }
0x1731   : > { %5648 = vrsqrt.f32 %v2508_v61 }
0x173e   : > { %v5649_v2 = vpop.eup %5648 }
0x173f   : > { %v2510_v3 = vmul.f32 %v5649_v2, %v2502_v56 }
0x1741   : > { %v2515_v6 = vmul.f32 %v2514_v1, %v2510_v3 }
0x1743   : > { %v2520_v7 = vadd.f32 %v2519_v4, %v2515_v6 }
0x1745   : > { %v2523_v8 = vsel %vm400_vm5, %v2520_v7, 0.0 }
0x1746   : > { %2524 = vadd.xlane.f32.xlu0 %v2523_v8 }
0x174a   : > { %3500 = vadd.xlane.f32.xlu0 %v3499_v10 }
0x17cf   : > { %v2525_v13 = vpop.xlane.xlu0 %2524 }
0x17d0   : > { %v2526_v16 = vmul.f32 0.03125, %v2525_v13 }
0x17d2   : > { %v2527_v18 = vsub.f32 %v2520_v7, %v2526_v16 }
0x17d3   : > { %v3501_v20 = vpop.xlane.xlu0 %3500 }
0x17d4   : > { %v3502_v24 = vmul.f32 0.03125, %v3501_v20  ;;  %v2528_v25 = vmul.f32 %v2527_v18, %v2527_v18 }
0x17d6   : > { %v3503_v26 = vsub.f32 %v3496_v9, %v3502_v24  ;;  %v2529_v27 = vsel %vm400_vm5, %v2528_v25, 0.0 }
0x17d7   : > { %2530 = vadd.xlane.f32.xlu1 %v2529_v27 }
0x17d8   : > { %v3504_v28 = vmul.f32 %v3503_v26, %v3503_v26 }
0x17da   : > { %v3505_v54 = vsel %vm400_vm5, %v3504_v28, 0.0 }
0x17db   : > { %3506 = vadd.xlane.f32.xlu0 %v3505_v54 }
0x17e8   : > { %3614 = vrot.lane.b32.xlu1 %v3525_v11, %s5777_s9 }
0x17ec   : > { %3610 = vrot.lane.b32.xlu1 %v3523_v14, %s5777_s9 }
0x17f0   : > { %3608 = vrot.lane.b32.xlu1 %v3522_v15, %s5777_s9 }
0x17f1   : > { %3612 = vrot.lane.b32.xlu0 %v3524_v12, %s5777_s9 }
0x17f5   : > { %3621 = vrot.lane.b32.xlu0 %v3530_v30, %s5777_s9 }
0x1860   : > { %v2531_v31 = vpop.xlane.xlu1 %2530 }
0x1861   : > { %v2532_v32 = vmul.f32 0.03125, %v2531_v31 }
0x1863   : > { %v2533_v33 = vadd.f32 1e-05, %v2532_v32 }
0x1864   : > { %v3507_v34 = vpop.xlane.xlu0 %3506  ;;  %v3615_v35 = vpop.permute.xlu1 %3614 }
0x1865   : > { %5650 = vrsqrt.f32 %v2533_v33  ;;  %v3508_v36 = vmul.f32 0.03125, %v3507_v34  ;;  %5422 = vmatpush3.msra.mxu0 %v3615_v35 }
0x1866   : > { %5423 = vmatprep.subr.mxu0 %v5771_v0 }
0x1867   : > { %v3509_v37 = vadd.f32 1e-05, %v3508_v36 }
0x1868   : > { %v3613_v38 = vpop.permute.xlu0 %3612  ;;  %v3611_v39 = vpop.permute.xlu1 %3610 }
0x1869   : > { %5652 = vrsqrt.f32 %v3509_v37  ;;  %5424 = vmatpush3.msra.mxu0 %v3613_v38 }
0x186a   : > { %5425 = vmatprep.subr.mxu0 %v5771_v0 }
0x186b   : > { %5426 = vmatpush3.msra.mxu0 %v3611_v39 }
0x186c   : > { %v3609_v40 = vpop.permute.xlu1 %3608  ;;  %5427 = vmatprep.subr.mxu0 %v5771_v0  ;;  %v3622_v55 = vpop.permute.xlu0 %3621 }
0x186d   : > { %5428 = vmatpush3.msra.mxu0 %v3609_v40 }
0x186e   : > { %5442 = vmatprep.subr.mxu0 %v5771_v0 }
0x1872   : > { %v5651_v43 = vpop.eup %5650 }
0x1873   : > { %v2535_v45 = vmul.f32 %v5651_v43, %v2527_v18 }
0x1875   : > { %v2540_v48 = vmul.f32 %v2539_v21, %v2535_v45 }
0x1876   : > { %v5653_v50 = vpop.eup %5652 }
0x1877   : > { %v3511_v51 = vmul.f32 %v5653_v50, %v3503_v26  ;;  %v2545_v17 = vadd.f32 %v2544_v46, %v2540_v48 }
0x1879   : > { %5430 = vmatmul.mubr.msk.f32.vlgmr.msra.gmra.mxu0 %vm400_vm5, %v2545_v17  ;;  %v3516_v56 = vmul.f32 %v3515_v49, %v3511_v51 }
0x187a   : > { %5444 = vmatprep.mubr.msk.f32.mxu0 %vm5772_vm0, %v5771_v0 }
0x187b   : > { %v6323_v53 = vadd.f32 %v3520_v52, %v3516_v56 }
0x187d   : > { %5419 = vmatmul.mubr.msk.f32.vlgmr.msra.gmra.mxu1 %vm400_vm5, %v6323_v53 }
0x187e   : > { %5434 = vmatprep.mubr.msk.f32.mxu1 %vm5772_vm0, %v5771_v0 }
0x1939   : > { %v3693_v57 = vpop.f32.mrf.mxu0 }
0x193a   : > { %v6329_v58 = vadd.f32 %v3693_v57, %v3622_v55 }
0x193b   : > { %v5431_v59 = vpop.f32.mrf.mxu0 }
0x193c   : > { %3863 = vrot.lane.b32.xlu1 %v6329_v58, %s5779_s11  ;;  %5433 = vmatpush3.xpose.msk.msra.mxu1 %vm310_vm2, %v6329_v58 }
0x193d   : > { %v3600_v60 = vpop.f32.mrf.mxu1  ;;  %5437 = vmatprep.subr.mxu1 %v5771_v0 }
0x193e   : > { %v3601_v61 = vadd.f32 %v3600_v60, %v3530_v30 }
0x193f   : > { %v5420_v19 = vpop.f32.mrf.mxu1 }
0x1940   : > { %4029 = vrot.lane.b32.xlu1 %v6329_v58, %s5781_s13  ;;  %3861 = vrot.lane.b32.xlu0 %v3601_v61, %s5779_s11  ;;  %v4377_v19 = vld [vmem:[#allocation2 + $0x290] sm:$0xff] }
0x1941   : > { %5435 = vmatmul.mubr.msk.f32.vlgmr.msra.gmra.mxu1 %vm310_vm2, %v3601_v61 }
0x1942   : > { %5439 = vmatprep.mubr.msk.f32.mxu1 %vm5772_vm0, %v5771_v0 }
0x1944   : > { %4195 = vrot.lane.b32.xlu1 %v6329_v58, %s5782_s15  ;;  %4027 = vrot.lane.b32.xlu0 %v3601_v61, %s5781_s13 }
0x1948   : > { %4193 = vrot.lane.b32.xlu0 %v3601_v61, %s5782_s15 }
0x19ae   : > { %v3864_v22 = vpop.permute.xlu1 %3863 }
0x19af   : > { %5443 = vmatpush3.xpose.msk.msra.mxu0 %vm310_vm2, %v3864_v22  ;;  %v4376_v22 = vld [vmem:[#allocation2 + $0x288] sm:$0xff] }
0x19b0   : > { %5452 = vmatprep.subr.mxu0 %v5771_v0 }
0x19b2   : > { %v4030_v62 = vpop.permute.xlu1 %4029  ;;  %v3862_v63 = vpop.permute.xlu0 %3861 }
0x19b3   : > { %5445 = vmatmul.mubr.msk.f32.vlgmr.msra.gmra.mxu0 %vm310_vm2, %v3862_v63  ;;  %v4374_v63 = vld [vmem:[#allocation2 + $0x278] sm:$0xff] }
0x19b4   : > { %5453 = vmatpush3.xpose.msk.msra.mxu0 %vm310_vm2, %v4030_v62  ;;  %5454 = vmatprep.mubr.msk.f32.mxu0 %vm5772_vm0, %v5771_v0  ;;  %v4375_v62 = vld [vmem:[#allocation2 + $0x280] sm:$0xff] }
0x19b5   : > { %5462 = vmatprep.subr.mxu0 %v5771_v0 }
0x19b6   : > { %v4196_v1 = vpop.permute.xlu1 %4195  ;;  %v4028_v2 = vpop.permute.xlu0 %4027 }
0x19b7   : > { %5455 = vmatmul.mubr.msk.f32.vlgmr.msra.gmra.mxu0 %vm310_vm2, %v4028_v2 }
0x19b8   : > { %5463 = vmatpush3.xpose.msk.msra.mxu0 %vm310_vm2, %v4196_v1  ;;  %5464 = vmatprep.mubr.msk.f32.mxu0 %vm5772_vm0, %v5771_v0 }
0x19b9   : > { %5472 = vmatprep.subr.mxu0 %v5771_v0 }
0x19ba   : > { %v4194_v3 = vpop.permute.xlu0 %4193 }
0x19bb   : > { %5465 = vmatmul.mubr.msk.f32.vlgmr.msra.gmra.mxu0 %vm310_vm2, %v4194_v3 }
0x19bc   : > { %5480 = vmatprep.mubr.msk.f32.mxu0 %vm5772_vm0, %v5771_v0  ;;  %5473 = vmatpush3.msra.mxu0 %v4377_v19 }
0x19bd   : > { %5474 = vmatprep.subr.mxu0 %v5771_v0 }
0x19be   : > { %5475 = vmatpush3.msra.mxu0 %v4376_v22 }
0x19bf   : > { %5476 = vmatprep.subr.mxu0 %v5771_v0 }
0x19c0   : > { %5477 = vmatpush3.msra.mxu0 %v4375_v62 }
0x19c1   : > { %5478 = vmatprep.subr.mxu0 %v5771_v0 }
0x19c2   : > { %5479 = vmatpush3.msra.mxu0 %v4374_v63 }
0x19c3   : > { %5494 = vmatprep.subr.mxu0 %v5771_v0 }
0x1a01   : > { %v3769_v4 = vpop.f32.mrf.mxu1 }
0x1a02   : > { %v3773_v5 = vmul.f32 0.35355338, %v3769_v4 }
0x1a03   : > { %v5436_v6 = vpop.f32.mrf.mxu1 }
0x1a04   : > { %v3774_v7 = vsel %vm310_vm2, %v3773_v5, -inf }
0x1a05   : > { %3775 = vmax.xlane.f32.xlu1 %v3774_v7 }
0x1a73   : > { %v3935_v8 = vpop.f32.mrf.mxu0 }
0x1a74   : > { %v3939_v9 = vmul.f32 0.35355338, %v3935_v8 }
0x1a75   : > { %v5446_v10 = vpop.f32.mrf.mxu0 }
0x1a76   : > { %v3940_v11 = vsel %vm310_vm2, %v3939_v9, -inf }
0x1a77   : > { %3941 = vmax.xlane.f32.xlu0 %v3940_v11  ;;  %v4101_v12 = vpop.f32.mrf.mxu0 }
0x1a78   : > { %v4105_v14 = vmul.f32 0.35355338, %v4101_v12 }
0x1a79   : > { %v5456_v15 = vpop.f32.mrf.mxu0 }
0x1a7a   : > { %v4106_v13 = vsel %vm310_vm2, %v4105_v14, -inf }
0x1a7b   : > { %4107 = vmax.xlane.f32.xlu0 %v4106_v13  ;;  %v4267_v16 = vpop.f32.mrf.mxu0 }
0x1a7c   : > { %v4271_v18 = vmul.f32 0.35355338, %v4267_v16 }
0x1a7d   : > { %v5466_v20 = vpop.f32.mrf.mxu0 }
0x1a7e   : > { %v4272_v24 = vsel %vm310_vm2, %v4271_v18, -inf }
0x1a7f   : > { %4273 = vmax.xlane.f32.xlu1 %v4272_v24 }
0x1a8e   : > { %v3776_v25 = vpop.xlane.xlu1 %3775 }
0x1a8f   : > { %v3777_v26 = vsub.f32 %v3773_v5, %v3776_v25 }
0x1a90   : > { %3951 = vrot.lane.b32.xlu1 %v6329_v58, %s5776_s8 }
0x1a91   : > { %v3778_v27 = vmul.f32 1.442695, %v3777_v26 }
0x1a93   : > { %5654 = vpow2.f32 %v3778_v27 }
0x1aa0   : > { %v5655_v28 = vpop.eup %5654 }
0x1aa1   : > { %v3780_v54 = vsel %vm310_vm2, %v5655_v28, 0.0 }
0x1aa2   : > { %3781 = vadd.xlane.f32.xlu0 %v3780_v54 }
0x1ab8   : > { %3785 = vrot.lane.b32.xlu0 %v6329_v58, %s5777_s9  ;;  %s4985_s9 = sshll.u32 %s5841_s22, 6  ;;  %s5789_s22 = smov [#allocation5]  }
0x1ab9   : > { %s6447_s15 = scalar_lea.hbm %s6487_s5, %s4985_s9  ;;  %s5706_s14 = sshll.u32 %s5789_s22, 4  ;;  %s5707_s14 = int_to_ptr.vmem [resolvable:$false] %s5706_s14 }
0x1aba   : > { %s5708_s6 = scalar_lea.vmem %s5707_s14, 128 }
0x1b00   : > { %v3942_v29 = vpop.xlane.xlu0 %3941 }
0x1b01   : > { %v3943_v30 = vsub.f32 %v3939_v9, %v3942_v29  ;;  %v4485_v29 = vld [vmem:[#allocation2 + $0x2b8] sm:$0xff] }
0x1b03   : > { %v3944_v31 = vmul.f32 1.442695, %v3943_v30  ;;  %v4484_v30 = vld [vmem:[#allocation2 + $0x2b0] sm:$0xff] }
0x1b04   : > { %v4108_v32 = vpop.xlane.xlu0 %4107 }
0x1b05   : > { %5656 = vpow2.f32 %v3944_v31  ;;  %v4109_v33 = vsub.f32 %v4105_v14, %v4108_v32  ;;  %v4378_v14 = vld [vmem:[#allocation2 + $0x298] sm:$0xff]  ;;  %v4483_v31 = vld [vmem:[#allocation2 + $0x2a8] sm:$0xff]  ;;  %v4572_v32 = vld [vmem:[#allocation2 + $0x300] sm:$0xff] }
0x1b06   : > { %v4382_v15 = vrot.slane %v4378_v14, %v5929_v23 }
0x1b07   : > { %v4110_v34 = vmul.f32 1.442695, %v4109_v33  ;;  %v4571_v33 = vld [vmem:[#allocation2 + $0x2f8] sm:$0xff] }
0x1b08   : > { %v4274_v35 = vpop.xlane.xlu1 %4273 }
0x1b09   : > { %5658 = vpow2.f32 %v4110_v34  ;;  %v4275_v36 = vsub.f32 %v4271_v18, %v4274_v35  ;;  %v4570_v34 = vld [vmem:[#allocation2 + $0x2f0] sm:$0xff]  ;;  %v4569_v35 = vld [vmem:[#allocation2 + $0x2e8] sm:$0xff] }
0x1b0b   : > { %v4276_v37 = vmul.f32 1.442695, %v4275_v36  ;;  %v4568_v36 = vld [vmem:[#allocation2 + $0x2e0] sm:$0xff] }
0x1b0c   : > { %v3952_v47 = vpop.permute.xlu1 %3951 }
0x1b0d   : > { %5660 = vpow2.f32 %v4276_v37 }
0x1b12   : > { %v5657_v38 = vpop.eup %5656 }
0x1b13   : > { %v3946_v39 = vsel %vm310_vm2, %v5657_v38, 0.0 }
0x1b14   : > { %3947 = vadd.xlane.f32.xlu1 %v3946_v39 }
0x1b16   : > { %v5659_v40 = vpop.eup %5658 }
0x1b17   : > { %v4112_v41 = vsel %vm310_vm2, %v5659_v40, 0.0 }
0x1b18   : > { %4113 = vadd.xlane.f32.xlu0 %v4112_v41  ;;  %v4458_v41 = vld [vmem:[#allocation2 + $0x328] sm:$0xff] }
0x1b1a   : > { %v5661_v42 = vpop.eup %5660 }
0x1b1b   : > { %v4278_v21 = vsel %vm310_vm2, %v5661_v42, 0.0 }
0x1b1c   : > { %4279 = vadd.xlane.f32.xlu1 %v4278_v21 }
0x1b2b   : > { %v3782_v43 = vpop.xlane.xlu0 %3781 }
0x1b2c   : > { %5662 = vrcp.f32 %v3782_v43 }
0x1b2d   : > { %4117 = vrot.lane.b32.xlu1 %v6329_v58, %s5778_s10 }
0x1b2e   : > { %4283 = vrot.lane.b32.xlu0 %v6329_v58, %s5780_s12 }
0x1b2f   : > { %v3786_v44 = vpop.permute.xlu0 %3785 }
0x1b30   : > { %5438 = vmatpush3.msra.mxu1 %v3786_v44  ;;  %v4480_v44 = vrot.slane %v4458_v41, %v5929_v23 }
0x1b31   : > { %5447 = vmatprep.subr.mxu1 %v5771_v0 }
0x1b39   : > { %v5663_v45 = vpop.eup %5662 }
0x1b3a   : > { %v3784_v46 = vmul.f32 %v5663_v45, %v5655_v28 }
0x1b3c   : > { %5440 = vmatmul.mubr.msk.f32.vlgmr.msra.gmra.mxu1 %vm310_vm2, %v3784_v46 }
0x1b3d   : > { %5448 = vmatpush3.msra.mxu1 %v3952_v47  ;;  %5449 = vmatprep.mubr.msk.f32.mxu1 %vm5772_vm0, %v5771_v0  ;;  %v4567_v47 = vld [vmem:[#allocation2 + $0x2d8] sm:$0xff] }
0x1b3e   : > { %5457 = vmatprep.subr.mxu1 %v5771_v0 }
0x1b9d   : > { %v3948_v48 = vpop.xlane.xlu1 %3947 }
0x1b9e   : > { %5664 = vrcp.f32 %v3948_v48  ;;  %v4566_v48 = vld [vmem:[#allocation2 + $0x2d0] sm:$0xff] }
0x1ba1   : > { %v4114_v49 = vpop.xlane.xlu0 %4113 }
0x1ba2   : > { %5666 = vrcp.f32 %v4114_v49  ;;  %v4565_v49 = vld [vmem:[#allocation2 + $0x2c8] sm:$0xff] }
0x1ba5   : > { %v4280_v50 = vpop.xlane.xlu1 %4279  ;;  %v4284_v57 = vpop.permute.xlu0 %4283 }
0x1ba6   : > { %5668 = vrcp.f32 %v4280_v50  ;;  %v4486_v50 = vld [vmem:[#allocation2 + $0x2c0] sm:$0xff] }
0x1ba9   : > { %v4118_v52 = vpop.permute.xlu1 %4117 }
0x1bab   : > { %v5665_v51 = vpop.eup %5664 }
0x1bac   : > { %v3950_v17 = vmul.f32 %v5665_v51, %v5657_v38  ;;  %v4490_v51 = vrot.slane %v4486_v50, %v5929_v23 }
0x1bae   : > { %5450 = vmatmul.mubr.msk.f32.vlgmr.msra.gmra.mxu1 %vm310_vm2, %v3950_v17 }
0x1baf   : > { %v5667_v56 = vpop.eup %5666  ;;  %5458 = vmatpush3.msra.mxu1 %v4118_v52  ;;  %5459 = vmatprep.mubr.msk.f32.mxu1 %vm5772_vm0, %v5771_v0 }
0x1bb0   : > { %5467 = vmatprep.subr.mxu1 %v5771_v0  ;;  %v4116_v55 = vmul.f32 %v5667_v56, %v5659_v40  ;;  %v4457_v40 = vld [vmem:[#allocation2 + $0x320] sm:$0xff] }
0x1bb2   : > { %5460 = vmatmul.mubr.msk.f32.vlgmr.msra.gmra.mxu1 %vm310_vm2, %v4116_v55 }
0x1bb3   : > { %v5669_v58 = vpop.eup %5668  ;;  %5468 = vmatpush3.msra.mxu1 %v4284_v57  ;;  %5469 = vmatprep.mubr.msk.f32.mxu1 %vm5772_vm0, %v5771_v0  ;;  %v4573_v57 = vld [vmem:[#allocation2 + $0x308] sm:$0xff] }
0x1bb4   : > { %v4282_v59 = vmul.f32 %v5669_v58, %v5661_v42  ;;  %5483 = vmatprep.subr.mxu1 %v5771_v0  ;;  %v4475_v42 = vrot.slane %v4457_v40, %v5929_v23  ;;  %v4577_v58 = vrot.slane %v4573_v57, %v5929_v23 }
0x1bb6   : > { %5470 = vmatmul.mubr.msk.f32.vlgmr.msra.gmra.mxu1 %vm310_vm2, %v4282_v59 }
0x1bb7   : > { %5491 = vmatprep.mubr.msk.f32.mxu1 %vm5772_vm0, %v5771_v0  ;;  %5484 = vmatpush3.msra.mxu1 %v4485_v29 }
0x1bb8   : > { %5485 = vmatprep.subr.mxu1 %v5771_v0 }
0x1bb9   : > { %5486 = vmatpush3.msra.mxu1 %v4484_v30 }
0x1bba   : > { %5487 = vmatprep.subr.mxu1 %v5771_v0 }
0x1bbb   : > { %5488 = vmatpush3.msra.mxu1 %v4483_v31 }
0x1bbc   : > { %5489 = vmatprep.subr.mxu1 %v5771_v0 }
0x1bfc   : > { %v3857_v60 = vpop.f32.mrf.mxu1 }
0x1bfe   : > { %v5441_v61 = vpop.f32.mrf.mxu1 }
0x1c6e   : > { %v4023_v1 = vpop.f32.mrf.mxu1 }
0x1c6f   : > { %4360 = vrot.lane.b32.xlu1 %v4023_v1, %s5775_s7  ;;  %s267_s7 = sand.u32 1, %s5758_s19  }
0x1c70   : > { %v5451_v2 = vpop.f32.mrf.mxu1  ;;  %s4913_s8 = sshll.u32 %s267_s7, 2  ;;  %s4787_s26 = scalar_lea.sflag [#allocation4], %s267_s7 }
0x1c71   : > { %s269_s10 = scalar_lea.vmem [#allocation5], %s4913_s8 }
0x1c72   : > { %v4189_v3 = vpop.f32.mrf.mxu1  ;;  %s4800_s11 = sshll.u32 %s269_s10, 4  ;;  %s4801_s11 = int_to_ptr.vmem [resolvable:$true] %s4800_s11 }
0x1c73   : > { %4364 = vrot.lane.b32.xlu0 %v4189_v3, %s6505_s23  ;;  %s5702_s30 = scalar_lea.vmem %s4801_s11, 64  ;;  %p5709_p11 = scmp.lt.s32.totalorder %s4801_s11, %s5707_s14 }
0x1c74   : > { %v5461_v4 = vpop.f32.mrf.mxu1  ;;  %p5703_p6 = scmp.ne.s32.totalorder %s4801_s11, %s5702_s30  ;;  %p5710_p12 = scmp.lt.s32.totalorder %s5708_s6, %s5702_s30 }
0x1c76   : > { %v4355_v5 = vpop.f32.mrf.mxu1  ;;  %p5704_p9 = pnand %p5703_p6, %p5858_p5  ;;  %p5711_p13 = por %p5710_p12, %p5709_p11 }
0x1c77   : > { %4368 = vrot.lane.b32.xlu1 %v4355_v5, %s6506_s25 }
0x1c78   : > { %v5471_v6 = vpop.f32.mrf.mxu1  ;;  %p5705_p10 = pneg %p5704_p9 }
0x1c7a   : > { %p5712_p0 = pnand %p5711_p13, %p5705_p10 }
0x1ce1   : > { %v4361_v7 = vpop.permute.xlu1 %4360 }
0x1ce2   : > { %v4371_v9 = vsel %vm310_vm2, %v3857_v60, %v4361_v7  ;;  %v4652_v7 = vld [vmem:[#allocation2 + $0x330] sm:$0xff] }
0x1ce5   : > { %v4365_v8 = vpop.permute.xlu0 %4364 }
0x1ce6   : > { %v4372_v10 = vsel %vm317_vm4, %v4371_v9, %v4365_v8  ;;  %v4653_v8 = vld [vmem:[#allocation2 + $0x338] sm:$0xff]  ;;  %v4670_v9 = vrot.slane %v4652_v7, %v5929_v23 }
0x1ce9   : > { %v4369_v11 = vpop.permute.xlu1 %4368 }
0x1cea   : > { %v4373_v12 = vsel %vm1151_vm6, %v4372_v10, %v4369_v11 }
0x1ceb   : > { %5481 = vmatmul.mubr.msk.f32.vlgmr.msra.gmra.mxu0 %vm400_vm5, %v4373_v12  ;;  %v4675_v12 = vrot.slane %v4653_v8, %v5929_v23 }
0x1cec   : > { %5510 = vmatprep.mubr.msk.f32.mxu0 %vm5772_vm0, %v5771_v0  ;;  %5495 = vmatpush3.msra.mxu0 %v4572_v32  ;;  %v4678_v32 = vld [vmem:[#allocation2 + $0x348] sm:$0xff] }
0x1ced   : > { %5496 = vmatprep.subr.mxu0 %v5771_v0 }
0x1cee   : > { %5497 = vmatpush3.msra.mxu0 %v4571_v33 }
0x1cef   : > { %5498 = vmatprep.subr.mxu0 %v5771_v0 }
0x1cf0   : > { %5499 = vmatpush3.msra.mxu0 %v4570_v34 }
0x1cf1   : > { %5500 = vmatprep.subr.mxu0 %v5771_v0 }
0x1cf2   : > { %5501 = vmatpush3.msra.mxu0 %v4569_v35 }
0x1cf3   : > { %5502 = vmatprep.subr.mxu0 %v5771_v0 }
0x1cf4   : > { %5503 = vmatpush3.msra.mxu0 %v4568_v36  ;;  %v4700_v36 = vrot.slane %v4678_v32, %v5929_v23 }
0x1cf5   : > { %5504 = vmatprep.subr.mxu0 %v5771_v0 }
0x1cf6   : > { %5505 = vmatpush3.msra.mxu0 %v4567_v47 }
0x1cf7   : > { %5506 = vmatprep.subr.mxu0 %v5771_v0 }
0x1cf8   : > { %5507 = vmatpush3.msra.mxu0 %v4566_v48 }
0x1cf9   : > { %5508 = vmatprep.subr.mxu0 %v5771_v0 }
0x1cfa   : > { %5509 = vmatpush3.msra.mxu0 %v4565_v49 }
0x1dab   : > { %v4452_v13 = vpop.f32.mrf.mxu0 }
0x1dac   : > { %v4453_v16 = vadd.f32 %v4452_v13, %v4382_v15 }
0x1dad   : > { %v5482_v18 = vpop.f32.mrf.mxu0 }
0x1dae   : > { %v4456_v20 = vadd.f32 %v4453_v16, %v6323_v53  ;;  %v4482_v53 = vld [vmem:[#allocation2 + $0x2a0] sm:$0xff] }
0x1daf   : > { %5490 = vmatpush3.msra.mxu1 %v4482_v53  ;;  %v4677_v53 = vld [vmem:[#allocation2 + $0x340] sm:$0xff] }
0x1db0   : > { %v4459_v24 = vsel %vm400_vm5, %v4456_v20, 0.0  ;;  %5513 = vmatprep.subr.mxu1 %v5771_v0  ;;  %v4695_v33 = vrot.slane %v4677_v53, %v5929_v23 }
0x1db1   : > { %4460 = vadd.xlane.f32.xlu0 %v4459_v24 }
0x1e3a   : > { %v4461_v25 = vpop.xlane.xlu0 %4460 }
0x1e3b   : > { %v4462_v26 = vmul.f32 0.03125, %v4461_v25 }
0x1e3d   : > { %v4463_v27 = vsub.f32 %v4456_v20, %v4462_v26  ;;  %v4705_v26 = vld [vmem:[#allocation2 + $0x368] sm:$0xff] }
0x1e3f   : > { %v4464_v28 = vmul.f32 %v4463_v27, %v4463_v27 }
0x1e41   : > { %v4465_v54 = vsel %vm400_vm5, %v4464_v28, 0.0  ;;  %v4703_v28 = vld [vmem:[#allocation2 + $0x358] sm:$0xff] }
0x1e42   : > { %4466 = vadd.xlane.f32.xlu1 %v4465_v54  ;;  %v4702_v54 = vld [vmem:[#allocation2 + $0x350] sm:$0xff] }
0x1ecb   : > { %v4467_v37 = vpop.xlane.xlu1 %4466 }
0x1ecc   : > { %v4468_v38 = vmul.f32 0.03125, %v4467_v37 }
0x1ece   : > { %v4469_v39 = vadd.f32 1e-05, %v4468_v38 }
0x1ed0   : > { %5670 = vrsqrt.f32 %v4469_v39 }
0x1edd   : > { %v5671_v21 = vpop.eup %5670 }
0x1ede   : > { %v4471_v43 = vmul.f32 %v5671_v21, %v4463_v27  ;;  %v4704_v27 = vld [vmem:[#allocation2 + $0x360] sm:$0xff] }
0x1ee0   : > { %v4476_v45 = vmul.f32 %v4475_v42, %v4471_v43 }
0x1ee2   : > { %v4481_v46 = vadd.f32 %v4480_v44, %v4476_v45 }
0x1ee4   : > { %5492 = vmatmul.mubr.msk.f32.vlgmr.msra.gmra.mxu1 %vm400_vm5, %v4481_v46 }
0x1ee5   : > { %5521 = vmatprep.mubr.msk.f32.mxu1 %vm5772_vm0, %v5771_v0  ;;  %5514 = vmatpush3.msra.mxu1 %v4705_v26 }
0x1ee6   : > { %5515 = vmatprep.subr.mxu1 %v5771_v0 }
0x1ee7   : > { %5516 = vmatpush3.msra.mxu1 %v4704_v27 }
0x1ee8   : > { %5517 = vmatprep.subr.mxu1 %v5771_v0 }
0x1ee9   : > { %5518 = vmatpush3.msra.mxu1 %v4703_v28 }
0x1eea   : > { %5519 = vmatprep.subr.mxu1 %v5771_v0  ;;  %v4706_v0 = vld [vmem:[#allocation2 + $0x370] sm:$0xff] }
0x1eeb   : > { %5520 = vmatpush3.msra.mxu1 %v4702_v54  ;;  %v4710_v39 = vrot.slane %v4706_v0, %v5929_v23 }
0x1fa4   : > { %v4560_v17 = vpop.f32.mrf.mxu1 }
0x1fa5   : > { %v4561_v52 = vadd.f32 %v4560_v17, %v4490_v51 }
0x1fa6   : > { %v5493_v56 = vpop.f32.mrf.mxu1 }
0x1fa7   : > { %v4564_v55 = vmax.f32 %v4561_v52, 0.0 }
0x1fa9   : > { %5511 = vmatmul.mubr.msk.f32.vlgmr.msra.gmra.mxu0 %vm1358_vm7, %v4564_v55 }
0x2069   : > { %v4647_v59 = vpop.f32.mrf.mxu0 }
0x206a   : > { %v4648_v60 = vadd.f32 %v4647_v59, %v4577_v58 }
0x206b   : > { %v5512_v61 = vpop.f32.mrf.mxu0 }
0x206c   : > { %v4651_v19 = vadd.f32 %v4648_v60, %v4481_v46 }
0x206e   : > { %v4654_v22 = vsel %vm400_vm5, %v4651_v19, 0.0 }
0x206f   : > { %4655 = vadd.xlane.f32.xlu0 %v4654_v22 }
0x20f8   : > { %v4656_v62 = vpop.xlane.xlu0 %4655 }
0x20f9   : > { %v4657_v63 = vmul.f32 0.03125, %v4656_v62 }
0x20fb   : > { %v4658_v1 = vsub.f32 %v4651_v19, %v4657_v63 }
0x20fd   : > { %v4659_v2 = vmul.f32 %v4658_v1, %v4658_v1 }
0x20ff   : > { %v4660_v3 = vsel %vm400_vm5, %v4659_v2, 0.0 }
0x2100   : > { %4661 = vadd.xlane.f32.xlu0 %v4660_v3 }
0x2189   : > { %v4662_v4 = vpop.xlane.xlu0 %4661 }
0x218a   : > { %v4663_v5 = vmul.f32 0.03125, %v4662_v4 }
0x218c   : > { %v4664_v6 = vadd.f32 1e-05, %v4663_v5 }
0x218e   : > { %5672 = vrsqrt.f32 %v4664_v6 }
0x219b   : > { %v5673_v10 = vpop.eup %5672 }
0x219c   : > { %v4666_v11 = vmul.f32 %v5673_v10, %v4658_v1 }
0x219e   : > { %v4671_v14 = vmul.f32 %v4670_v9, %v4666_v11 }
0x21a0   : > { %v4676_v15 = vadd.f32 %v4675_v12, %v4671_v14 }
0x21a2   : > { %v4679_v13 = vsel %vm400_vm5, %v4676_v15, 0.0 }
0x21a3   : > { %4680 = vadd.xlane.f32.xlu1 %v4679_v13 }
0x222c   : > { %v4681_v16 = vpop.xlane.xlu1 %4680 }
0x222d   : > { %v4682_v18 = vmul.f32 0.03125, %v4681_v16 }
0x222f   : > { %v4683_v20 = vsub.f32 %v4676_v15, %v4682_v18 }
0x2231   : > { %v4684_v24 = vmul.f32 %v4683_v20, %v4683_v20 }
0x2233   : > { %v4685_v25 = vsel %vm400_vm5, %v4684_v24, 0.0 }
0x2234   : > { %4686 = vadd.xlane.f32.xlu0 %v4685_v25 }
0x22bd   : > { %v4687_v29 = vpop.xlane.xlu0 %4686 }
0x22be   : > { %v4688_v30 = vmul.f32 0.03125, %v4687_v29 }
0x22c0   : > { %v4689_v31 = vadd.f32 1e-05, %v4688_v30 }
0x22c2   : > { %5674 = vrsqrt.f32 %v4689_v31 }
0x22cf   : > { %v5675_v34 = vpop.eup %5674 }
0x22d0   : > { %v4691_v35 = vmul.f32 %v5675_v34, %v4683_v20 }
0x22d2   : > { %v4696_v37 = vmul.f32 %v4695_v33, %v4691_v35 }
0x22d4   : > { %v4701_v38 = vadd.f32 %v4700_v36, %v4696_v37 }
0x22d6   : > { %5522 = vmatmul.mubr.msk.f32.vlgmr.msra.gmra.mxu1 %vm400_vm5, %v4701_v38 }
0x2396   : > { %v4780_v40 = vpop.f32.mrf.mxu1 }
0x2397   : > { %v4781_v41 = vadd.f32 %v4780_v40, %v4710_v39 }
0x2398   : > { %v5523_v42 = vpop.f32.mrf.mxu1 }
0x2399   : > { %4785 = vst.msk [vmem:[%s269_s10 - $0x4] sm:$0xf0] %vm4784_vm9, %v4781_v41 }
0x239a   : > { %5715 = shalt.err (!%p5712_p0)
}
0x239b   : > { %s5716_s16 = scalar_lea.hbm %s6447_s15, 64  ;;  %s5720_s25 = scalar_lea.hbm %s6487_s5, 128 }
0x239c   : > { %p5717_p1 = scmp.ne.s32.totalorder %s6447_s15, %s5716_s16  ;;  %p5721_p4 = scmp.lt.s32.totalorder %s6447_s15, %s6487_s5 }
0x239d   : > { %p5722_p7 = scmp.lt.s32.totalorder %s5720_s25, %s5716_s16 }
0x239e   : > { %p5718_p2 = pnand %p5717_p1, %p5858_p5 }
0x239f   : > { %p5723_p8 = por %p5722_p7, %p5721_p4 }
0x23a0   : > { %p5719_p3 = pneg %p5718_p2 }
0x23a2   : > { %p5724_p6 = pnand %p5723_p8, %p5719_p3 }
0x23a4   : > { %5727 = shalt.err (!%p5724_p6)
}
0x23a5   : > { %5528 = dma.vmem_to_hbm [thread:$0]  (%p5858_p5), %s4801_s11, 64, %s6447_s15, %s4787_s26  }
0x23a6 PF: > { %p5540_p9 = scmp.ge.s32.totalorder %s5766_s21, 2  ;;  %s4812_s9 = sand.u32 1, %s5754_s18  }
0x23a7   : > { %p6507_p10 = scmp.ne.s32.totalorder %s6498_s29, 0  ;;  %s4813_s10 = scalar_lea.sflag [#allocation4], %s4812_s9 }
0x23a9   : > { %p5535_p11 = pnand %p5540_p9, %p6507_p10 }
0x23ab   : > { %p5536_p12 = pneg %p5535_p11 }
0x23ad   : > { %5749 = dma.done.wait (%p5536_p12), %s4813_s10, 64  }
0x23ae   : > { %5751 = vsyncadd (%p5536_p12), %s4813_s10, 4294967232  ;;  %p16_p13 = scmp.ge.s32.totalorder %s5845_s24, 4   ;;  %s6508_s18 = smov %s5758_s19 }
0x23af   : > { %s6509_s19 = smov %s5762_s20  ;;  %s6510_s20 = smov %s5856_s27 }
0x23b0   : > { %s6511_s21 = smov %s5845_s24  ;;  %18 = sbr.rel (!%p16_p13) target bundleno = 4 (0x4), region = 89 }
0x23b5   :  { %4818 = vsyncpa [#allocation3], 1 }
0x23b6   :  { %4820 = vsyncpa [#allocation3 + $0x1], 1 }
0x23b7   :  { %4821 = vsyncpa [#allocation4], 1 }
0x23b8   :  { %4823 = vsyncpa [#allocation4 + $0x1], 1 }

</bundles_post_ra>
